<compile_context>
chip_gen: v6e
topology: v6e:2x2x1
jax: 0.10.0
libtpu: 0.0.40
codegen_flags: <defaults>
</compile_context>

<pallas_src>
import math

import jax
import jax.numpy as jnp
from jax.experimental import pallas as pl
from jax.experimental.pallas import tpu as pltpu


def _partial_loss_kernel(yt_ref, yp_ref, w_ref, out_ref):
    """One grid step = one (sample, node-tile) -> one f32 partial loss.

    yt_ref  : VMEM (1, tile_n, F)   y_true tile
    yp_ref  : VMEM (1, tile_n, F)   y_pred tile
    w_ref   : VMEM (1, tile_n, 1)   per-node weight (NUM_CBGS mask & 1/F folded in)
    out_ref : VMEM (1, 1, 1)        partial loss for this (sample, tile)
    """
    diff = yt_ref[0] - yp_ref[0]                              # (tile_n, F)  VPU
    # w already contains the node mask (n < NUM_CBGS) and the 1/F of mean_f:
    # lane-broadcast multiply (VPU) + a single reduce-to-scalar (XLU).
    out_ref[...] = jnp.sum(w_ref[0] * (diff * diff)).reshape(1, 1, 1)


_FULL_BLOCK_BUDGET = 6 * 1024 * 1024  # max bytes for a full-N (1, N, F) y block


def _choose_tiling(N, F, num_cbgs):
    """Pick (tile_n, n_tiles).  Default: one block per sample (tile_n = N)."""
    full_bytes = N * F * 4
    cands = [t for t in (1024, 512, 2048, 256, 128, 64, 32, 16, 8) if N % t == 0]
    if cands:
        t = cands[0]
        trimmed = max(math.ceil(min(num_cbgs, N) / t), 1)
        trim_saves = trimmed < math.ceil(N / t)
    else:
        t, trimmed, trim_saves = N, 1, False
    if not cands or (full_bytes <= _FULL_BLOCK_BUDGET and not trim_saves):
        return N, 1
    return t, trimmed


def _y_block_spec(tile_n, F, deep):
    """y_true / y_pred BlockSpec; 3-deep pipeline only on the tiled path."""
    if deep:
        try:
            return pl.BlockSpec((1, tile_n, F), lambda s, t: (s, t, 0),
                                pipeline_mode=pl.Buffered(3))
        except (TypeError, AttributeError):
            pass
    return pl.BlockSpec((1, tile_n, F), lambda s, t: (s, t, 0))


def batch_loss(y_true, y_pred, w, num_cbgs):
    """Pallas wrapper reproducing Model._do_batch_ tensor semantics.

    y_true, y_pred : (S, N, F) float32
    w              : (S, N, 1) float32
    num_cbgs       : static Python int -- nodes with index >= num_cbgs are zeroed
    returns        : scalar float32 loss (averaged over S samples)
    """
    S, N, F = y_true.shape
    tile_n, n_tiles = _choose_tiling(N, F, num_cbgs)

    # Fold the node mask (y[num_cbgs:] = 0) and the 1/F of mean_f into the tiny
    # per-node weight array once, outside the kernel (fuses under jit).
    # TODO(synk): this mask-the-weights equivalence only holds for the
    #             weighted-MSE stand-in loss; revisit for other Model.loss.
    mask = (jnp.arange(N) < num_cbgs)[None, :, None]
    wm = (jnp.where(mask, w, 0.0) * (1.0 / F)).astype(jnp.float32)

    deep = n_tiles > 1
    grid_spec = pltpu.PrefetchScalarGridSpec(
        num_scalar_prefetch=0,
        grid=(S, n_tiles),
        in_specs=[
            _y_block_spec(tile_n, F, deep),
            _y_block_spec(tile_n, F, deep),
            # NOTE: the (1, tile_n, 1) block lane-pads to (tile_n, 128) in VMEM;
            # accepted (small next to the y tiles) rather than transposing w.
            pl.BlockSpec((1, tile_n, 1), lambda s, t: (s, t, 0)),
        ],
        # One partial sum per (sample, node-tile); trailing dims of the block
        # equal the full array dims, so the (8,128) rule is satisfied.
        out_specs=pl.BlockSpec((1, 1, 1), lambda s, t: (s * n_tiles + t, 0, 0)),
    )

    n_eff = n_tiles * tile_n
    cost = pl.CostEstimate(
        flops=4 * S * n_eff * F,
        transcendentals=0,
        bytes_accessed=(2 * S * n_eff * F + S * n_eff + S * n_tiles) * 4,
    )

    partials = pl.pallas_call(
        _partial_loss_kernel,
        out_shape=jax.ShapeDtypeStruct((S * n_tiles, 1, 1), jnp.float32),
        grid_spec=grid_spec,
        compiler_params=pltpu.CompilerParams(
            # No cross-step state -> both axes independent; v7x shards the
            # (sample, node-tile) work across its 2 TensorCores even for S=1.
            dimension_semantics=("parallel", "parallel"),
            vmem_limit_bytes=32 * 1024 * 1024,
        ),
        cost_estimate=cost,
    )(y_true, y_pred, wm)

    # loss / num_samples done in the wrapper with a static Python int.
    return jnp.sum(partials) / S


def _reference_loss(y_true, y_pred, w, num_cbgs):
    """Pure-JAX reference with the *original* semantics (mask y_true / y_pred)."""
    S, N, F = y_true.shape
    mask = (jnp.arange(N) < num_cbgs)[None, :, None]
    yt = jnp.where(mask, y_true, 0.0)
    yp = jnp.where(mask, y_pred, 0.0)
    per_node = jnp.mean((yt - yp) ** 2, axis=-1, keepdims=True)   # (S, N, 1)
    per_sample = jnp.sum(w * per_node, axis=(1, 2))               # (S,)
    return jnp.sum(per_sample) / S


if __name__ == "__main__":
    NUM_CBGS = 2943
    loss_fn = jax.jit(batch_loss, static_argnames=("num_cbgs",))

    # Case 1: module-consistent shapes -> full-N block per sample, grid=(S, 1).
    S, N, F = 2, 3072, 128
    k1, k2, k3 = jax.random.split(jax.random.PRNGKey(0), 3)
    y_true = jax.random.normal(k1, (S, N, F), dtype=jnp.float32)
    y_pred = jax.random.normal(k2, (S, N, F), dtype=jnp.float32)
    w = jax.random.uniform(k3, (S, N, 1), dtype=jnp.float32)
    loss = jax.block_until_ready(loss_fn(y_true, y_pred, w, num_cbgs=NUM_CBGS))
    ref = jax.block_until_ready(_reference_loss(y_true, y_pred, w, NUM_CBGS))
    assert jnp.allclose(loss, ref, rtol=5e-4, atol=1e-4), (loss, ref)

    # Case 2: cutoff far below N -> tiled / trimmed path (grid=(S, 2), Buffered(3)).
    S2, N2, F2, CBG2 = 2, 4096, 64, 1500
    k4, k5, k6 = jax.random.split(jax.random.PRNGKey(1), 3)
    y_true2 = jax.random.normal(k4, (S2, N2, F2), dtype=jnp.float32)
    y_pred2 = jax.random.normal(k5, (S2, N2, F2), dtype=jnp.float32)
    w2 = jax.random.uniform(k6, (S2, N2, 1), dtype=jnp.float32)
    loss2 = jax.block_until_ready(loss_fn(y_true2, y_pred2, w2, num_cbgs=CBG2))
    ref2 = jax.block_until_ready(_reference_loss(y_true2, y_pred2, w2, CBG2))
    assert jnp.allclose(loss2, ref2, rtol=5e-4, atol=1e-4), (loss2, ref2)

    print("KERNEL_OK")
</pallas_src>

<mosaic_0001>
module attributes {stable_mosaic.version = 11 : i64} {
  func.func @_partial_loss_kernel(%arg0: i32, %arg1: i32, %arg2: memref<1x3072x128xf32, #tpu.memory_space<vmem>>, %arg3: memref<1x3072x128xf32, #tpu.memory_space<vmem>>, %arg4: memref<1x3072x1xf32, #tpu.memory_space<vmem>>, %arg5: memref<1x1x1xf32, #tpu.memory_space<vmem>>) attributes {dimension_semantics = [#tpu.dimension_semantics<parallel>, #tpu.dimension_semantics<parallel>], iteration_bounds = array<i64: 2, 1>, scalar_prefetch = 0 : i64, scratch_operands = 0 : i64, tpu.core_type = #tpu.core_type<tc>, window_params = [{transform_indices = @transform_0, window_bounds = array<i64: 1, 3072, 128>}, {transform_indices = @transform_1, window_bounds = array<i64: 1, 3072, 128>}, {transform_indices = @transform_2, window_bounds = array<i64: 1, 3072, 1>}, {transform_indices = @transform_3, window_bounds = array<i64: 1, 1, 1>}]} {
    %c0 = arith.constant 0 : index
    %c0_0 = arith.constant 0 : index
    %c0_1 = arith.constant 0 : index
    %0 = vector.load %arg2[%c0, %c0_0, %c0_1] : memref<1x3072x128xf32, #tpu.memory_space<vmem>>, vector<1x3072x128xf32>
    %1 = vector.shape_cast %0 : vector<1x3072x128xf32> to vector<3072x128xf32>
    %c0_2 = arith.constant 0 : index
    %c0_3 = arith.constant 0 : index
    %c0_4 = arith.constant 0 : index
    %2 = vector.load %arg3[%c0_2, %c0_3, %c0_4] : memref<1x3072x128xf32, #tpu.memory_space<vmem>>, vector<1x3072x128xf32>
    %3 = vector.shape_cast %2 : vector<1x3072x128xf32> to vector<3072x128xf32>
    %4 = arith.subf %1, %3 : vector<3072x128xf32>
    %c0_5 = arith.constant 0 : index
    %c0_6 = arith.constant 0 : index
    %c0_7 = arith.constant 0 : index
    %5 = vector.load %arg4[%c0_5, %c0_6, %c0_7] : memref<1x3072x1xf32, #tpu.memory_space<vmem>>, vector<1x3072x1xf32>
    %6 = vector.shape_cast %5 : vector<1x3072x1xf32> to vector<3072x1xf32>
    %7 = arith.mulf %4, %4 : vector<3072x128xf32>
    %8 = vector.broadcast %6 : vector<3072x1xf32> to vector<3072x128xf32>
    %9 = arith.mulf %8, %7 : vector<3072x128xf32>
    %10 = vector.shape_cast %9 : vector<3072x128xf32> to vector<1x3072x128xf32>
    %cst = arith.constant dense<0.000000e+00> : vector<1xf32>
    %11 = vector.multi_reduction <add>, %10, %cst [1, 2] : vector<1x3072x128xf32> to vector<1xf32>
    %12 = vector.shape_cast %11 : vector<1xf32> to vector<1x1x1xf32>
    %13 = vector.extract %12[0, 0, 0] : f32 from vector<1x1x1xf32>
    %14 = vector.broadcast %13 : f32 to vector<1x1x1xf32>
    %c0_8 = arith.constant 0 : index
    %c0_9 = arith.constant 0 : index
    %c0_10 = arith.constant 0 : index
    %15 = vector.load %arg5[%c0_8, %c0_9, %c0_10] : memref<1x1x1xf32, #tpu.memory_space<vmem>>, vector<1x1x1xf32>
    tpu.vector_store %arg5[%c0_8, %c0_9, %c0_10], %14 {strides = array<i32>} : memref<1x1x1xf32, #tpu.memory_space<vmem>>, vector<1x1x1xf32>,
    return
  }
  func.func @transform_0(%arg0: i32, %arg1: i32) -> (i32, i32, i32) {
    %c0_i32 = arith.constant 0 : i32
    %c0_i32_0 = arith.constant 0 : i32
    return %arg0, %arg1, %c0_i32 : i32, i32, i32
  }
  func.func @transform_1(%arg0: i32, %arg1: i32) -> (i32, i32, i32) {
    %c0_i32 = arith.constant 0 : i32
    %c0_i32_0 = arith.constant 0 : i32
    return %arg0, %arg1, %c0_i32 : i32, i32, i32
  }
  func.func @transform_2(%arg0: i32, %arg1: i32) -> (i32, i32, i32) {
    %c0_i32 = arith.constant 0 : i32
    %c0_i32_0 = arith.constant 0 : i32
    return %arg0, %arg1, %c0_i32 : i32, i32, i32
  }
  func.func @transform_3(%arg0: i32, %arg1: i32) -> (i32, i32, i32) {
    %c1_i32 = arith.constant 1 : i32
    %0 = arith.muli %arg0, %c1_i32 : i32
    %1 = arith.addi %0, %arg1 : i32
    %c0_i32 = arith.constant 0 : i32
    %c0_i32_0 = arith.constant 0 : i32
    %c0_i32_1 = arith.constant 0 : i32
    return %1, %c0_i32, %c0_i32_0 : i32, i32, i32
  }
}

</mosaic_0001>

<bundles_post_ra>
// kernel: batch_loss.1
= control target key start
LH: loop header
LB: loop body
LE: loop exit
PB: predicated region body
PF: predicated region fallthrough
CT: control target
= control target key end

     0   :  { %s5077_s12 = smov 0   ;;  %s5079_s13 = smov 0   ;;  %s6283_s0 = inlined_call_operand.vmem [shape: f32[2,3072,128], index: 0, kind: input, shape index: {}]   ;;  %s6284_s1 = inlined_call_operand.vmem [shape: f32[2,3072,128], index: 1, kind: input, shape index: {}]   ;;  %s6285_s2 = inlined_call_operand.vmem [shape: f32[2,3072,1], index: 2, kind: input, shape index: {}]   ;;  %s6286_s3 = inlined_call_operand.vmem [shape: f32[2,1,1], index: 3, kind: output, shape index: {}]  }
   0x1   :  { %s5081_s14 = smov 0  }
   0x2 LB: > { %s25_s15 = sadd.s32 1, %s5050_s13  ;;  %p4996_p0 = scmp.ge.s32.totalorder %s5054_s14, 1  ;;  %s5054_s14 = sphi %s5081_s14, %s13_s14   ;;  %s5050_s13 = sphi %s5079_s13, %s6288_s13   ;;  %s5046_s12 = sphi %s5077_s12, %s6287_s12  }
   0x3   : > { %p27_p1 = scmp.ge.s32.totalorder %s25_s15, 2  ;;  %p192_p2 = scmp.lt.s32.totalorder %s5054_s14, 3 }
   0x5   : > { %s6290_s15 = smov (%p27_p1, %s25_s15), 0  ;;  %p193_p3 = pnand %p4996_p0, %p192_p2 }
   0x6   : > { %p238_p4 = scmp.lt.s32.totalorder (!%p193_p3), %s5046_s12, 1 }
   0x7   : > { %196 = sbr.rel (%p193_p3) target bundleno = 1115 (0x45b), region = 32 }
   0xc   : > { %v5056_v0 = vmov 0   ;;  %s6292_s12 = smov (!%p238_p4, %s5046_s12), 1  ;;  %vm4889_vm0 = vcmask 0  }
   0xd   : > { %5031 = vset.pattern.permute.xlu1 %v5056_v0  ;;  %5030 = vset.pattern.permute.xlu0 %v5056_v0  ;;  %s5098_s16 = smul.u32 3072, %s6292_s12  ;;  %s270_s28 = scalar_lea.vmem %s6286_s3, %s6292_s12 }
   0xf   : > { %s5104_s19 = scalar_lea.vmem %s6285_s2, %s5098_s16  ;;  %s5170_s22 = scalar_lea.vmem %s6283_s0, %s5098_s16 }
  0x10   : > { %v1426_v1 = vld [vmem:[%s5104_s19 + $0x10] sm:$0xff]  ;;  %v1424_v2 = vld [vmem:[%s5104_s19] sm:$0xff]  ;;  %v1427_v3 = vld [vmem:[%s5104_s19 + $0x18] sm:$0xff]  ;;  %s5176_s25 = scalar_lea.vmem %s6284_s1, %s5098_s16 }
  0x11   : > { %2204 = vperm.xlu1 %5031, %v1426_v1   ;;  %2194 = vperm.xlu0 %5030, %v1424_v2   ;;  %v1425_v4 = vld [vmem:[%s5104_s19 + $0x8] sm:$0xff]  ;;  %v1428_v6 = vld [vmem:[%s5104_s19 + $0x20] sm:$0xff]  ;;  %v1431_v7 = vld [vmem:[%s5104_s19 + $0x38] sm:$0xff] }
  0x12   : > { %v1429_v5 = vld [vmem:[%s5104_s19 + $0x28] sm:$0xff]  ;;  %v1430_v8 = vld [vmem:[%s5104_s19 + $0x30] sm:$0xff]  ;;  %v1432_v10 = vld [vmem:[%s5104_s19 + $0x40] sm:$0xff] }
  0x13   : > { %v1433_v9 = vld [vmem:[%s5104_s19 + $0x48] sm:$0xff]  ;;  %v1435_v11 = vld [vmem:[%s5104_s19 + $0x58] sm:$0xff]  ;;  %v1434_v12 = vld [vmem:[%s5104_s19 + $0x50] sm:$0xff] }
  0x14   : > { %v1437_v13 = vld [vmem:[%s5104_s19 + $0x68] sm:$0xff]  ;;  %v1436_v14 = vld [vmem:[%s5104_s19 + $0x60] sm:$0xff]  ;;  %v1439_v15 = vld [vmem:[%s5104_s19 + $0x78] sm:$0xff] }
  0x15   : > { %2209 = vperm.xlu1 %5031, %v1427_v3   ;;  %2199 = vperm.xlu0 %5030, %v1425_v4   ;;  %v1438_v16 = vld [vmem:[%s5104_s19 + $0x70] sm:$0xff]  ;;  %v1441_v17 = vld [vmem:[%s5104_s19 + $0x88] sm:$0xff]  ;;  %v1440_v18 = vld [vmem:[%s5104_s19 + $0x80] sm:$0xff] }
  0x16   : > { %v1443_v19 = vld [vmem:[%s5104_s19 + $0x98] sm:$0xff]  ;;  %v1442_v20 = vld [vmem:[%s5104_s19 + $0x90] sm:$0xff]  ;;  %v1445_v21 = vld [vmem:[%s5104_s19 + $0xa8] sm:$0xff] }
  0x17   : > { %v1444_v22 = vld [vmem:[%s5104_s19 + $0xa0] sm:$0xff]  ;;  %v1447_v23 = vld [vmem:[%s5104_s19 + $0xb8] sm:$0xff]  ;;  %v1446_v24 = vld [vmem:[%s5104_s19 + $0xb0] sm:$0xff] }
  0x18   : > { %v1449_v25 = vld [vmem:[%s5104_s19 + $0xc8] sm:$0xff]  ;;  %v1448_v26 = vld [vmem:[%s5104_s19 + $0xc0] sm:$0xff]  ;;  %v1451_v27 = vld [vmem:[%s5104_s19 + $0xd8] sm:$0xff] }
  0x19   : > { %2219 = vperm.xlu1 %5031, %v1429_v5   ;;  %2214 = vperm.xlu0 %5030, %v1428_v6   ;;  %v1450_v28 = vld [vmem:[%s5104_s19 + $0xd0] sm:$0xff]  ;;  %v1453_v29 = vld [vmem:[%s5104_s19 + $0xe8] sm:$0xff]  ;;  %v1452_v30 = vld [vmem:[%s5104_s19 + $0xe0] sm:$0xff] }
  0x1a   : > { %v1455_v31 = vld [vmem:[%s5104_s19 + $0xf8] sm:$0xff]  ;;  %v1454_v32 = vld [vmem:[%s5104_s19 + $0xf0] sm:$0xff]  ;;  %v1457_v33 = vld [vmem:[%s5104_s19 + $0x108] sm:$0xff] }
  0x1b   : > { %v1456_v34 = vld [vmem:[%s5104_s19 + $0x100] sm:$0xff]  ;;  %v1459_v35 = vld [vmem:[%s5104_s19 + $0x118] sm:$0xff]  ;;  %v1458_v36 = vld [vmem:[%s5104_s19 + $0x110] sm:$0xff] }
  0x1c   : > { %v1461_v37 = vld [vmem:[%s5104_s19 + $0x128] sm:$0xff]  ;;  %v1460_v38 = vld [vmem:[%s5104_s19 + $0x120] sm:$0xff]  ;;  %v1463_v39 = vld [vmem:[%s5104_s19 + $0x138] sm:$0xff] }
  0x1d   : > { %2229 = vperm.xlu1 %5031, %v1431_v7   ;;  %2224 = vperm.xlu0 %5030, %v1430_v8   ;;  %v1462_v40 = vld [vmem:[%s5104_s19 + $0x130] sm:$0xff]  ;;  %v1465_v41 = vld [vmem:[%s5104_s19 + $0x148] sm:$0xff]  ;;  %v1464_v42 = vld [vmem:[%s5104_s19 + $0x140] sm:$0xff] }
  0x1e   : > { %v1467_v43 = vld [vmem:[%s5104_s19 + $0x158] sm:$0xff]  ;;  %v1466_v44 = vld [vmem:[%s5104_s19 + $0x150] sm:$0xff]  ;;  %v1469_v45 = vld [vmem:[%s5104_s19 + $0x168] sm:$0xff] }
  0x1f   : > { %v1468_v46 = vld [vmem:[%s5104_s19 + $0x160] sm:$0xff]  ;;  %v1471_v47 = vld [vmem:[%s5104_s19 + $0x178] sm:$0xff]  ;;  %v1470_v48 = vld [vmem:[%s5104_s19 + $0x170] sm:$0xff] }
  0x20   : > { %v1473_v49 = vld [vmem:[%s5104_s19 + $0x188] sm:$0xff]  ;;  %v1472_v50 = vld [vmem:[%s5104_s19 + $0x180] sm:$0xff]  ;;  %v1475_v51 = vld [vmem:[%s5104_s19 + $0x198] sm:$0xff] }
  0x21   : > { %2239 = vperm.xlu1 %5031, %v1433_v9   ;;  %2234 = vperm.xlu0 %5030, %v1432_v10   ;;  %v1474_v52 = vld [vmem:[%s5104_s19 + $0x190] sm:$0xff]  ;;  %v1477_v53 = vld [vmem:[%s5104_s19 + $0x1a8] sm:$0xff]  ;;  %v1476_v54 = vld [vmem:[%s5104_s19 + $0x1a0] sm:$0xff] }
  0x22   : > { %v1479_v55 = vld [vmem:[%s5104_s19 + $0x1b8] sm:$0xff]  ;;  %v1478_v56 = vld [vmem:[%s5104_s19 + $0x1b0] sm:$0xff]  ;;  %v1481_v57 = vld [vmem:[%s5104_s19 + $0x1c8] sm:$0xff] }
  0x23   : > { %v1480_v58 = vld [vmem:[%s5104_s19 + $0x1c0] sm:$0xff]  ;;  %v1483_v59 = vld [vmem:[%s5104_s19 + $0x1d8] sm:$0xff]  ;;  %v1482_v60 = vld [vmem:[%s5104_s19 + $0x1d0] sm:$0xff] }
  0x24   : > { %v1485_v61 = vld [vmem:[%s5104_s19 + $0x1e8] sm:$0xff]  ;;  %v1484_v62 = vld [vmem:[%s5104_s19 + $0x1e0] sm:$0xff]  ;;  %v274_v3 = vld [vmem:[%s5170_s22 + $0x10] sm:$0xff] }
  0x25   : > { %2249 = vperm.xlu1 %5031, %v1435_v11   ;;  %2244 = vperm.xlu0 %5030, %v1434_v12   ;;  %v272_v63 = vld [vmem:[%s5170_s22] sm:$0xff]  ;;  %v273_v1 = vld [vmem:[%s5170_s22 + $0x8] sm:$0xff]  ;;  %v658_v4 = vld [vmem:[%s5176_s25 + $0x10] sm:$0xff] }
  0x26   : > { %v656_v0 = vld [vmem:[%s5176_s25] sm:$0xff]  ;;  %v657_v2 = vld [vmem:[%s5176_s25 + $0x8] sm:$0xff]  ;;  %v1487_v6 = vld [vmem:[%s5104_s19 + $0x1f8] sm:$0xff]  ;;  %v1042_v11 = vsub.f32 %v274_v3, %v658_v4 }
  0x27   : > { %v1040_v5 = vsub.f32 %v272_v63, %v656_v0  ;;  %v1041_v7 = vsub.f32 %v273_v1, %v657_v2  ;;  %v1486_v8 = vld [vmem:[%s5104_s19 + $0x1f0] sm:$0xff]  ;;  %v275_v9 = vld [vmem:[%s5170_s22 + $0x18] sm:$0xff] }
  0x28   : > { %v659_v10 = vld [vmem:[%s5176_s25 + $0x18] sm:$0xff]  ;;  %v1494_v2 = vld [vmem:[%s5104_s19 + $0x230] sm:$0xff] }
  0x29   : > { %2259 = vperm.xlu1 %5031, %v1437_v13   ;;  %2254 = vperm.xlu0 %5030, %v1436_v14   ;;  %v276_v14 = vld [vmem:[%s5170_s22 + $0x20] sm:$0xff]  ;;  %v1495_v1 = vld [vmem:[%s5104_s19 + $0x238] sm:$0xff] }
  0x2a   : > { %v283_v3 = vld [vmem:[%s5170_s22 + $0x58] sm:$0xff] }
  0x2b   : > { %v667_v4 = vld [vmem:[%s5176_s25 + $0x58] sm:$0xff] }
  0x2d   : > { %2269 = vperm.xlu1 %5031, %v1439_v15   ;;  %2264 = vperm.xlu0 %5030, %v1438_v16   ;;  %v660_v15 = vld [vmem:[%s5176_s25 + $0x20] sm:$0xff]  ;;  %v1808_v16 = vmul.f32 %v1040_v5, %v1040_v5 }
  0x31   : > { %2279 = vperm.xlu1 %5031, %v1441_v17   ;;  %2274 = vperm.xlu0 %5030, %v1440_v18   ;;  %v1043_v17 = vsub.f32 %v275_v9, %v659_v10  ;;  %v1809_v18 = vmul.f32 %v1041_v7, %v1041_v7 }
  0x35   : > { %2289 = vperm.xlu1 %5031, %v1443_v19   ;;  %2284 = vperm.xlu0 %5030, %v1442_v20   ;;  %v277_v19 = vld [vmem:[%s5170_s22 + $0x28] sm:$0xff] }
  0x36   : > { %v661_v20 = vld [vmem:[%s5176_s25 + $0x28] sm:$0xff] }
  0x39   : > { %2299 = vperm.xlu1 %5031, %v1445_v21   ;;  %2294 = vperm.xlu0 %5030, %v1444_v22   ;;  %v1489_v21 = vld [vmem:[%s5104_s19 + $0x208] sm:$0xff]  ;;  %v1488_v22 = vld [vmem:[%s5104_s19 + $0x200] sm:$0xff] }
  0x3d   : > { %2309 = vperm.xlu1 %5031, %v1447_v23   ;;  %2304 = vperm.xlu0 %5030, %v1446_v24   ;;  %v1810_v23 = vmul.f32 %v1042_v11, %v1042_v11  ;;  %v1044_v24 = vsub.f32 %v276_v14, %v660_v15 }
  0x41   : > { %2319 = vperm.xlu1 %5031, %v1449_v25   ;;  %2314 = vperm.xlu0 %5030, %v1448_v26  }
  0x45   : > { %2329 = vperm.xlu1 %5031, %v1451_v27   ;;  %2324 = vperm.xlu0 %5030, %v1450_v28   ;;  %v1045_v27 = vsub.f32 %v277_v19, %v661_v20  ;;  %v278_v28 = vld [vmem:[%s5170_s22 + $0x30] sm:$0xff]  ;;  %v1497_v19 = vld [vmem:[%s5104_s19 + $0x248] sm:$0xff]  ;;  %v1496_v20 = vld [vmem:[%s5104_s19 + $0x240] sm:$0xff] }
  0x49   : > { %2339 = vperm.xlu1 %5031, %v1453_v29   ;;  %2334 = vperm.xlu0 %5030, %v1452_v30   ;;  %v662_v29 = vld [vmem:[%s5176_s25 + $0x30] sm:$0xff] }
  0x4d   : > { %2349 = vperm.xlu1 %5031, %v1455_v31   ;;  %2344 = vperm.xlu0 %5030, %v1454_v32   ;;  %v1811_v31 = vmul.f32 %v1043_v17, %v1043_v17  ;;  %v285_v17 = vld [vmem:[%s5170_s22 + $0x68] sm:$0xff] }
  0x51   : > { %2359 = vperm.xlu1 %5031, %v1457_v33   ;;  %2354 = vperm.xlu0 %5030, %v1456_v34   ;;  %v1491_v33 = vld [vmem:[%s5104_s19 + $0x218] sm:$0xff]  ;;  %v1490_v34 = vld [vmem:[%s5104_s19 + $0x210] sm:$0xff] }
  0x55   : > { %2369 = vperm.xlu1 %5031, %v1459_v35   ;;  %2364 = vperm.xlu0 %5030, %v1458_v36   ;;  %v279_v35 = vld [vmem:[%s5170_s22 + $0x38] sm:$0xff] }
  0x56   : > { %v663_v36 = vld [vmem:[%s5176_s25 + $0x38] sm:$0xff] }
  0x59   : > { %2379 = vperm.xlu1 %5031, %v1461_v37   ;;  %2374 = vperm.xlu0 %5030, %v1460_v38  }
  0x5d   : > { %2389 = vperm.xlu1 %5031, %v1463_v39   ;;  %2384 = vperm.xlu0 %5030, %v1462_v40   ;;  %v1812_v39 = vmul.f32 %v1044_v24, %v1044_v24  ;;  %v1046_v40 = vsub.f32 %v278_v28, %v662_v29  ;;  %v286_v28 = vld [vmem:[%s5170_s22 + $0x70] sm:$0xff] }
  0x5e   : > { %v670_v29 = vld [vmem:[%s5176_s25 + $0x70] sm:$0xff] }
  0x61   : > { %2399 = vperm.xlu1 %5031, %v1465_v41   ;;  %2394 = vperm.xlu0 %5030, %v1464_v42   ;;  %v1813_v42 = vmul.f32 %v1045_v27, %v1045_v27 }
  0x65   : > { %2409 = vperm.xlu1 %5031, %v1467_v43   ;;  %2404 = vperm.xlu0 %5030, %v1466_v44   ;;  %v280_v44 = vld [vmem:[%s5170_s22 + $0x40] sm:$0xff] }
  0x69   : > { %2419 = vperm.xlu1 %5031, %v1469_v45   ;;  %2414 = vperm.xlu0 %5030, %v1468_v46   ;;  %v664_v45 = vld [vmem:[%s5176_s25 + $0x40] sm:$0xff] }
  0x6d   : > { %2429 = vperm.xlu1 %5031, %v1471_v47   ;;  %2424 = vperm.xlu0 %5030, %v1470_v48   ;;  %v1047_v48 = vsub.f32 %v279_v35, %v663_v36  ;;  %v287_v35 = vld [vmem:[%s5170_s22 + $0x78] sm:$0xff] }
  0x6e   : > { %v671_v36 = vld [vmem:[%s5176_s25 + $0x78] sm:$0xff] }
  0x6f   : > { %v1815_v0 = vmul.f32 %v1047_v48, %v1047_v48  ;;  %v1055_v48 = vsub.f32 %v287_v35, %v671_v36  ;;  %v295_v35 = vld [vmem:[%s5170_s22 + $0xb8] sm:$0xff] }
  0x70   : > { %v679_v36 = vld [vmem:[%s5176_s25 + $0xb8] sm:$0xff] }
  0x71   : > { %2439 = vperm.xlu1 %5031, %v1473_v49   ;;  %2434 = vperm.xlu0 %5030, %v1472_v50   ;;  %v281_v49 = vld [vmem:[%s5170_s22 + $0x48] sm:$0xff] }
  0x72   : > { %v665_v50 = vld [vmem:[%s5176_s25 + $0x48] sm:$0xff] }
  0x75   : > { %2449 = vperm.xlu1 %5031, %v1475_v51   ;;  %2444 = vperm.xlu0 %5030, %v1474_v52   ;;  %v1493_v51 = vld [vmem:[%s5104_s19 + $0x228] sm:$0xff]  ;;  %v1492_v52 = vld [vmem:[%s5104_s19 + $0x220] sm:$0xff] }
  0x79   : > { %2459 = vperm.xlu1 %5031, %v1477_v53   ;;  %2454 = vperm.xlu0 %5030, %v1476_v54  }
  0x7d   : > { %2469 = vperm.xlu1 %5031, %v1479_v55   ;;  %2464 = vperm.xlu0 %5030, %v1478_v56   ;;  %v1814_v55 = vmul.f32 %v1046_v40, %v1046_v40  ;;  %v1048_v56 = vsub.f32 %v280_v44, %v664_v45  ;;  %v1054_v40 = vsub.f32 %v286_v28, %v670_v29  ;;  %v288_v44 = vld [vmem:[%s5170_s22 + $0x80] sm:$0xff]  ;;  %v294_v28 = vld [vmem:[%s5170_s22 + $0xb0] sm:$0xff] }
  0x7e   : > { %v672_v45 = vld [vmem:[%s5176_s25 + $0x80] sm:$0xff]  ;;  %v678_v29 = vld [vmem:[%s5176_s25 + $0xb0] sm:$0xff] }
  0x7f   : > { %v1816_v7 = vmul.f32 %v1048_v56, %v1048_v56  ;;  %v1056_v56 = vsub.f32 %v288_v44, %v672_v45  ;;  %v296_v44 = vld [vmem:[%s5170_s22 + $0xc0] sm:$0xff] }
  0x80   : > { %v680_v45 = vld [vmem:[%s5176_s25 + $0xc0] sm:$0xff] }
  0x81   : > { %2479 = vperm.xlu1 %5031, %v1481_v57   ;;  %2474 = vperm.xlu0 %5030, %v1480_v58  }
  0x85   : > { %2489 = vperm.xlu1 %5031, %v1483_v59   ;;  %2484 = vperm.xlu0 %5030, %v1482_v60   ;;  %v1049_v59 = vsub.f32 %v281_v49, %v665_v50  ;;  %v282_v60 = vld [vmem:[%s5170_s22 + $0x50] sm:$0xff]  ;;  %v289_v49 = vld [vmem:[%s5170_s22 + $0x88] sm:$0xff] }
  0x86   : > { %v673_v50 = vld [vmem:[%s5176_s25 + $0x88] sm:$0xff] }
  0x87   : > { %v1817_v10 = vmul.f32 %v1049_v59, %v1049_v59  ;;  %v1057_v59 = vsub.f32 %v289_v49, %v673_v50  ;;  %v297_v49 = vld [vmem:[%s5170_s22 + $0xc8] sm:$0xff] }
  0x88   : > { %v681_v50 = vld [vmem:[%s5176_s25 + $0xc8] sm:$0xff] }
  0x89   : > { %2499 = vperm.xlu1 %5031, %v1485_v61   ;;  %2494 = vperm.xlu0 %5030, %v1484_v62   ;;  %v666_v61 = vld [vmem:[%s5176_s25 + $0x50] sm:$0xff] }
  0x8c   : > { %v2205_v12 = vpop.permute.xlu1 %2204  ;;  %v2195_v13 = vpop.permute.xlu0 %2194 }
  0x8d   : > { %2509 = vperm.xlu1 %5031, %v1487_v6   ;;  %2504 = vperm.xlu0 %5030, %v1486_v8   ;;  %v4112_v30 = vmul.f32 %v2195_v13, %v1808_v16  ;;  %v4114_v37 = vmul.f32 %v2205_v12, %v1810_v23  ;;  %v1050_v8 = vsub.f32 %v282_v60, %v666_v61  ;;  %v284_v12 = vld [vmem:[%s5170_s22 + $0x60] sm:$0xff]  ;;  %v290_v60 = vld [vmem:[%s5170_s22 + $0x90] sm:$0xff] }
  0x8e   : > { %v668_v13 = vld [vmem:[%s5176_s25 + $0x60] sm:$0xff]  ;;  %v1051_v16 = vsub.f32 %v283_v3, %v667_v4  ;;  %v674_v61 = vld [vmem:[%s5176_s25 + $0x90] sm:$0xff]  ;;  %v291_v3 = vld [vmem:[%s5170_s22 + $0x98] sm:$0xff] }
  0x8f   : > { %v1818_v23 = vmul.f32 %v1050_v8, %v1050_v8  ;;  %v1052_v24 = vsub.f32 %v284_v12, %v668_v13  ;;  %v675_v4 = vld [vmem:[%s5176_s25 + $0x98] sm:$0xff]  ;;  %v1058_v8 = vsub.f32 %v290_v60, %v674_v61  ;;  %v292_v12 = vld [vmem:[%s5170_s22 + $0xa0] sm:$0xff]  ;;  %v298_v60 = vld [vmem:[%s5170_s22 + $0xd0] sm:$0xff] }
  0x90   : > { %v2210_v25 = vpop.permute.xlu1 %2209  ;;  %v2200_v26 = vpop.permute.xlu0 %2199  ;;  %v676_v13 = vld [vmem:[%s5176_s25 + $0xa0] sm:$0xff]  ;;  %v682_v61 = vld [vmem:[%s5176_s25 + $0xd0] sm:$0xff] }
  0x91   : > { %v4113_v32 = vmul.f32 %v2200_v26, %v1809_v18  ;;  %2519 = vperm.xlu1 %5031, %v1489_v21   ;;  %2514 = vperm.xlu0 %5030, %v1488_v22   ;;  %v4115_v46 = vmul.f32 %v2210_v25, %v1811_v31  ;;  %v669_v18 = vld [vmem:[%s5176_s25 + $0x68] sm:$0xff] }
  0x92   : > { %v1053_v27 = vsub.f32 %v285_v17, %v669_v18  ;;  %v293_v17 = vld [vmem:[%s5170_s22 + $0xa8] sm:$0xff] }
  0x93   : > { %v4496_v38 = vadd.f32 %v4113_v32, %v4112_v30  ;;  %v1819_v32 = vmul.f32 %v1051_v16, %v1051_v16  ;;  %v1059_v16 = vsub.f32 %v291_v3, %v675_v4  ;;  %v677_v18 = vld [vmem:[%s5176_s25 + $0xa8] sm:$0xff]  ;;  %v299_v3 = vld [vmem:[%s5170_s22 + $0xd8] sm:$0xff] }
  0x94   : > { %v2220_v41 = vpop.permute.xlu1 %2219  ;;  %v2215_v43 = vpop.permute.xlu0 %2214  ;;  %v683_v4 = vld [vmem:[%s5176_s25 + $0xd8] sm:$0xff] }
  0x95   : > { %v4497_v47 = vadd.f32 %v4496_v38, %v4114_v37  ;;  %2529 = vperm.xlu1 %5031, %v1491_v33   ;;  %2524 = vperm.xlu0 %5030, %v1490_v34   ;;  %v4116_v54 = vmul.f32 %v2215_v43, %v1812_v39  ;;  %v4117_v62 = vmul.f32 %v2220_v41, %v1813_v42  ;;  %v1499_v33 = vld [vmem:[%s5104_s19 + $0x258] sm:$0xff]  ;;  %v1498_v34 = vld [vmem:[%s5104_s19 + $0x250] sm:$0xff] }
  0x96   : > { %v1820_v39 = vmul.f32 %v1052_v24, %v1052_v24  ;;  %v1821_v42 = vmul.f32 %v1053_v27, %v1053_v27  ;;  %v1060_v24 = vsub.f32 %v292_v12, %v676_v13  ;;  %v1061_v27 = vsub.f32 %v293_v17, %v677_v18  ;;  %v300_v12 = vld [vmem:[%s5170_s22 + $0xe0] sm:$0xff]  ;;  %v301_v17 = vld [vmem:[%s5170_s22 + $0xe8] sm:$0xff] }
  0x97   : > { %v4498_v53 = vadd.f32 %v4497_v47, %v4115_v46  ;;  %v684_v13 = vld [vmem:[%s5176_s25 + $0xe0] sm:$0xff]  ;;  %v685_v18 = vld [vmem:[%s5176_s25 + $0xe8] sm:$0xff] }
  0x98   : > { %v2230_v57 = vpop.permute.xlu1 %2229  ;;  %v2225_v58 = vpop.permute.xlu0 %2224 }
  0x99   : > { %v4499_v63 = vadd.f32 %v4498_v53, %v4116_v54  ;;  %2539 = vperm.xlu1 %5031, %v1493_v51   ;;  %2534 = vperm.xlu0 %5030, %v1492_v52   ;;  %v4118_v6 = vmul.f32 %v2225_v58, %v1814_v55  ;;  %v4119_v14 = vmul.f32 %v2230_v57, %v1815_v0  ;;  %v1501_v51 = vld [vmem:[%s5104_s19 + $0x268] sm:$0xff]  ;;  %v1500_v52 = vld [vmem:[%s5104_s19 + $0x260] sm:$0xff] }
  0x9a   : > { %v1822_v55 = vmul.f32 %v1054_v40, %v1054_v40  ;;  %v1823_v0 = vmul.f32 %v1055_v48, %v1055_v48  ;;  %v1062_v40 = vsub.f32 %v294_v28, %v678_v29  ;;  %v1063_v48 = vsub.f32 %v295_v35, %v679_v36  ;;  %v302_v28 = vld [vmem:[%s5170_s22 + $0xf0] sm:$0xff]  ;;  %v303_v35 = vld [vmem:[%s5170_s22 + $0xf8] sm:$0xff] }
  0x9b   : > { %v4500_v5 = vadd.f32 %v4499_v63, %v4117_v62  ;;  %v686_v29 = vld [vmem:[%s5176_s25 + $0xf0] sm:$0xff]  ;;  %v687_v36 = vld [vmem:[%s5176_s25 + $0xf8] sm:$0xff] }
  0x9c   : > { %v2240_v9 = vpop.permute.xlu1 %2239  ;;  %v2235_v11 = vpop.permute.xlu0 %2234 }
  0x9d   : > { %v4501_v15 = vadd.f32 %v4500_v5, %v4118_v6  ;;  %2549 = vperm.xlu1 %5031, %v1495_v1   ;;  %2544 = vperm.xlu0 %5030, %v1494_v2   ;;  %v4120_v22 = vmul.f32 %v2235_v11, %v1816_v7  ;;  %v4121_v30 = vmul.f32 %v2240_v9, %v1817_v10  ;;  %v1503_v1 = vld [vmem:[%s5104_s19 + $0x278] sm:$0xff]  ;;  %v1502_v2 = vld [vmem:[%s5104_s19 + $0x270] sm:$0xff] }
  0x9e   : > { %v1824_v7 = vmul.f32 %v1056_v56, %v1056_v56  ;;  %v1825_v10 = vmul.f32 %v1057_v59, %v1057_v59  ;;  %v1064_v56 = vsub.f32 %v296_v44, %v680_v45  ;;  %v1065_v59 = vsub.f32 %v297_v49, %v681_v50  ;;  %v304_v44 = vld [vmem:[%s5170_s22 + $0x100] sm:$0xff]  ;;  %v305_v49 = vld [vmem:[%s5170_s22 + $0x108] sm:$0xff] }
  0x9f   : > { %v4502_v21 = vadd.f32 %v4501_v15, %v4119_v14  ;;  %v688_v45 = vld [vmem:[%s5176_s25 + $0x100] sm:$0xff]  ;;  %v689_v50 = vld [vmem:[%s5176_s25 + $0x108] sm:$0xff] }
  0xa0   : > { %v2250_v25 = vpop.permute.xlu1 %2249  ;;  %v2245_v26 = vpop.permute.xlu0 %2244 }
  0xa1   : > { %v4503_v31 = vadd.f32 %v4502_v21, %v4120_v22  ;;  %2559 = vperm.xlu1 %5031, %v1497_v19   ;;  %2554 = vperm.xlu0 %5030, %v1496_v20   ;;  %v4122_v38 = vmul.f32 %v2245_v26, %v1818_v23  ;;  %v4123_v46 = vmul.f32 %v2250_v25, %v1819_v32  ;;  %v1505_v19 = vld [vmem:[%s5104_s19 + $0x288] sm:$0xff]  ;;  %v1504_v20 = vld [vmem:[%s5104_s19 + $0x280] sm:$0xff] }
  0xa2   : > { %v1826_v23 = vmul.f32 %v1058_v8, %v1058_v8  ;;  %v1827_v32 = vmul.f32 %v1059_v16, %v1059_v16  ;;  %v1066_v8 = vsub.f32 %v298_v60, %v682_v61  ;;  %v1067_v16 = vsub.f32 %v299_v3, %v683_v4  ;;  %v306_v60 = vld [vmem:[%s5170_s22 + $0x110] sm:$0xff]  ;;  %v307_v3 = vld [vmem:[%s5170_s22 + $0x118] sm:$0xff] }
  0xa3   : > { %v4504_v37 = vadd.f32 %v4503_v31, %v4121_v30  ;;  %v690_v61 = vld [vmem:[%s5176_s25 + $0x110] sm:$0xff]  ;;  %v691_v4 = vld [vmem:[%s5176_s25 + $0x118] sm:$0xff] }
  0xa4   : > { %v2260_v41 = vpop.permute.xlu1 %2259  ;;  %v2255_v43 = vpop.permute.xlu0 %2254 }
  0xa5   : > { %v4505_v47 = vadd.f32 %v4504_v37, %v4122_v38  ;;  %2569 = vperm.xlu1 %5031, %v1499_v33   ;;  %2564 = vperm.xlu0 %5030, %v1498_v34   ;;  %v4124_v54 = vmul.f32 %v2255_v43, %v1820_v39  ;;  %v4125_v62 = vmul.f32 %v2260_v41, %v1821_v42  ;;  %v1507_v33 = vld [vmem:[%s5104_s19 + $0x298] sm:$0xff]  ;;  %v1506_v34 = vld [vmem:[%s5104_s19 + $0x290] sm:$0xff] }
  0xa6   : > { %v1828_v39 = vmul.f32 %v1060_v24, %v1060_v24  ;;  %v1829_v42 = vmul.f32 %v1061_v27, %v1061_v27  ;;  %v1068_v24 = vsub.f32 %v300_v12, %v684_v13  ;;  %v1069_v27 = vsub.f32 %v301_v17, %v685_v18  ;;  %v308_v12 = vld [vmem:[%s5170_s22 + $0x120] sm:$0xff]  ;;  %v309_v17 = vld [vmem:[%s5170_s22 + $0x128] sm:$0xff] }
  0xa7   : > { %v4506_v53 = vadd.f32 %v4505_v47, %v4123_v46  ;;  %v692_v13 = vld [vmem:[%s5176_s25 + $0x120] sm:$0xff]  ;;  %v693_v18 = vld [vmem:[%s5176_s25 + $0x128] sm:$0xff] }
  0xa8   : > { %v2270_v57 = vpop.permute.xlu1 %2269  ;;  %v2265_v58 = vpop.permute.xlu0 %2264 }
  0xa9   : > { %v4507_v63 = vadd.f32 %v4506_v53, %v4124_v54  ;;  %2579 = vperm.xlu1 %5031, %v1501_v51   ;;  %2574 = vperm.xlu0 %5030, %v1500_v52   ;;  %v4126_v6 = vmul.f32 %v2265_v58, %v1822_v55  ;;  %v4127_v14 = vmul.f32 %v2270_v57, %v1823_v0  ;;  %v1509_v51 = vld [vmem:[%s5104_s19 + $0x2a8] sm:$0xff]  ;;  %v1508_v52 = vld [vmem:[%s5104_s19 + $0x2a0] sm:$0xff] }
  0xaa   : > { %v1830_v55 = vmul.f32 %v1062_v40, %v1062_v40  ;;  %v1831_v0 = vmul.f32 %v1063_v48, %v1063_v48  ;;  %v1070_v40 = vsub.f32 %v302_v28, %v686_v29  ;;  %v1071_v48 = vsub.f32 %v303_v35, %v687_v36  ;;  %v310_v28 = vld [vmem:[%s5170_s22 + $0x130] sm:$0xff]  ;;  %v311_v35 = vld [vmem:[%s5170_s22 + $0x138] sm:$0xff] }
  0xab   : > { %v4508_v5 = vadd.f32 %v4507_v63, %v4125_v62  ;;  %v694_v29 = vld [vmem:[%s5176_s25 + $0x130] sm:$0xff]  ;;  %v695_v36 = vld [vmem:[%s5176_s25 + $0x138] sm:$0xff] }
  0xac   : > { %v2280_v9 = vpop.permute.xlu1 %2279  ;;  %v2275_v11 = vpop.permute.xlu0 %2274 }
  0xad   : > { %v4509_v15 = vadd.f32 %v4508_v5, %v4126_v6  ;;  %2589 = vperm.xlu1 %5031, %v1503_v1   ;;  %2584 = vperm.xlu0 %5030, %v1502_v2   ;;  %v4128_v22 = vmul.f32 %v2275_v11, %v1824_v7  ;;  %v4129_v30 = vmul.f32 %v2280_v9, %v1825_v10  ;;  %v1511_v1 = vld [vmem:[%s5104_s19 + $0x2b8] sm:$0xff]  ;;  %v1510_v2 = vld [vmem:[%s5104_s19 + $0x2b0] sm:$0xff] }
  0xae   : > { %v1832_v7 = vmul.f32 %v1064_v56, %v1064_v56  ;;  %v1833_v10 = vmul.f32 %v1065_v59, %v1065_v59  ;;  %v1072_v56 = vsub.f32 %v304_v44, %v688_v45  ;;  %v1073_v59 = vsub.f32 %v305_v49, %v689_v50  ;;  %v312_v44 = vld [vmem:[%s5170_s22 + $0x140] sm:$0xff]  ;;  %v313_v49 = vld [vmem:[%s5170_s22 + $0x148] sm:$0xff] }
  0xaf   : > { %v4510_v21 = vadd.f32 %v4509_v15, %v4127_v14  ;;  %v696_v45 = vld [vmem:[%s5176_s25 + $0x140] sm:$0xff]  ;;  %v697_v50 = vld [vmem:[%s5176_s25 + $0x148] sm:$0xff] }
  0xb0   : > { %v2290_v25 = vpop.permute.xlu1 %2289  ;;  %v2285_v26 = vpop.permute.xlu0 %2284 }
  0xb1   : > { %v4511_v31 = vadd.f32 %v4510_v21, %v4128_v22  ;;  %2599 = vperm.xlu1 %5031, %v1505_v19   ;;  %2594 = vperm.xlu0 %5030, %v1504_v20   ;;  %v4130_v38 = vmul.f32 %v2285_v26, %v1826_v23  ;;  %v4131_v46 = vmul.f32 %v2290_v25, %v1827_v32  ;;  %v1513_v19 = vld [vmem:[%s5104_s19 + $0x2c8] sm:$0xff]  ;;  %v1512_v20 = vld [vmem:[%s5104_s19 + $0x2c0] sm:$0xff] }
  0xb2   : > { %v1834_v23 = vmul.f32 %v1066_v8, %v1066_v8  ;;  %v1835_v32 = vmul.f32 %v1067_v16, %v1067_v16  ;;  %v1074_v8 = vsub.f32 %v306_v60, %v690_v61  ;;  %v1075_v16 = vsub.f32 %v307_v3, %v691_v4  ;;  %v314_v60 = vld [vmem:[%s5170_s22 + $0x150] sm:$0xff]  ;;  %v315_v3 = vld [vmem:[%s5170_s22 + $0x158] sm:$0xff] }
  0xb3   : > { %v4512_v37 = vadd.f32 %v4511_v31, %v4129_v30  ;;  %v698_v61 = vld [vmem:[%s5176_s25 + $0x150] sm:$0xff]  ;;  %v699_v4 = vld [vmem:[%s5176_s25 + $0x158] sm:$0xff] }
  0xb4   : > { %v2300_v41 = vpop.permute.xlu1 %2299  ;;  %v2295_v43 = vpop.permute.xlu0 %2294 }
  0xb5   : > { %v4513_v47 = vadd.f32 %v4512_v37, %v4130_v38  ;;  %2609 = vperm.xlu1 %5031, %v1507_v33   ;;  %2604 = vperm.xlu0 %5030, %v1506_v34   ;;  %v4132_v54 = vmul.f32 %v2295_v43, %v1828_v39  ;;  %v4133_v62 = vmul.f32 %v2300_v41, %v1829_v42  ;;  %v1515_v33 = vld [vmem:[%s5104_s19 + $0x2d8] sm:$0xff]  ;;  %v1514_v34 = vld [vmem:[%s5104_s19 + $0x2d0] sm:$0xff] }
  0xb6   : > { %v1836_v39 = vmul.f32 %v1068_v24, %v1068_v24  ;;  %v1837_v42 = vmul.f32 %v1069_v27, %v1069_v27  ;;  %v1076_v24 = vsub.f32 %v308_v12, %v692_v13  ;;  %v1077_v27 = vsub.f32 %v309_v17, %v693_v18  ;;  %v316_v12 = vld [vmem:[%s5170_s22 + $0x160] sm:$0xff]  ;;  %v317_v17 = vld [vmem:[%s5170_s22 + $0x168] sm:$0xff] }
  0xb7   : > { %v4514_v53 = vadd.f32 %v4513_v47, %v4131_v46  ;;  %v700_v13 = vld [vmem:[%s5176_s25 + $0x160] sm:$0xff]  ;;  %v701_v18 = vld [vmem:[%s5176_s25 + $0x168] sm:$0xff] }
  0xb8   : > { %v2310_v57 = vpop.permute.xlu1 %2309  ;;  %v2305_v58 = vpop.permute.xlu0 %2304 }
  0xb9   : > { %v4515_v63 = vadd.f32 %v4514_v53, %v4132_v54  ;;  %2619 = vperm.xlu1 %5031, %v1509_v51   ;;  %2614 = vperm.xlu0 %5030, %v1508_v52   ;;  %v4134_v6 = vmul.f32 %v2305_v58, %v1830_v55  ;;  %v4135_v14 = vmul.f32 %v2310_v57, %v1831_v0  ;;  %v1517_v51 = vld [vmem:[%s5104_s19 + $0x2e8] sm:$0xff]  ;;  %v1516_v52 = vld [vmem:[%s5104_s19 + $0x2e0] sm:$0xff] }
  0xba   : > { %v1838_v55 = vmul.f32 %v1070_v40, %v1070_v40  ;;  %v1839_v0 = vmul.f32 %v1071_v48, %v1071_v48  ;;  %v1078_v40 = vsub.f32 %v310_v28, %v694_v29  ;;  %v1079_v48 = vsub.f32 %v311_v35, %v695_v36  ;;  %v318_v28 = vld [vmem:[%s5170_s22 + $0x170] sm:$0xff]  ;;  %v319_v35 = vld [vmem:[%s5170_s22 + $0x178] sm:$0xff] }
  0xbb   : > { %v4516_v5 = vadd.f32 %v4515_v63, %v4133_v62  ;;  %v702_v29 = vld [vmem:[%s5176_s25 + $0x170] sm:$0xff]  ;;  %v703_v36 = vld [vmem:[%s5176_s25 + $0x178] sm:$0xff] }
  0xbc   : > { %v2320_v9 = vpop.permute.xlu1 %2319  ;;  %v2315_v11 = vpop.permute.xlu0 %2314 }
  0xbd   : > { %v4517_v15 = vadd.f32 %v4516_v5, %v4134_v6  ;;  %2629 = vperm.xlu1 %5031, %v1511_v1   ;;  %2624 = vperm.xlu0 %5030, %v1510_v2   ;;  %v4136_v22 = vmul.f32 %v2315_v11, %v1832_v7  ;;  %v4137_v30 = vmul.f32 %v2320_v9, %v1833_v10  ;;  %v1519_v1 = vld [vmem:[%s5104_s19 + $0x2f8] sm:$0xff]  ;;  %v1518_v2 = vld [vmem:[%s5104_s19 + $0x2f0] sm:$0xff] }
  0xbe   : > { %v1840_v7 = vmul.f32 %v1072_v56, %v1072_v56  ;;  %v1841_v10 = vmul.f32 %v1073_v59, %v1073_v59  ;;  %v1080_v56 = vsub.f32 %v312_v44, %v696_v45  ;;  %v1081_v59 = vsub.f32 %v313_v49, %v697_v50  ;;  %v320_v44 = vld [vmem:[%s5170_s22 + $0x180] sm:$0xff]  ;;  %v321_v49 = vld [vmem:[%s5170_s22 + $0x188] sm:$0xff] }
  0xbf   : > { %v4518_v21 = vadd.f32 %v4517_v15, %v4135_v14  ;;  %v704_v45 = vld [vmem:[%s5176_s25 + $0x180] sm:$0xff]  ;;  %v705_v50 = vld [vmem:[%s5176_s25 + $0x188] sm:$0xff] }
  0xc0   : > { %v2330_v25 = vpop.permute.xlu1 %2329  ;;  %v2325_v26 = vpop.permute.xlu0 %2324 }
  0xc1   : > { %v4519_v31 = vadd.f32 %v4518_v21, %v4136_v22  ;;  %2639 = vperm.xlu1 %5031, %v1513_v19   ;;  %2634 = vperm.xlu0 %5030, %v1512_v20   ;;  %v4138_v38 = vmul.f32 %v2325_v26, %v1834_v23  ;;  %v4139_v46 = vmul.f32 %v2330_v25, %v1835_v32  ;;  %v1521_v19 = vld [vmem:[%s5104_s19 + $0x308] sm:$0xff]  ;;  %v1520_v20 = vld [vmem:[%s5104_s19 + $0x300] sm:$0xff] }
  0xc2   : > { %v1842_v23 = vmul.f32 %v1074_v8, %v1074_v8  ;;  %v1843_v32 = vmul.f32 %v1075_v16, %v1075_v16  ;;  %v1082_v8 = vsub.f32 %v314_v60, %v698_v61  ;;  %v1083_v16 = vsub.f32 %v315_v3, %v699_v4  ;;  %v322_v60 = vld [vmem:[%s5170_s22 + $0x190] sm:$0xff]  ;;  %v323_v3 = vld [vmem:[%s5170_s22 + $0x198] sm:$0xff] }
  0xc3   : > { %v4520_v37 = vadd.f32 %v4519_v31, %v4137_v30  ;;  %v706_v61 = vld [vmem:[%s5176_s25 + $0x190] sm:$0xff]  ;;  %v707_v4 = vld [vmem:[%s5176_s25 + $0x198] sm:$0xff] }
  0xc4   : > { %v2340_v41 = vpop.permute.xlu1 %2339  ;;  %v2335_v43 = vpop.permute.xlu0 %2334 }
  0xc5   : > { %v4521_v47 = vadd.f32 %v4520_v37, %v4138_v38  ;;  %2649 = vperm.xlu1 %5031, %v1515_v33   ;;  %2644 = vperm.xlu0 %5030, %v1514_v34   ;;  %v4140_v54 = vmul.f32 %v2335_v43, %v1836_v39  ;;  %v4141_v62 = vmul.f32 %v2340_v41, %v1837_v42  ;;  %v1523_v33 = vld [vmem:[%s5104_s19 + $0x318] sm:$0xff]  ;;  %v1522_v34 = vld [vmem:[%s5104_s19 + $0x310] sm:$0xff] }
  0xc6   : > { %v1844_v39 = vmul.f32 %v1076_v24, %v1076_v24  ;;  %v1845_v42 = vmul.f32 %v1077_v27, %v1077_v27  ;;  %v1084_v24 = vsub.f32 %v316_v12, %v700_v13  ;;  %v1085_v27 = vsub.f32 %v317_v17, %v701_v18  ;;  %v324_v12 = vld [vmem:[%s5170_s22 + $0x1a0] sm:$0xff]  ;;  %v325_v17 = vld [vmem:[%s5170_s22 + $0x1a8] sm:$0xff] }
  0xc7   : > { %v4522_v53 = vadd.f32 %v4521_v47, %v4139_v46  ;;  %v708_v13 = vld [vmem:[%s5176_s25 + $0x1a0] sm:$0xff]  ;;  %v709_v18 = vld [vmem:[%s5176_s25 + $0x1a8] sm:$0xff] }
  0xc8   : > { %v2350_v57 = vpop.permute.xlu1 %2349  ;;  %v2345_v58 = vpop.permute.xlu0 %2344 }
  0xc9   : > { %v4523_v63 = vadd.f32 %v4522_v53, %v4140_v54  ;;  %2659 = vperm.xlu1 %5031, %v1517_v51   ;;  %2654 = vperm.xlu0 %5030, %v1516_v52   ;;  %v4142_v6 = vmul.f32 %v2345_v58, %v1838_v55  ;;  %v4143_v14 = vmul.f32 %v2350_v57, %v1839_v0  ;;  %v1525_v51 = vld [vmem:[%s5104_s19 + $0x328] sm:$0xff]  ;;  %v1524_v52 = vld [vmem:[%s5104_s19 + $0x320] sm:$0xff] }
  0xca   : > { %v1846_v55 = vmul.f32 %v1078_v40, %v1078_v40  ;;  %v1847_v0 = vmul.f32 %v1079_v48, %v1079_v48  ;;  %v1086_v40 = vsub.f32 %v318_v28, %v702_v29  ;;  %v1087_v48 = vsub.f32 %v319_v35, %v703_v36  ;;  %v326_v28 = vld [vmem:[%s5170_s22 + $0x1b0] sm:$0xff]  ;;  %v327_v35 = vld [vmem:[%s5170_s22 + $0x1b8] sm:$0xff] }
  0xcb   : > { %v4524_v5 = vadd.f32 %v4523_v63, %v4141_v62  ;;  %v710_v29 = vld [vmem:[%s5176_s25 + $0x1b0] sm:$0xff]  ;;  %v711_v36 = vld [vmem:[%s5176_s25 + $0x1b8] sm:$0xff] }
  0xcc   : > { %v2360_v9 = vpop.permute.xlu1 %2359  ;;  %v2355_v11 = vpop.permute.xlu0 %2354 }
  0xcd   : > { %v4525_v15 = vadd.f32 %v4524_v5, %v4142_v6  ;;  %2669 = vperm.xlu1 %5031, %v1519_v1   ;;  %2664 = vperm.xlu0 %5030, %v1518_v2   ;;  %v4144_v22 = vmul.f32 %v2355_v11, %v1840_v7  ;;  %v4145_v30 = vmul.f32 %v2360_v9, %v1841_v10  ;;  %v1527_v1 = vld [vmem:[%s5104_s19 + $0x338] sm:$0xff]  ;;  %v1526_v2 = vld [vmem:[%s5104_s19 + $0x330] sm:$0xff] }
  0xce   : > { %v1848_v7 = vmul.f32 %v1080_v56, %v1080_v56  ;;  %v1849_v10 = vmul.f32 %v1081_v59, %v1081_v59  ;;  %v1088_v56 = vsub.f32 %v320_v44, %v704_v45  ;;  %v1089_v59 = vsub.f32 %v321_v49, %v705_v50  ;;  %v328_v44 = vld [vmem:[%s5170_s22 + $0x1c0] sm:$0xff]  ;;  %v329_v49 = vld [vmem:[%s5170_s22 + $0x1c8] sm:$0xff] }
  0xcf   : > { %v4526_v21 = vadd.f32 %v4525_v15, %v4143_v14  ;;  %v712_v45 = vld [vmem:[%s5176_s25 + $0x1c0] sm:$0xff]  ;;  %v713_v50 = vld [vmem:[%s5176_s25 + $0x1c8] sm:$0xff] }
  0xd0   : > { %v2370_v25 = vpop.permute.xlu1 %2369  ;;  %v2365_v26 = vpop.permute.xlu0 %2364 }
  0xd1   : > { %v4527_v31 = vadd.f32 %v4526_v21, %v4144_v22  ;;  %2679 = vperm.xlu1 %5031, %v1521_v19   ;;  %2674 = vperm.xlu0 %5030, %v1520_v20   ;;  %v4146_v38 = vmul.f32 %v2365_v26, %v1842_v23  ;;  %v4147_v46 = vmul.f32 %v2370_v25, %v1843_v32  ;;  %v1529_v19 = vld [vmem:[%s5104_s19 + $0x348] sm:$0xff]  ;;  %v1528_v20 = vld [vmem:[%s5104_s19 + $0x340] sm:$0xff] }
  0xd2   : > { %v1850_v23 = vmul.f32 %v1082_v8, %v1082_v8  ;;  %v1851_v32 = vmul.f32 %v1083_v16, %v1083_v16  ;;  %v1090_v8 = vsub.f32 %v322_v60, %v706_v61  ;;  %v1091_v16 = vsub.f32 %v323_v3, %v707_v4  ;;  %v330_v60 = vld [vmem:[%s5170_s22 + $0x1d0] sm:$0xff]  ;;  %v331_v3 = vld [vmem:[%s5170_s22 + $0x1d8] sm:$0xff] }
  0xd3   : > { %v4528_v37 = vadd.f32 %v4527_v31, %v4145_v30  ;;  %v714_v61 = vld [vmem:[%s5176_s25 + $0x1d0] sm:$0xff]  ;;  %v715_v4 = vld [vmem:[%s5176_s25 + $0x1d8] sm:$0xff] }
  0xd4   : > { %v2380_v41 = vpop.permute.xlu1 %2379  ;;  %v2375_v43 = vpop.permute.xlu0 %2374 }
  0xd5   : > { %v4529_v47 = vadd.f32 %v4528_v37, %v4146_v38  ;;  %2689 = vperm.xlu1 %5031, %v1523_v33   ;;  %2684 = vperm.xlu0 %5030, %v1522_v34   ;;  %v4148_v54 = vmul.f32 %v2375_v43, %v1844_v39  ;;  %v4149_v62 = vmul.f32 %v2380_v41, %v1845_v42  ;;  %v1531_v33 = vld [vmem:[%s5104_s19 + $0x358] sm:$0xff]  ;;  %v1530_v34 = vld [vmem:[%s5104_s19 + $0x350] sm:$0xff] }
  0xd6   : > { %v1852_v39 = vmul.f32 %v1084_v24, %v1084_v24  ;;  %v1853_v42 = vmul.f32 %v1085_v27, %v1085_v27  ;;  %v1092_v24 = vsub.f32 %v324_v12, %v708_v13  ;;  %v1093_v27 = vsub.f32 %v325_v17, %v709_v18  ;;  %v332_v12 = vld [vmem:[%s5170_s22 + $0x1e0] sm:$0xff]  ;;  %v333_v17 = vld [vmem:[%s5170_s22 + $0x1e8] sm:$0xff] }
  0xd7   : > { %v4530_v53 = vadd.f32 %v4529_v47, %v4147_v46  ;;  %v716_v13 = vld [vmem:[%s5176_s25 + $0x1e0] sm:$0xff]  ;;  %v717_v18 = vld [vmem:[%s5176_s25 + $0x1e8] sm:$0xff] }
  0xd8   : > { %v2390_v57 = vpop.permute.xlu1 %2389  ;;  %v2385_v58 = vpop.permute.xlu0 %2384 }
  0xd9   : > { %v4531_v63 = vadd.f32 %v4530_v53, %v4148_v54  ;;  %2699 = vperm.xlu1 %5031, %v1525_v51   ;;  %2694 = vperm.xlu0 %5030, %v1524_v52   ;;  %v4150_v6 = vmul.f32 %v2385_v58, %v1846_v55  ;;  %v4151_v14 = vmul.f32 %v2390_v57, %v1847_v0  ;;  %v1533_v51 = vld [vmem:[%s5104_s19 + $0x368] sm:$0xff]  ;;  %v1532_v52 = vld [vmem:[%s5104_s19 + $0x360] sm:$0xff] }
  0xda   : > { %v1854_v55 = vmul.f32 %v1086_v40, %v1086_v40  ;;  %v1855_v0 = vmul.f32 %v1087_v48, %v1087_v48  ;;  %v1094_v40 = vsub.f32 %v326_v28, %v710_v29  ;;  %v1095_v48 = vsub.f32 %v327_v35, %v711_v36  ;;  %v334_v28 = vld [vmem:[%s5170_s22 + $0x1f0] sm:$0xff]  ;;  %v335_v35 = vld [vmem:[%s5170_s22 + $0x1f8] sm:$0xff] }
  0xdb   : > { %v4532_v5 = vadd.f32 %v4531_v63, %v4149_v62  ;;  %v718_v29 = vld [vmem:[%s5176_s25 + $0x1f0] sm:$0xff]  ;;  %v719_v36 = vld [vmem:[%s5176_s25 + $0x1f8] sm:$0xff] }
  0xdc   : > { %v2400_v9 = vpop.permute.xlu1 %2399  ;;  %v2395_v11 = vpop.permute.xlu0 %2394 }
  0xdd   : > { %v4533_v15 = vadd.f32 %v4532_v5, %v4150_v6  ;;  %2709 = vperm.xlu1 %5031, %v1527_v1   ;;  %2704 = vperm.xlu0 %5030, %v1526_v2   ;;  %v4152_v22 = vmul.f32 %v2395_v11, %v1848_v7  ;;  %v4153_v30 = vmul.f32 %v2400_v9, %v1849_v10  ;;  %v1535_v1 = vld [vmem:[%s5104_s19 + $0x378] sm:$0xff]  ;;  %v1534_v2 = vld [vmem:[%s5104_s19 + $0x370] sm:$0xff] }
  0xde   : > { %v1856_v7 = vmul.f32 %v1088_v56, %v1088_v56  ;;  %v1857_v10 = vmul.f32 %v1089_v59, %v1089_v59  ;;  %v1096_v56 = vsub.f32 %v328_v44, %v712_v45  ;;  %v1097_v59 = vsub.f32 %v329_v49, %v713_v50  ;;  %v336_v44 = vld [vmem:[%s5170_s22 + $0x200] sm:$0xff]  ;;  %v337_v49 = vld [vmem:[%s5170_s22 + $0x208] sm:$0xff] }
  0xdf   : > { %v4534_v21 = vadd.f32 %v4533_v15, %v4151_v14  ;;  %v720_v45 = vld [vmem:[%s5176_s25 + $0x200] sm:$0xff]  ;;  %v721_v50 = vld [vmem:[%s5176_s25 + $0x208] sm:$0xff] }
  0xe0   : > { %v2410_v25 = vpop.permute.xlu1 %2409  ;;  %v2405_v26 = vpop.permute.xlu0 %2404 }
  0xe1   : > { %v4535_v31 = vadd.f32 %v4534_v21, %v4152_v22  ;;  %2719 = vperm.xlu1 %5031, %v1529_v19   ;;  %2714 = vperm.xlu0 %5030, %v1528_v20   ;;  %v4154_v38 = vmul.f32 %v2405_v26, %v1850_v23  ;;  %v4155_v46 = vmul.f32 %v2410_v25, %v1851_v32  ;;  %v1537_v19 = vld [vmem:[%s5104_s19 + $0x388] sm:$0xff]  ;;  %v1536_v20 = vld [vmem:[%s5104_s19 + $0x380] sm:$0xff] }
  0xe2   : > { %v1858_v23 = vmul.f32 %v1090_v8, %v1090_v8  ;;  %v1859_v32 = vmul.f32 %v1091_v16, %v1091_v16  ;;  %v1098_v8 = vsub.f32 %v330_v60, %v714_v61  ;;  %v1099_v16 = vsub.f32 %v331_v3, %v715_v4  ;;  %v338_v60 = vld [vmem:[%s5170_s22 + $0x210] sm:$0xff]  ;;  %v339_v3 = vld [vmem:[%s5170_s22 + $0x218] sm:$0xff] }
  0xe3   : > { %v4536_v37 = vadd.f32 %v4535_v31, %v4153_v30  ;;  %v722_v61 = vld [vmem:[%s5176_s25 + $0x210] sm:$0xff]  ;;  %v723_v4 = vld [vmem:[%s5176_s25 + $0x218] sm:$0xff] }
  0xe4   : > { %v2420_v41 = vpop.permute.xlu1 %2419  ;;  %v2415_v43 = vpop.permute.xlu0 %2414 }
  0xe5   : > { %v4537_v47 = vadd.f32 %v4536_v37, %v4154_v38  ;;  %2729 = vperm.xlu1 %5031, %v1531_v33   ;;  %2724 = vperm.xlu0 %5030, %v1530_v34   ;;  %v4156_v54 = vmul.f32 %v2415_v43, %v1852_v39  ;;  %v4157_v62 = vmul.f32 %v2420_v41, %v1853_v42  ;;  %v1539_v33 = vld [vmem:[%s5104_s19 + $0x398] sm:$0xff]  ;;  %v1538_v34 = vld [vmem:[%s5104_s19 + $0x390] sm:$0xff] }
  0xe6   : > { %v1860_v39 = vmul.f32 %v1092_v24, %v1092_v24  ;;  %v1861_v42 = vmul.f32 %v1093_v27, %v1093_v27  ;;  %v1100_v24 = vsub.f32 %v332_v12, %v716_v13  ;;  %v1101_v27 = vsub.f32 %v333_v17, %v717_v18  ;;  %v340_v12 = vld [vmem:[%s5170_s22 + $0x220] sm:$0xff]  ;;  %v341_v17 = vld [vmem:[%s5170_s22 + $0x228] sm:$0xff] }
  0xe7   : > { %v4538_v53 = vadd.f32 %v4537_v47, %v4155_v46  ;;  %v724_v13 = vld [vmem:[%s5176_s25 + $0x220] sm:$0xff]  ;;  %v725_v18 = vld [vmem:[%s5176_s25 + $0x228] sm:$0xff] }
  0xe8   : > { %v2430_v57 = vpop.permute.xlu1 %2429  ;;  %v2425_v58 = vpop.permute.xlu0 %2424 }
  0xe9   : > { %v4539_v63 = vadd.f32 %v4538_v53, %v4156_v54  ;;  %2739 = vperm.xlu1 %5031, %v1533_v51   ;;  %2734 = vperm.xlu0 %5030, %v1532_v52   ;;  %v4158_v6 = vmul.f32 %v2425_v58, %v1854_v55  ;;  %v4159_v14 = vmul.f32 %v2430_v57, %v1855_v0  ;;  %v1541_v51 = vld [vmem:[%s5104_s19 + $0x3a8] sm:$0xff]  ;;  %v1540_v52 = vld [vmem:[%s5104_s19 + $0x3a0] sm:$0xff] }
  0xea   : > { %v1862_v55 = vmul.f32 %v1094_v40, %v1094_v40  ;;  %v1863_v0 = vmul.f32 %v1095_v48, %v1095_v48  ;;  %v1102_v40 = vsub.f32 %v334_v28, %v718_v29  ;;  %v1103_v48 = vsub.f32 %v335_v35, %v719_v36  ;;  %v342_v28 = vld [vmem:[%s5170_s22 + $0x230] sm:$0xff]  ;;  %v343_v35 = vld [vmem:[%s5170_s22 + $0x238] sm:$0xff] }
  0xeb   : > { %v4540_v5 = vadd.f32 %v4539_v63, %v4157_v62  ;;  %v726_v29 = vld [vmem:[%s5176_s25 + $0x230] sm:$0xff]  ;;  %v727_v36 = vld [vmem:[%s5176_s25 + $0x238] sm:$0xff] }
  0xec   : > { %v2440_v9 = vpop.permute.xlu1 %2439  ;;  %v2435_v11 = vpop.permute.xlu0 %2434 }
  0xed   : > { %v4541_v15 = vadd.f32 %v4540_v5, %v4158_v6  ;;  %2749 = vperm.xlu1 %5031, %v1535_v1   ;;  %2744 = vperm.xlu0 %5030, %v1534_v2   ;;  %v4160_v22 = vmul.f32 %v2435_v11, %v1856_v7  ;;  %v4161_v30 = vmul.f32 %v2440_v9, %v1857_v10  ;;  %v1543_v1 = vld [vmem:[%s5104_s19 + $0x3b8] sm:$0xff]  ;;  %v1542_v2 = vld [vmem:[%s5104_s19 + $0x3b0] sm:$0xff] }
  0xee   : > { %v1864_v7 = vmul.f32 %v1096_v56, %v1096_v56  ;;  %v1865_v10 = vmul.f32 %v1097_v59, %v1097_v59  ;;  %v1104_v56 = vsub.f32 %v336_v44, %v720_v45  ;;  %v1105_v59 = vsub.f32 %v337_v49, %v721_v50  ;;  %v344_v44 = vld [vmem:[%s5170_s22 + $0x240] sm:$0xff]  ;;  %v345_v49 = vld [vmem:[%s5170_s22 + $0x248] sm:$0xff] }
  0xef   : > { %v4542_v21 = vadd.f32 %v4541_v15, %v4159_v14  ;;  %v728_v45 = vld [vmem:[%s5176_s25 + $0x240] sm:$0xff]  ;;  %v729_v50 = vld [vmem:[%s5176_s25 + $0x248] sm:$0xff] }
  0xf0   : > { %v2450_v25 = vpop.permute.xlu1 %2449  ;;  %v2445_v26 = vpop.permute.xlu0 %2444 }
  0xf1   : > { %v4543_v31 = vadd.f32 %v4542_v21, %v4160_v22  ;;  %2759 = vperm.xlu1 %5031, %v1537_v19   ;;  %2754 = vperm.xlu0 %5030, %v1536_v20   ;;  %v4162_v38 = vmul.f32 %v2445_v26, %v1858_v23  ;;  %v4163_v46 = vmul.f32 %v2450_v25, %v1859_v32  ;;  %v1545_v19 = vld [vmem:[%s5104_s19 + $0x3c8] sm:$0xff]  ;;  %v1544_v20 = vld [vmem:[%s5104_s19 + $0x3c0] sm:$0xff] }
  0xf2   : > { %v1866_v23 = vmul.f32 %v1098_v8, %v1098_v8  ;;  %v1867_v32 = vmul.f32 %v1099_v16, %v1099_v16  ;;  %v1106_v8 = vsub.f32 %v338_v60, %v722_v61  ;;  %v1107_v16 = vsub.f32 %v339_v3, %v723_v4  ;;  %v346_v60 = vld [vmem:[%s5170_s22 + $0x250] sm:$0xff]  ;;  %v347_v3 = vld [vmem:[%s5170_s22 + $0x258] sm:$0xff] }
  0xf3   : > { %v4544_v37 = vadd.f32 %v4543_v31, %v4161_v30  ;;  %v730_v61 = vld [vmem:[%s5176_s25 + $0x250] sm:$0xff]  ;;  %v731_v4 = vld [vmem:[%s5176_s25 + $0x258] sm:$0xff] }
  0xf4   : > { %v2460_v41 = vpop.permute.xlu1 %2459  ;;  %v2455_v43 = vpop.permute.xlu0 %2454 }
  0xf5   : > { %v4545_v47 = vadd.f32 %v4544_v37, %v4162_v38  ;;  %2769 = vperm.xlu1 %5031, %v1539_v33   ;;  %2764 = vperm.xlu0 %5030, %v1538_v34   ;;  %v4164_v54 = vmul.f32 %v2455_v43, %v1860_v39  ;;  %v4165_v62 = vmul.f32 %v2460_v41, %v1861_v42  ;;  %v1547_v33 = vld [vmem:[%s5104_s19 + $0x3d8] sm:$0xff]  ;;  %v1546_v34 = vld [vmem:[%s5104_s19 + $0x3d0] sm:$0xff] }
  0xf6   : > { %v1868_v39 = vmul.f32 %v1100_v24, %v1100_v24  ;;  %v1869_v42 = vmul.f32 %v1101_v27, %v1101_v27  ;;  %v1108_v24 = vsub.f32 %v340_v12, %v724_v13  ;;  %v1109_v27 = vsub.f32 %v341_v17, %v725_v18  ;;  %v348_v12 = vld [vmem:[%s5170_s22 + $0x260] sm:$0xff]  ;;  %v349_v17 = vld [vmem:[%s5170_s22 + $0x268] sm:$0xff] }
  0xf7   : > { %v4546_v53 = vadd.f32 %v4545_v47, %v4163_v46  ;;  %v732_v13 = vld [vmem:[%s5176_s25 + $0x260] sm:$0xff]  ;;  %v733_v18 = vld [vmem:[%s5176_s25 + $0x268] sm:$0xff] }
  0xf8   : > { %v2470_v57 = vpop.permute.xlu1 %2469  ;;  %v2465_v58 = vpop.permute.xlu0 %2464 }
  0xf9   : > { %v4547_v63 = vadd.f32 %v4546_v53, %v4164_v54  ;;  %2779 = vperm.xlu1 %5031, %v1541_v51   ;;  %2774 = vperm.xlu0 %5030, %v1540_v52   ;;  %v4166_v6 = vmul.f32 %v2465_v58, %v1862_v55  ;;  %v4167_v14 = vmul.f32 %v2470_v57, %v1863_v0  ;;  %v1549_v51 = vld [vmem:[%s5104_s19 + $0x3e8] sm:$0xff]  ;;  %v1548_v52 = vld [vmem:[%s5104_s19 + $0x3e0] sm:$0xff] }
  0xfa   : > { %v1870_v55 = vmul.f32 %v1102_v40, %v1102_v40  ;;  %v1871_v0 = vmul.f32 %v1103_v48, %v1103_v48  ;;  %v1110_v40 = vsub.f32 %v342_v28, %v726_v29  ;;  %v1111_v48 = vsub.f32 %v343_v35, %v727_v36  ;;  %v350_v28 = vld [vmem:[%s5170_s22 + $0x270] sm:$0xff]  ;;  %v351_v35 = vld [vmem:[%s5170_s22 + $0x278] sm:$0xff] }
  0xfb   : > { %v4548_v5 = vadd.f32 %v4547_v63, %v4165_v62  ;;  %v734_v29 = vld [vmem:[%s5176_s25 + $0x270] sm:$0xff]  ;;  %v735_v36 = vld [vmem:[%s5176_s25 + $0x278] sm:$0xff] }
  0xfc   : > { %v2480_v9 = vpop.permute.xlu1 %2479  ;;  %v2475_v11 = vpop.permute.xlu0 %2474 }
  0xfd   : > { %v4549_v15 = vadd.f32 %v4548_v5, %v4166_v6  ;;  %2789 = vperm.xlu1 %5031, %v1543_v1   ;;  %2784 = vperm.xlu0 %5030, %v1542_v2   ;;  %v4168_v22 = vmul.f32 %v2475_v11, %v1864_v7  ;;  %v4169_v30 = vmul.f32 %v2480_v9, %v1865_v10  ;;  %v1551_v1 = vld [vmem:[%s5104_s19 + $0x3f8] sm:$0xff]  ;;  %v1550_v2 = vld [vmem:[%s5104_s19 + $0x3f0] sm:$0xff] }
  0xfe   : > { %v1872_v7 = vmul.f32 %v1104_v56, %v1104_v56  ;;  %v1873_v10 = vmul.f32 %v1105_v59, %v1105_v59  ;;  %v1112_v56 = vsub.f32 %v344_v44, %v728_v45  ;;  %v1113_v59 = vsub.f32 %v345_v49, %v729_v50  ;;  %v352_v44 = vld [vmem:[%s5170_s22 + $0x280] sm:$0xff]  ;;  %v353_v49 = vld [vmem:[%s5170_s22 + $0x288] sm:$0xff] }
  0xff   : > { %v4550_v21 = vadd.f32 %v4549_v15, %v4167_v14  ;;  %v736_v45 = vld [vmem:[%s5176_s25 + $0x280] sm:$0xff]  ;;  %v737_v50 = vld [vmem:[%s5176_s25 + $0x288] sm:$0xff] }
 0x100   : > { %v2490_v25 = vpop.permute.xlu1 %2489  ;;  %v2485_v26 = vpop.permute.xlu0 %2484 }
 0x101   : > { %v4551_v31 = vadd.f32 %v4550_v21, %v4168_v22  ;;  %2799 = vperm.xlu1 %5031, %v1545_v19   ;;  %2794 = vperm.xlu0 %5030, %v1544_v20   ;;  %v4170_v38 = vmul.f32 %v2485_v26, %v1866_v23  ;;  %v4171_v46 = vmul.f32 %v2490_v25, %v1867_v32  ;;  %v1553_v19 = vld [vmem:[%s5104_s19 + $0x408] sm:$0xff]  ;;  %v1552_v20 = vld [vmem:[%s5104_s19 + $0x400] sm:$0xff] }
 0x102   : > { %v1874_v23 = vmul.f32 %v1106_v8, %v1106_v8  ;;  %v1875_v32 = vmul.f32 %v1107_v16, %v1107_v16  ;;  %v1114_v8 = vsub.f32 %v346_v60, %v730_v61  ;;  %v1115_v16 = vsub.f32 %v347_v3, %v731_v4  ;;  %v354_v60 = vld [vmem:[%s5170_s22 + $0x290] sm:$0xff]  ;;  %v355_v3 = vld [vmem:[%s5170_s22 + $0x298] sm:$0xff] }
 0x103   : > { %v4552_v37 = vadd.f32 %v4551_v31, %v4169_v30  ;;  %v738_v61 = vld [vmem:[%s5176_s25 + $0x290] sm:$0xff]  ;;  %v739_v4 = vld [vmem:[%s5176_s25 + $0x298] sm:$0xff] }
 0x104   : > { %v2500_v41 = vpop.permute.xlu1 %2499  ;;  %v2495_v43 = vpop.permute.xlu0 %2494 }
 0x105   : > { %v4553_v47 = vadd.f32 %v4552_v37, %v4170_v38  ;;  %2809 = vperm.xlu1 %5031, %v1547_v33   ;;  %2804 = vperm.xlu0 %5030, %v1546_v34   ;;  %v4172_v54 = vmul.f32 %v2495_v43, %v1868_v39  ;;  %v4173_v62 = vmul.f32 %v2500_v41, %v1869_v42  ;;  %v1555_v33 = vld [vmem:[%s5104_s19 + $0x418] sm:$0xff]  ;;  %v1554_v34 = vld [vmem:[%s5104_s19 + $0x410] sm:$0xff] }
 0x106   : > { %v1876_v39 = vmul.f32 %v1108_v24, %v1108_v24  ;;  %v1877_v42 = vmul.f32 %v1109_v27, %v1109_v27  ;;  %v1116_v24 = vsub.f32 %v348_v12, %v732_v13  ;;  %v1117_v27 = vsub.f32 %v349_v17, %v733_v18  ;;  %v356_v12 = vld [vmem:[%s5170_s22 + $0x2a0] sm:$0xff]  ;;  %v357_v17 = vld [vmem:[%s5170_s22 + $0x2a8] sm:$0xff] }
 0x107   : > { %v4554_v53 = vadd.f32 %v4553_v47, %v4171_v46  ;;  %v740_v13 = vld [vmem:[%s5176_s25 + $0x2a0] sm:$0xff]  ;;  %v741_v18 = vld [vmem:[%s5176_s25 + $0x2a8] sm:$0xff] }
 0x108   : > { %v2510_v57 = vpop.permute.xlu1 %2509  ;;  %v2505_v58 = vpop.permute.xlu0 %2504 }
 0x109   : > { %v4555_v63 = vadd.f32 %v4554_v53, %v4172_v54  ;;  %2819 = vperm.xlu1 %5031, %v1549_v51   ;;  %2814 = vperm.xlu0 %5030, %v1548_v52   ;;  %v4174_v6 = vmul.f32 %v2505_v58, %v1870_v55  ;;  %v4175_v14 = vmul.f32 %v2510_v57, %v1871_v0  ;;  %v1557_v51 = vld [vmem:[%s5104_s19 + $0x428] sm:$0xff]  ;;  %v1556_v52 = vld [vmem:[%s5104_s19 + $0x420] sm:$0xff] }
 0x10a   : > { %v1878_v55 = vmul.f32 %v1110_v40, %v1110_v40  ;;  %v1879_v0 = vmul.f32 %v1111_v48, %v1111_v48  ;;  %v1118_v40 = vsub.f32 %v350_v28, %v734_v29  ;;  %v1119_v48 = vsub.f32 %v351_v35, %v735_v36  ;;  %v358_v28 = vld [vmem:[%s5170_s22 + $0x2b0] sm:$0xff]  ;;  %v359_v35 = vld [vmem:[%s5170_s22 + $0x2b8] sm:$0xff] }
 0x10b   : > { %v4556_v5 = vadd.f32 %v4555_v63, %v4173_v62  ;;  %v742_v29 = vld [vmem:[%s5176_s25 + $0x2b0] sm:$0xff]  ;;  %v743_v36 = vld [vmem:[%s5176_s25 + $0x2b8] sm:$0xff] }
 0x10c   : > { %v2520_v9 = vpop.permute.xlu1 %2519  ;;  %v2515_v11 = vpop.permute.xlu0 %2514 }
 0x10d   : > { %v4557_v15 = vadd.f32 %v4556_v5, %v4174_v6  ;;  %2829 = vperm.xlu1 %5031, %v1551_v1   ;;  %2824 = vperm.xlu0 %5030, %v1550_v2   ;;  %v4176_v22 = vmul.f32 %v2515_v11, %v1872_v7  ;;  %v4177_v30 = vmul.f32 %v2520_v9, %v1873_v10  ;;  %v1559_v1 = vld [vmem:[%s5104_s19 + $0x438] sm:$0xff]  ;;  %v1558_v2 = vld [vmem:[%s5104_s19 + $0x430] sm:$0xff] }
 0x10e   : > { %v1880_v7 = vmul.f32 %v1112_v56, %v1112_v56  ;;  %v1881_v10 = vmul.f32 %v1113_v59, %v1113_v59  ;;  %v1120_v56 = vsub.f32 %v352_v44, %v736_v45  ;;  %v1121_v59 = vsub.f32 %v353_v49, %v737_v50  ;;  %v360_v44 = vld [vmem:[%s5170_s22 + $0x2c0] sm:$0xff]  ;;  %v361_v49 = vld [vmem:[%s5170_s22 + $0x2c8] sm:$0xff] }
 0x10f   : > { %v4558_v21 = vadd.f32 %v4557_v15, %v4175_v14  ;;  %v744_v45 = vld [vmem:[%s5176_s25 + $0x2c0] sm:$0xff]  ;;  %v745_v50 = vld [vmem:[%s5176_s25 + $0x2c8] sm:$0xff] }
 0x110   : > { %v2530_v25 = vpop.permute.xlu1 %2529  ;;  %v2525_v26 = vpop.permute.xlu0 %2524 }
 0x111   : > { %v4559_v31 = vadd.f32 %v4558_v21, %v4176_v22  ;;  %2839 = vperm.xlu1 %5031, %v1553_v19   ;;  %2834 = vperm.xlu0 %5030, %v1552_v20   ;;  %v4178_v38 = vmul.f32 %v2525_v26, %v1874_v23  ;;  %v4179_v46 = vmul.f32 %v2530_v25, %v1875_v32  ;;  %v1561_v19 = vld [vmem:[%s5104_s19 + $0x448] sm:$0xff]  ;;  %v1560_v20 = vld [vmem:[%s5104_s19 + $0x440] sm:$0xff] }
 0x112   : > { %v1882_v23 = vmul.f32 %v1114_v8, %v1114_v8  ;;  %v1883_v32 = vmul.f32 %v1115_v16, %v1115_v16  ;;  %v1122_v8 = vsub.f32 %v354_v60, %v738_v61  ;;  %v1123_v16 = vsub.f32 %v355_v3, %v739_v4  ;;  %v362_v60 = vld [vmem:[%s5170_s22 + $0x2d0] sm:$0xff]  ;;  %v363_v3 = vld [vmem:[%s5170_s22 + $0x2d8] sm:$0xff] }
 0x113   : > { %v4560_v37 = vadd.f32 %v4559_v31, %v4177_v30  ;;  %v746_v61 = vld [vmem:[%s5176_s25 + $0x2d0] sm:$0xff]  ;;  %v747_v4 = vld [vmem:[%s5176_s25 + $0x2d8] sm:$0xff] }
 0x114   : > { %v2540_v41 = vpop.permute.xlu1 %2539  ;;  %v2535_v43 = vpop.permute.xlu0 %2534 }
 0x115   : > { %v4561_v47 = vadd.f32 %v4560_v37, %v4178_v38  ;;  %2849 = vperm.xlu1 %5031, %v1555_v33   ;;  %2844 = vperm.xlu0 %5030, %v1554_v34   ;;  %v4180_v54 = vmul.f32 %v2535_v43, %v1876_v39  ;;  %v4181_v62 = vmul.f32 %v2540_v41, %v1877_v42  ;;  %v1563_v33 = vld [vmem:[%s5104_s19 + $0x458] sm:$0xff]  ;;  %v1562_v34 = vld [vmem:[%s5104_s19 + $0x450] sm:$0xff] }
 0x116   : > { %v1884_v39 = vmul.f32 %v1116_v24, %v1116_v24  ;;  %v1885_v42 = vmul.f32 %v1117_v27, %v1117_v27  ;;  %v1124_v24 = vsub.f32 %v356_v12, %v740_v13  ;;  %v1125_v27 = vsub.f32 %v357_v17, %v741_v18  ;;  %v364_v12 = vld [vmem:[%s5170_s22 + $0x2e0] sm:$0xff]  ;;  %v365_v17 = vld [vmem:[%s5170_s22 + $0x2e8] sm:$0xff] }
 0x117   : > { %v4562_v53 = vadd.f32 %v4561_v47, %v4179_v46  ;;  %v748_v13 = vld [vmem:[%s5176_s25 + $0x2e0] sm:$0xff]  ;;  %v749_v18 = vld [vmem:[%s5176_s25 + $0x2e8] sm:$0xff] }
 0x118   : > { %v2550_v57 = vpop.permute.xlu1 %2549  ;;  %v2545_v58 = vpop.permute.xlu0 %2544 }
 0x119   : > { %v4563_v63 = vadd.f32 %v4562_v53, %v4180_v54  ;;  %2859 = vperm.xlu1 %5031, %v1557_v51   ;;  %2854 = vperm.xlu0 %5030, %v1556_v52   ;;  %v4182_v6 = vmul.f32 %v2545_v58, %v1878_v55  ;;  %v4183_v14 = vmul.f32 %v2550_v57, %v1879_v0  ;;  %v1565_v51 = vld [vmem:[%s5104_s19 + $0x468] sm:$0xff]  ;;  %v1564_v52 = vld [vmem:[%s5104_s19 + $0x460] sm:$0xff] }
 0x11a   : > { %v1886_v55 = vmul.f32 %v1118_v40, %v1118_v40  ;;  %v1887_v0 = vmul.f32 %v1119_v48, %v1119_v48  ;;  %v1126_v40 = vsub.f32 %v358_v28, %v742_v29  ;;  %v1127_v48 = vsub.f32 %v359_v35, %v743_v36  ;;  %v366_v28 = vld [vmem:[%s5170_s22 + $0x2f0] sm:$0xff]  ;;  %v367_v35 = vld [vmem:[%s5170_s22 + $0x2f8] sm:$0xff] }
 0x11b   : > { %v4564_v5 = vadd.f32 %v4563_v63, %v4181_v62  ;;  %v750_v29 = vld [vmem:[%s5176_s25 + $0x2f0] sm:$0xff]  ;;  %v751_v36 = vld [vmem:[%s5176_s25 + $0x2f8] sm:$0xff] }
 0x11c   : > { %v2560_v9 = vpop.permute.xlu1 %2559  ;;  %v2555_v11 = vpop.permute.xlu0 %2554 }
 0x11d   : > { %v4565_v15 = vadd.f32 %v4564_v5, %v4182_v6  ;;  %2869 = vperm.xlu1 %5031, %v1559_v1   ;;  %2864 = vperm.xlu0 %5030, %v1558_v2   ;;  %v4184_v22 = vmul.f32 %v2555_v11, %v1880_v7  ;;  %v4185_v30 = vmul.f32 %v2560_v9, %v1881_v10  ;;  %v1567_v1 = vld [vmem:[%s5104_s19 + $0x478] sm:$0xff]  ;;  %v1566_v2 = vld [vmem:[%s5104_s19 + $0x470] sm:$0xff] }
 0x11e   : > { %v1888_v7 = vmul.f32 %v1120_v56, %v1120_v56  ;;  %v1889_v10 = vmul.f32 %v1121_v59, %v1121_v59  ;;  %v1128_v56 = vsub.f32 %v360_v44, %v744_v45  ;;  %v1129_v59 = vsub.f32 %v361_v49, %v745_v50  ;;  %v368_v44 = vld [vmem:[%s5170_s22 + $0x300] sm:$0xff]  ;;  %v369_v49 = vld [vmem:[%s5170_s22 + $0x308] sm:$0xff] }
 0x11f   : > { %v4566_v21 = vadd.f32 %v4565_v15, %v4183_v14  ;;  %v752_v45 = vld [vmem:[%s5176_s25 + $0x300] sm:$0xff]  ;;  %v753_v50 = vld [vmem:[%s5176_s25 + $0x308] sm:$0xff] }
 0x120   : > { %v2570_v25 = vpop.permute.xlu1 %2569  ;;  %v2565_v26 = vpop.permute.xlu0 %2564 }
 0x121   : > { %v4567_v31 = vadd.f32 %v4566_v21, %v4184_v22  ;;  %2879 = vperm.xlu1 %5031, %v1561_v19   ;;  %2874 = vperm.xlu0 %5030, %v1560_v20   ;;  %v4186_v38 = vmul.f32 %v2565_v26, %v1882_v23  ;;  %v4187_v46 = vmul.f32 %v2570_v25, %v1883_v32  ;;  %v1569_v19 = vld [vmem:[%s5104_s19 + $0x488] sm:$0xff]  ;;  %v1568_v20 = vld [vmem:[%s5104_s19 + $0x480] sm:$0xff] }
 0x122   : > { %v1890_v23 = vmul.f32 %v1122_v8, %v1122_v8  ;;  %v1891_v32 = vmul.f32 %v1123_v16, %v1123_v16  ;;  %v1130_v8 = vsub.f32 %v362_v60, %v746_v61  ;;  %v1131_v16 = vsub.f32 %v363_v3, %v747_v4  ;;  %v370_v60 = vld [vmem:[%s5170_s22 + $0x310] sm:$0xff]  ;;  %v371_v3 = vld [vmem:[%s5170_s22 + $0x318] sm:$0xff] }
 0x123   : > { %v4568_v37 = vadd.f32 %v4567_v31, %v4185_v30  ;;  %v754_v61 = vld [vmem:[%s5176_s25 + $0x310] sm:$0xff]  ;;  %v755_v4 = vld [vmem:[%s5176_s25 + $0x318] sm:$0xff] }
 0x124   : > { %v2580_v41 = vpop.permute.xlu1 %2579  ;;  %v2575_v43 = vpop.permute.xlu0 %2574 }
 0x125   : > { %v4569_v47 = vadd.f32 %v4568_v37, %v4186_v38  ;;  %2889 = vperm.xlu1 %5031, %v1563_v33   ;;  %2884 = vperm.xlu0 %5030, %v1562_v34   ;;  %v4188_v54 = vmul.f32 %v2575_v43, %v1884_v39  ;;  %v4189_v62 = vmul.f32 %v2580_v41, %v1885_v42  ;;  %v1571_v33 = vld [vmem:[%s5104_s19 + $0x498] sm:$0xff]  ;;  %v1570_v34 = vld [vmem:[%s5104_s19 + $0x490] sm:$0xff] }
 0x126   : > { %v1892_v39 = vmul.f32 %v1124_v24, %v1124_v24  ;;  %v1893_v42 = vmul.f32 %v1125_v27, %v1125_v27  ;;  %v1132_v24 = vsub.f32 %v364_v12, %v748_v13  ;;  %v1133_v27 = vsub.f32 %v365_v17, %v749_v18  ;;  %v372_v12 = vld [vmem:[%s5170_s22 + $0x320] sm:$0xff]  ;;  %v373_v17 = vld [vmem:[%s5170_s22 + $0x328] sm:$0xff] }
 0x127   : > { %v4570_v53 = vadd.f32 %v4569_v47, %v4187_v46  ;;  %v756_v13 = vld [vmem:[%s5176_s25 + $0x320] sm:$0xff]  ;;  %v757_v18 = vld [vmem:[%s5176_s25 + $0x328] sm:$0xff] }
 0x128   : > { %v2590_v57 = vpop.permute.xlu1 %2589  ;;  %v2585_v58 = vpop.permute.xlu0 %2584 }
 0x129   : > { %v4571_v63 = vadd.f32 %v4570_v53, %v4188_v54  ;;  %2899 = vperm.xlu1 %5031, %v1565_v51   ;;  %2894 = vperm.xlu0 %5030, %v1564_v52   ;;  %v4190_v6 = vmul.f32 %v2585_v58, %v1886_v55  ;;  %v4191_v14 = vmul.f32 %v2590_v57, %v1887_v0  ;;  %v1573_v51 = vld [vmem:[%s5104_s19 + $0x4a8] sm:$0xff]  ;;  %v1572_v52 = vld [vmem:[%s5104_s19 + $0x4a0] sm:$0xff] }
 0x12a   : > { %v1894_v55 = vmul.f32 %v1126_v40, %v1126_v40  ;;  %v1895_v0 = vmul.f32 %v1127_v48, %v1127_v48  ;;  %v1134_v40 = vsub.f32 %v366_v28, %v750_v29  ;;  %v1135_v48 = vsub.f32 %v367_v35, %v751_v36  ;;  %v374_v28 = vld [vmem:[%s5170_s22 + $0x330] sm:$0xff]  ;;  %v375_v35 = vld [vmem:[%s5170_s22 + $0x338] sm:$0xff] }
 0x12b   : > { %v4572_v5 = vadd.f32 %v4571_v63, %v4189_v62  ;;  %v758_v29 = vld [vmem:[%s5176_s25 + $0x330] sm:$0xff]  ;;  %v759_v36 = vld [vmem:[%s5176_s25 + $0x338] sm:$0xff] }
 0x12c   : > { %v2600_v9 = vpop.permute.xlu1 %2599  ;;  %v2595_v11 = vpop.permute.xlu0 %2594 }
 0x12d   : > { %v4573_v15 = vadd.f32 %v4572_v5, %v4190_v6  ;;  %2909 = vperm.xlu1 %5031, %v1567_v1   ;;  %2904 = vperm.xlu0 %5030, %v1566_v2   ;;  %v4192_v22 = vmul.f32 %v2595_v11, %v1888_v7  ;;  %v4193_v30 = vmul.f32 %v2600_v9, %v1889_v10  ;;  %v1575_v1 = vld [vmem:[%s5104_s19 + $0x4b8] sm:$0xff]  ;;  %v1574_v2 = vld [vmem:[%s5104_s19 + $0x4b0] sm:$0xff] }
 0x12e   : > { %v1896_v7 = vmul.f32 %v1128_v56, %v1128_v56  ;;  %v1897_v10 = vmul.f32 %v1129_v59, %v1129_v59  ;;  %v1136_v56 = vsub.f32 %v368_v44, %v752_v45  ;;  %v1137_v59 = vsub.f32 %v369_v49, %v753_v50  ;;  %v376_v44 = vld [vmem:[%s5170_s22 + $0x340] sm:$0xff]  ;;  %v377_v49 = vld [vmem:[%s5170_s22 + $0x348] sm:$0xff] }
 0x12f   : > { %v4574_v21 = vadd.f32 %v4573_v15, %v4191_v14  ;;  %v760_v45 = vld [vmem:[%s5176_s25 + $0x340] sm:$0xff]  ;;  %v761_v50 = vld [vmem:[%s5176_s25 + $0x348] sm:$0xff] }
 0x130   : > { %v2610_v25 = vpop.permute.xlu1 %2609  ;;  %v2605_v26 = vpop.permute.xlu0 %2604 }
 0x131   : > { %v4575_v31 = vadd.f32 %v4574_v21, %v4192_v22  ;;  %2919 = vperm.xlu1 %5031, %v1569_v19   ;;  %2914 = vperm.xlu0 %5030, %v1568_v20   ;;  %v4194_v38 = vmul.f32 %v2605_v26, %v1890_v23  ;;  %v4195_v46 = vmul.f32 %v2610_v25, %v1891_v32  ;;  %v1577_v19 = vld [vmem:[%s5104_s19 + $0x4c8] sm:$0xff]  ;;  %v1576_v20 = vld [vmem:[%s5104_s19 + $0x4c0] sm:$0xff] }
 0x132   : > { %v1898_v23 = vmul.f32 %v1130_v8, %v1130_v8  ;;  %v1899_v32 = vmul.f32 %v1131_v16, %v1131_v16  ;;  %v1138_v8 = vsub.f32 %v370_v60, %v754_v61  ;;  %v1139_v16 = vsub.f32 %v371_v3, %v755_v4  ;;  %v378_v60 = vld [vmem:[%s5170_s22 + $0x350] sm:$0xff]  ;;  %v379_v3 = vld [vmem:[%s5170_s22 + $0x358] sm:$0xff] }
 0x133   : > { %v4576_v37 = vadd.f32 %v4575_v31, %v4193_v30  ;;  %v762_v61 = vld [vmem:[%s5176_s25 + $0x350] sm:$0xff]  ;;  %v763_v4 = vld [vmem:[%s5176_s25 + $0x358] sm:$0xff] }
 0x134   : > { %v2620_v41 = vpop.permute.xlu1 %2619  ;;  %v2615_v43 = vpop.permute.xlu0 %2614 }
 0x135   : > { %v4577_v47 = vadd.f32 %v4576_v37, %v4194_v38  ;;  %2929 = vperm.xlu1 %5031, %v1571_v33   ;;  %2924 = vperm.xlu0 %5030, %v1570_v34   ;;  %v4196_v54 = vmul.f32 %v2615_v43, %v1892_v39  ;;  %v4197_v62 = vmul.f32 %v2620_v41, %v1893_v42  ;;  %v1579_v33 = vld [vmem:[%s5104_s19 + $0x4d8] sm:$0xff]  ;;  %v1578_v34 = vld [vmem:[%s5104_s19 + $0x4d0] sm:$0xff] }
 0x136   : > { %v1900_v39 = vmul.f32 %v1132_v24, %v1132_v24  ;;  %v1901_v42 = vmul.f32 %v1133_v27, %v1133_v27  ;;  %v1140_v24 = vsub.f32 %v372_v12, %v756_v13  ;;  %v1141_v27 = vsub.f32 %v373_v17, %v757_v18  ;;  %v380_v12 = vld [vmem:[%s5170_s22 + $0x360] sm:$0xff]  ;;  %v381_v17 = vld [vmem:[%s5170_s22 + $0x368] sm:$0xff] }
 0x137   : > { %v4578_v53 = vadd.f32 %v4577_v47, %v4195_v46  ;;  %v764_v13 = vld [vmem:[%s5176_s25 + $0x360] sm:$0xff]  ;;  %v765_v18 = vld [vmem:[%s5176_s25 + $0x368] sm:$0xff] }
 0x138   : > { %v2630_v57 = vpop.permute.xlu1 %2629  ;;  %v2625_v58 = vpop.permute.xlu0 %2624 }
 0x139   : > { %v4579_v63 = vadd.f32 %v4578_v53, %v4196_v54  ;;  %2939 = vperm.xlu1 %5031, %v1573_v51   ;;  %2934 = vperm.xlu0 %5030, %v1572_v52   ;;  %v4198_v6 = vmul.f32 %v2625_v58, %v1894_v55  ;;  %v4199_v14 = vmul.f32 %v2630_v57, %v1895_v0  ;;  %v1581_v51 = vld [vmem:[%s5104_s19 + $0x4e8] sm:$0xff]  ;;  %v1580_v52 = vld [vmem:[%s5104_s19 + $0x4e0] sm:$0xff] }
 0x13a   : > { %v1902_v55 = vmul.f32 %v1134_v40, %v1134_v40  ;;  %v1903_v0 = vmul.f32 %v1135_v48, %v1135_v48  ;;  %v1142_v40 = vsub.f32 %v374_v28, %v758_v29  ;;  %v1143_v48 = vsub.f32 %v375_v35, %v759_v36  ;;  %v382_v28 = vld [vmem:[%s5170_s22 + $0x370] sm:$0xff]  ;;  %v383_v35 = vld [vmem:[%s5170_s22 + $0x378] sm:$0xff] }
 0x13b   : > { %v4580_v5 = vadd.f32 %v4579_v63, %v4197_v62  ;;  %v766_v29 = vld [vmem:[%s5176_s25 + $0x370] sm:$0xff]  ;;  %v767_v36 = vld [vmem:[%s5176_s25 + $0x378] sm:$0xff] }
 0x13c   : > { %v2640_v9 = vpop.permute.xlu1 %2639  ;;  %v2635_v11 = vpop.permute.xlu0 %2634 }
 0x13d   : > { %v4581_v15 = vadd.f32 %v4580_v5, %v4198_v6  ;;  %2949 = vperm.xlu1 %5031, %v1575_v1   ;;  %2944 = vperm.xlu0 %5030, %v1574_v2   ;;  %v4200_v22 = vmul.f32 %v2635_v11, %v1896_v7  ;;  %v4201_v30 = vmul.f32 %v2640_v9, %v1897_v10  ;;  %v1583_v1 = vld [vmem:[%s5104_s19 + $0x4f8] sm:$0xff]  ;;  %v1582_v2 = vld [vmem:[%s5104_s19 + $0x4f0] sm:$0xff] }
 0x13e   : > { %v1904_v7 = vmul.f32 %v1136_v56, %v1136_v56  ;;  %v1905_v10 = vmul.f32 %v1137_v59, %v1137_v59  ;;  %v1144_v56 = vsub.f32 %v376_v44, %v760_v45  ;;  %v1145_v59 = vsub.f32 %v377_v49, %v761_v50  ;;  %v384_v44 = vld [vmem:[%s5170_s22 + $0x380] sm:$0xff]  ;;  %v385_v49 = vld [vmem:[%s5170_s22 + $0x388] sm:$0xff] }
 0x13f   : > { %v4582_v21 = vadd.f32 %v4581_v15, %v4199_v14  ;;  %v768_v45 = vld [vmem:[%s5176_s25 + $0x380] sm:$0xff]  ;;  %v769_v50 = vld [vmem:[%s5176_s25 + $0x388] sm:$0xff] }
 0x140   : > { %v2650_v25 = vpop.permute.xlu1 %2649  ;;  %v2645_v26 = vpop.permute.xlu0 %2644 }
 0x141   : > { %v4583_v31 = vadd.f32 %v4582_v21, %v4200_v22  ;;  %2959 = vperm.xlu1 %5031, %v1577_v19   ;;  %2954 = vperm.xlu0 %5030, %v1576_v20   ;;  %v4202_v38 = vmul.f32 %v2645_v26, %v1898_v23  ;;  %v4203_v46 = vmul.f32 %v2650_v25, %v1899_v32  ;;  %v1585_v19 = vld [vmem:[%s5104_s19 + $0x508] sm:$0xff]  ;;  %v1584_v20 = vld [vmem:[%s5104_s19 + $0x500] sm:$0xff] }
 0x142   : > { %v1906_v23 = vmul.f32 %v1138_v8, %v1138_v8  ;;  %v1907_v32 = vmul.f32 %v1139_v16, %v1139_v16  ;;  %v1146_v8 = vsub.f32 %v378_v60, %v762_v61  ;;  %v1147_v16 = vsub.f32 %v379_v3, %v763_v4  ;;  %v386_v60 = vld [vmem:[%s5170_s22 + $0x390] sm:$0xff]  ;;  %v387_v3 = vld [vmem:[%s5170_s22 + $0x398] sm:$0xff] }
 0x143   : > { %v4584_v37 = vadd.f32 %v4583_v31, %v4201_v30  ;;  %v770_v61 = vld [vmem:[%s5176_s25 + $0x390] sm:$0xff]  ;;  %v771_v4 = vld [vmem:[%s5176_s25 + $0x398] sm:$0xff] }
 0x144   : > { %v2660_v41 = vpop.permute.xlu1 %2659  ;;  %v2655_v43 = vpop.permute.xlu0 %2654 }
 0x145   : > { %v4585_v47 = vadd.f32 %v4584_v37, %v4202_v38  ;;  %2969 = vperm.xlu1 %5031, %v1579_v33   ;;  %2964 = vperm.xlu0 %5030, %v1578_v34   ;;  %v4204_v54 = vmul.f32 %v2655_v43, %v1900_v39  ;;  %v4205_v62 = vmul.f32 %v2660_v41, %v1901_v42  ;;  %v1587_v33 = vld [vmem:[%s5104_s19 + $0x518] sm:$0xff]  ;;  %v1586_v34 = vld [vmem:[%s5104_s19 + $0x510] sm:$0xff] }
 0x146   : > { %v1908_v39 = vmul.f32 %v1140_v24, %v1140_v24  ;;  %v1909_v42 = vmul.f32 %v1141_v27, %v1141_v27  ;;  %v1148_v24 = vsub.f32 %v380_v12, %v764_v13  ;;  %v1149_v27 = vsub.f32 %v381_v17, %v765_v18  ;;  %v388_v12 = vld [vmem:[%s5170_s22 + $0x3a0] sm:$0xff]  ;;  %v389_v17 = vld [vmem:[%s5170_s22 + $0x3a8] sm:$0xff] }
 0x147   : > { %v4586_v53 = vadd.f32 %v4585_v47, %v4203_v46  ;;  %v772_v13 = vld [vmem:[%s5176_s25 + $0x3a0] sm:$0xff]  ;;  %v773_v18 = vld [vmem:[%s5176_s25 + $0x3a8] sm:$0xff] }
 0x148   : > { %v2670_v57 = vpop.permute.xlu1 %2669  ;;  %v2665_v58 = vpop.permute.xlu0 %2664 }
 0x149   : > { %v4587_v63 = vadd.f32 %v4586_v53, %v4204_v54  ;;  %2979 = vperm.xlu1 %5031, %v1581_v51   ;;  %2974 = vperm.xlu0 %5030, %v1580_v52   ;;  %v4206_v6 = vmul.f32 %v2665_v58, %v1902_v55  ;;  %v4207_v14 = vmul.f32 %v2670_v57, %v1903_v0  ;;  %v1589_v51 = vld [vmem:[%s5104_s19 + $0x528] sm:$0xff]  ;;  %v1588_v52 = vld [vmem:[%s5104_s19 + $0x520] sm:$0xff] }
 0x14a   : > { %v1910_v55 = vmul.f32 %v1142_v40, %v1142_v40  ;;  %v1911_v0 = vmul.f32 %v1143_v48, %v1143_v48  ;;  %v1150_v40 = vsub.f32 %v382_v28, %v766_v29  ;;  %v1151_v48 = vsub.f32 %v383_v35, %v767_v36  ;;  %v390_v28 = vld [vmem:[%s5170_s22 + $0x3b0] sm:$0xff]  ;;  %v391_v35 = vld [vmem:[%s5170_s22 + $0x3b8] sm:$0xff] }
 0x14b   : > { %v4588_v5 = vadd.f32 %v4587_v63, %v4205_v62  ;;  %v774_v29 = vld [vmem:[%s5176_s25 + $0x3b0] sm:$0xff]  ;;  %v775_v36 = vld [vmem:[%s5176_s25 + $0x3b8] sm:$0xff] }
 0x14c   : > { %v2680_v9 = vpop.permute.xlu1 %2679  ;;  %v2675_v11 = vpop.permute.xlu0 %2674 }
 0x14d   : > { %v4589_v15 = vadd.f32 %v4588_v5, %v4206_v6  ;;  %2989 = vperm.xlu1 %5031, %v1583_v1   ;;  %2984 = vperm.xlu0 %5030, %v1582_v2   ;;  %v4208_v22 = vmul.f32 %v2675_v11, %v1904_v7  ;;  %v4209_v30 = vmul.f32 %v2680_v9, %v1905_v10  ;;  %v1591_v1 = vld [vmem:[%s5104_s19 + $0x538] sm:$0xff]  ;;  %v1590_v2 = vld [vmem:[%s5104_s19 + $0x530] sm:$0xff] }
 0x14e   : > { %v1912_v7 = vmul.f32 %v1144_v56, %v1144_v56  ;;  %v1913_v10 = vmul.f32 %v1145_v59, %v1145_v59  ;;  %v1152_v56 = vsub.f32 %v384_v44, %v768_v45  ;;  %v1153_v59 = vsub.f32 %v385_v49, %v769_v50  ;;  %v392_v44 = vld [vmem:[%s5170_s22 + $0x3c0] sm:$0xff]  ;;  %v393_v49 = vld [vmem:[%s5170_s22 + $0x3c8] sm:$0xff] }
 0x14f   : > { %v4590_v21 = vadd.f32 %v4589_v15, %v4207_v14  ;;  %v776_v45 = vld [vmem:[%s5176_s25 + $0x3c0] sm:$0xff]  ;;  %v777_v50 = vld [vmem:[%s5176_s25 + $0x3c8] sm:$0xff] }
 0x150   : > { %v2690_v25 = vpop.permute.xlu1 %2689  ;;  %v2685_v26 = vpop.permute.xlu0 %2684 }
 0x151   : > { %v4591_v31 = vadd.f32 %v4590_v21, %v4208_v22  ;;  %2999 = vperm.xlu1 %5031, %v1585_v19   ;;  %2994 = vperm.xlu0 %5030, %v1584_v20   ;;  %v4210_v38 = vmul.f32 %v2685_v26, %v1906_v23  ;;  %v4211_v46 = vmul.f32 %v2690_v25, %v1907_v32  ;;  %v1593_v19 = vld [vmem:[%s5104_s19 + $0x548] sm:$0xff]  ;;  %v1592_v20 = vld [vmem:[%s5104_s19 + $0x540] sm:$0xff] }
 0x152   : > { %v1914_v23 = vmul.f32 %v1146_v8, %v1146_v8  ;;  %v1915_v32 = vmul.f32 %v1147_v16, %v1147_v16  ;;  %v1154_v8 = vsub.f32 %v386_v60, %v770_v61  ;;  %v1155_v16 = vsub.f32 %v387_v3, %v771_v4  ;;  %v394_v60 = vld [vmem:[%s5170_s22 + $0x3d0] sm:$0xff]  ;;  %v395_v3 = vld [vmem:[%s5170_s22 + $0x3d8] sm:$0xff] }
 0x153   : > { %v4592_v37 = vadd.f32 %v4591_v31, %v4209_v30  ;;  %v778_v61 = vld [vmem:[%s5176_s25 + $0x3d0] sm:$0xff]  ;;  %v779_v4 = vld [vmem:[%s5176_s25 + $0x3d8] sm:$0xff] }
 0x154   : > { %v2700_v41 = vpop.permute.xlu1 %2699  ;;  %v2695_v43 = vpop.permute.xlu0 %2694 }
 0x155   : > { %v4593_v47 = vadd.f32 %v4592_v37, %v4210_v38  ;;  %3009 = vperm.xlu1 %5031, %v1587_v33   ;;  %3004 = vperm.xlu0 %5030, %v1586_v34   ;;  %v4212_v54 = vmul.f32 %v2695_v43, %v1908_v39  ;;  %v4213_v62 = vmul.f32 %v2700_v41, %v1909_v42  ;;  %v1595_v33 = vld [vmem:[%s5104_s19 + $0x558] sm:$0xff]  ;;  %v1594_v34 = vld [vmem:[%s5104_s19 + $0x550] sm:$0xff] }
 0x156   : > { %v1916_v39 = vmul.f32 %v1148_v24, %v1148_v24  ;;  %v1917_v42 = vmul.f32 %v1149_v27, %v1149_v27  ;;  %v1156_v24 = vsub.f32 %v388_v12, %v772_v13  ;;  %v1157_v27 = vsub.f32 %v389_v17, %v773_v18  ;;  %v396_v12 = vld [vmem:[%s5170_s22 + $0x3e0] sm:$0xff]  ;;  %v397_v17 = vld [vmem:[%s5170_s22 + $0x3e8] sm:$0xff] }
 0x157   : > { %v4594_v53 = vadd.f32 %v4593_v47, %v4211_v46  ;;  %v780_v13 = vld [vmem:[%s5176_s25 + $0x3e0] sm:$0xff]  ;;  %v781_v18 = vld [vmem:[%s5176_s25 + $0x3e8] sm:$0xff] }
 0x158   : > { %v2710_v57 = vpop.permute.xlu1 %2709  ;;  %v2705_v58 = vpop.permute.xlu0 %2704 }
 0x159   : > { %v4595_v63 = vadd.f32 %v4594_v53, %v4212_v54  ;;  %3019 = vperm.xlu1 %5031, %v1589_v51   ;;  %3014 = vperm.xlu0 %5030, %v1588_v52   ;;  %v4214_v6 = vmul.f32 %v2705_v58, %v1910_v55  ;;  %v4215_v14 = vmul.f32 %v2710_v57, %v1911_v0  ;;  %v1597_v51 = vld [vmem:[%s5104_s19 + $0x568] sm:$0xff]  ;;  %v1596_v52 = vld [vmem:[%s5104_s19 + $0x560] sm:$0xff] }
 0x15a   : > { %v1918_v55 = vmul.f32 %v1150_v40, %v1150_v40  ;;  %v1919_v0 = vmul.f32 %v1151_v48, %v1151_v48  ;;  %v1158_v40 = vsub.f32 %v390_v28, %v774_v29  ;;  %v1159_v48 = vsub.f32 %v391_v35, %v775_v36  ;;  %v398_v28 = vld [vmem:[%s5170_s22 + $0x3f0] sm:$0xff]  ;;  %v399_v35 = vld [vmem:[%s5170_s22 + $0x3f8] sm:$0xff] }
 0x15b   : > { %v4596_v5 = vadd.f32 %v4595_v63, %v4213_v62  ;;  %v782_v29 = vld [vmem:[%s5176_s25 + $0x3f0] sm:$0xff]  ;;  %v783_v36 = vld [vmem:[%s5176_s25 + $0x3f8] sm:$0xff] }
 0x15c   : > { %v2720_v9 = vpop.permute.xlu1 %2719  ;;  %v2715_v11 = vpop.permute.xlu0 %2714 }
 0x15d   : > { %v4597_v15 = vadd.f32 %v4596_v5, %v4214_v6  ;;  %3029 = vperm.xlu1 %5031, %v1591_v1   ;;  %3024 = vperm.xlu0 %5030, %v1590_v2   ;;  %v4216_v22 = vmul.f32 %v2715_v11, %v1912_v7  ;;  %v4217_v30 = vmul.f32 %v2720_v9, %v1913_v10  ;;  %v1599_v1 = vld [vmem:[%s5104_s19 + $0x578] sm:$0xff]  ;;  %v1598_v2 = vld [vmem:[%s5104_s19 + $0x570] sm:$0xff] }
 0x15e   : > { %v1920_v7 = vmul.f32 %v1152_v56, %v1152_v56  ;;  %v1921_v10 = vmul.f32 %v1153_v59, %v1153_v59  ;;  %v1160_v56 = vsub.f32 %v392_v44, %v776_v45  ;;  %v1161_v59 = vsub.f32 %v393_v49, %v777_v50  ;;  %v400_v44 = vld [vmem:[%s5170_s22 + $0x400] sm:$0xff]  ;;  %v401_v49 = vld [vmem:[%s5170_s22 + $0x408] sm:$0xff] }
 0x15f   : > { %v4598_v21 = vadd.f32 %v4597_v15, %v4215_v14  ;;  %v784_v45 = vld [vmem:[%s5176_s25 + $0x400] sm:$0xff]  ;;  %v785_v50 = vld [vmem:[%s5176_s25 + $0x408] sm:$0xff] }
 0x160   : > { %v2730_v25 = vpop.permute.xlu1 %2729  ;;  %v2725_v26 = vpop.permute.xlu0 %2724 }
 0x161   : > { %v4599_v31 = vadd.f32 %v4598_v21, %v4216_v22  ;;  %3039 = vperm.xlu1 %5031, %v1593_v19   ;;  %3034 = vperm.xlu0 %5030, %v1592_v20   ;;  %v4218_v38 = vmul.f32 %v2725_v26, %v1914_v23  ;;  %v4219_v46 = vmul.f32 %v2730_v25, %v1915_v32  ;;  %v1601_v19 = vld [vmem:[%s5104_s19 + $0x588] sm:$0xff]  ;;  %v1600_v20 = vld [vmem:[%s5104_s19 + $0x580] sm:$0xff] }
 0x162   : > { %v1922_v23 = vmul.f32 %v1154_v8, %v1154_v8  ;;  %v1923_v32 = vmul.f32 %v1155_v16, %v1155_v16  ;;  %v1162_v8 = vsub.f32 %v394_v60, %v778_v61  ;;  %v1163_v16 = vsub.f32 %v395_v3, %v779_v4  ;;  %v402_v60 = vld [vmem:[%s5170_s22 + $0x410] sm:$0xff]  ;;  %v403_v3 = vld [vmem:[%s5170_s22 + $0x418] sm:$0xff] }
 0x163   : > { %v4600_v37 = vadd.f32 %v4599_v31, %v4217_v30  ;;  %v786_v61 = vld [vmem:[%s5176_s25 + $0x410] sm:$0xff]  ;;  %v787_v4 = vld [vmem:[%s5176_s25 + $0x418] sm:$0xff] }
 0x164   : > { %v2740_v41 = vpop.permute.xlu1 %2739  ;;  %v2735_v43 = vpop.permute.xlu0 %2734 }
 0x165   : > { %v4601_v47 = vadd.f32 %v4600_v37, %v4218_v38  ;;  %3049 = vperm.xlu1 %5031, %v1595_v33   ;;  %3044 = vperm.xlu0 %5030, %v1594_v34   ;;  %v4220_v54 = vmul.f32 %v2735_v43, %v1916_v39  ;;  %v4221_v62 = vmul.f32 %v2740_v41, %v1917_v42  ;;  %v1603_v33 = vld [vmem:[%s5104_s19 + $0x598] sm:$0xff]  ;;  %v1602_v34 = vld [vmem:[%s5104_s19 + $0x590] sm:$0xff] }
 0x166   : > { %v1924_v39 = vmul.f32 %v1156_v24, %v1156_v24  ;;  %v1925_v42 = vmul.f32 %v1157_v27, %v1157_v27  ;;  %v1164_v24 = vsub.f32 %v396_v12, %v780_v13  ;;  %v1165_v27 = vsub.f32 %v397_v17, %v781_v18  ;;  %v404_v12 = vld [vmem:[%s5170_s22 + $0x420] sm:$0xff]  ;;  %v405_v17 = vld [vmem:[%s5170_s22 + $0x428] sm:$0xff] }
 0x167   : > { %v4602_v53 = vadd.f32 %v4601_v47, %v4219_v46  ;;  %v788_v13 = vld [vmem:[%s5176_s25 + $0x420] sm:$0xff]  ;;  %v789_v18 = vld [vmem:[%s5176_s25 + $0x428] sm:$0xff] }
 0x168   : > { %v2750_v57 = vpop.permute.xlu1 %2749  ;;  %v2745_v58 = vpop.permute.xlu0 %2744 }
 0x169   : > { %v4603_v63 = vadd.f32 %v4602_v53, %v4220_v54  ;;  %3059 = vperm.xlu1 %5031, %v1597_v51   ;;  %3054 = vperm.xlu0 %5030, %v1596_v52   ;;  %v4222_v6 = vmul.f32 %v2745_v58, %v1918_v55  ;;  %v4223_v14 = vmul.f32 %v2750_v57, %v1919_v0  ;;  %v1605_v51 = vld [vmem:[%s5104_s19 + $0x5a8] sm:$0xff]  ;;  %v1604_v52 = vld [vmem:[%s5104_s19 + $0x5a0] sm:$0xff] }
 0x16a   : > { %v1926_v55 = vmul.f32 %v1158_v40, %v1158_v40  ;;  %v1927_v0 = vmul.f32 %v1159_v48, %v1159_v48  ;;  %v1166_v40 = vsub.f32 %v398_v28, %v782_v29  ;;  %v1167_v48 = vsub.f32 %v399_v35, %v783_v36  ;;  %v406_v28 = vld [vmem:[%s5170_s22 + $0x430] sm:$0xff]  ;;  %v407_v35 = vld [vmem:[%s5170_s22 + $0x438] sm:$0xff] }
 0x16b   : > { %v4604_v5 = vadd.f32 %v4603_v63, %v4221_v62  ;;  %v790_v29 = vld [vmem:[%s5176_s25 + $0x430] sm:$0xff]  ;;  %v791_v36 = vld [vmem:[%s5176_s25 + $0x438] sm:$0xff] }
 0x16c   : > { %v2760_v9 = vpop.permute.xlu1 %2759  ;;  %v2755_v11 = vpop.permute.xlu0 %2754 }
 0x16d   : > { %v4605_v15 = vadd.f32 %v4604_v5, %v4222_v6  ;;  %3069 = vperm.xlu1 %5031, %v1599_v1   ;;  %3064 = vperm.xlu0 %5030, %v1598_v2   ;;  %v4224_v22 = vmul.f32 %v2755_v11, %v1920_v7  ;;  %v4225_v30 = vmul.f32 %v2760_v9, %v1921_v10  ;;  %v1607_v1 = vld [vmem:[%s5104_s19 + $0x5b8] sm:$0xff]  ;;  %v1606_v2 = vld [vmem:[%s5104_s19 + $0x5b0] sm:$0xff] }
 0x16e   : > { %v1928_v7 = vmul.f32 %v1160_v56, %v1160_v56  ;;  %v1929_v10 = vmul.f32 %v1161_v59, %v1161_v59  ;;  %v1168_v56 = vsub.f32 %v400_v44, %v784_v45  ;;  %v1169_v59 = vsub.f32 %v401_v49, %v785_v50  ;;  %v408_v44 = vld [vmem:[%s5170_s22 + $0x440] sm:$0xff]  ;;  %v409_v49 = vld [vmem:[%s5170_s22 + $0x448] sm:$0xff] }
 0x16f   : > { %v4606_v21 = vadd.f32 %v4605_v15, %v4223_v14  ;;  %v792_v45 = vld [vmem:[%s5176_s25 + $0x440] sm:$0xff]  ;;  %v793_v50 = vld [vmem:[%s5176_s25 + $0x448] sm:$0xff] }
 0x170   : > { %v2770_v25 = vpop.permute.xlu1 %2769  ;;  %v2765_v26 = vpop.permute.xlu0 %2764 }
 0x171   : > { %v4607_v31 = vadd.f32 %v4606_v21, %v4224_v22  ;;  %3079 = vperm.xlu1 %5031, %v1601_v19   ;;  %3074 = vperm.xlu0 %5030, %v1600_v20   ;;  %v4226_v38 = vmul.f32 %v2765_v26, %v1922_v23  ;;  %v4227_v46 = vmul.f32 %v2770_v25, %v1923_v32  ;;  %v1609_v19 = vld [vmem:[%s5104_s19 + $0x5c8] sm:$0xff]  ;;  %v1608_v20 = vld [vmem:[%s5104_s19 + $0x5c0] sm:$0xff] }
 0x172   : > { %v1930_v23 = vmul.f32 %v1162_v8, %v1162_v8  ;;  %v1931_v32 = vmul.f32 %v1163_v16, %v1163_v16  ;;  %v1170_v8 = vsub.f32 %v402_v60, %v786_v61  ;;  %v1171_v16 = vsub.f32 %v403_v3, %v787_v4  ;;  %v410_v60 = vld [vmem:[%s5170_s22 + $0x450] sm:$0xff]  ;;  %v411_v3 = vld [vmem:[%s5170_s22 + $0x458] sm:$0xff] }
 0x173   : > { %v4608_v37 = vadd.f32 %v4607_v31, %v4225_v30  ;;  %v794_v61 = vld [vmem:[%s5176_s25 + $0x450] sm:$0xff]  ;;  %v795_v4 = vld [vmem:[%s5176_s25 + $0x458] sm:$0xff] }
 0x174   : > { %v2780_v41 = vpop.permute.xlu1 %2779  ;;  %v2775_v43 = vpop.permute.xlu0 %2774 }
 0x175   : > { %v4609_v47 = vadd.f32 %v4608_v37, %v4226_v38  ;;  %3089 = vperm.xlu1 %5031, %v1603_v33   ;;  %3084 = vperm.xlu0 %5030, %v1602_v34   ;;  %v4228_v54 = vmul.f32 %v2775_v43, %v1924_v39  ;;  %v4229_v62 = vmul.f32 %v2780_v41, %v1925_v42  ;;  %v1611_v33 = vld [vmem:[%s5104_s19 + $0x5d8] sm:$0xff]  ;;  %v1610_v34 = vld [vmem:[%s5104_s19 + $0x5d0] sm:$0xff] }
 0x176   : > { %v1932_v39 = vmul.f32 %v1164_v24, %v1164_v24  ;;  %v1933_v42 = vmul.f32 %v1165_v27, %v1165_v27  ;;  %v1172_v24 = vsub.f32 %v404_v12, %v788_v13  ;;  %v1173_v27 = vsub.f32 %v405_v17, %v789_v18  ;;  %v412_v12 = vld [vmem:[%s5170_s22 + $0x460] sm:$0xff]  ;;  %v413_v17 = vld [vmem:[%s5170_s22 + $0x468] sm:$0xff] }
 0x177   : > { %v4610_v53 = vadd.f32 %v4609_v47, %v4227_v46  ;;  %v796_v13 = vld [vmem:[%s5176_s25 + $0x460] sm:$0xff]  ;;  %v797_v18 = vld [vmem:[%s5176_s25 + $0x468] sm:$0xff] }
 0x178   : > { %v2790_v57 = vpop.permute.xlu1 %2789  ;;  %v2785_v58 = vpop.permute.xlu0 %2784 }
 0x179   : > { %v4611_v63 = vadd.f32 %v4610_v53, %v4228_v54  ;;  %3099 = vperm.xlu1 %5031, %v1605_v51   ;;  %3094 = vperm.xlu0 %5030, %v1604_v52   ;;  %v4230_v6 = vmul.f32 %v2785_v58, %v1926_v55  ;;  %v4231_v14 = vmul.f32 %v2790_v57, %v1927_v0  ;;  %v1613_v51 = vld [vmem:[%s5104_s19 + $0x5e8] sm:$0xff]  ;;  %v1612_v52 = vld [vmem:[%s5104_s19 + $0x5e0] sm:$0xff] }
 0x17a   : > { %v1934_v55 = vmul.f32 %v1166_v40, %v1166_v40  ;;  %v1935_v0 = vmul.f32 %v1167_v48, %v1167_v48  ;;  %v1174_v40 = vsub.f32 %v406_v28, %v790_v29  ;;  %v1175_v48 = vsub.f32 %v407_v35, %v791_v36  ;;  %v414_v28 = vld [vmem:[%s5170_s22 + $0x470] sm:$0xff]  ;;  %v415_v35 = vld [vmem:[%s5170_s22 + $0x478] sm:$0xff] }
 0x17b   : > { %v4612_v5 = vadd.f32 %v4611_v63, %v4229_v62  ;;  %v798_v29 = vld [vmem:[%s5176_s25 + $0x470] sm:$0xff]  ;;  %v799_v36 = vld [vmem:[%s5176_s25 + $0x478] sm:$0xff] }
 0x17c   : > { %v2800_v9 = vpop.permute.xlu1 %2799  ;;  %v2795_v11 = vpop.permute.xlu0 %2794 }
 0x17d   : > { %v4613_v15 = vadd.f32 %v4612_v5, %v4230_v6  ;;  %3109 = vperm.xlu1 %5031, %v1607_v1   ;;  %3104 = vperm.xlu0 %5030, %v1606_v2   ;;  %v4232_v22 = vmul.f32 %v2795_v11, %v1928_v7  ;;  %v4233_v30 = vmul.f32 %v2800_v9, %v1929_v10  ;;  %v1615_v1 = vld [vmem:[%s5104_s19 + $0x5f8] sm:$0xff]  ;;  %v1614_v2 = vld [vmem:[%s5104_s19 + $0x5f0] sm:$0xff] }
 0x17e   : > { %v1936_v7 = vmul.f32 %v1168_v56, %v1168_v56  ;;  %v1937_v10 = vmul.f32 %v1169_v59, %v1169_v59  ;;  %v1176_v56 = vsub.f32 %v408_v44, %v792_v45  ;;  %v1177_v59 = vsub.f32 %v409_v49, %v793_v50  ;;  %v416_v44 = vld [vmem:[%s5170_s22 + $0x480] sm:$0xff]  ;;  %v417_v49 = vld [vmem:[%s5170_s22 + $0x488] sm:$0xff] }
 0x17f   : > { %v4614_v21 = vadd.f32 %v4613_v15, %v4231_v14  ;;  %v800_v45 = vld [vmem:[%s5176_s25 + $0x480] sm:$0xff]  ;;  %v801_v50 = vld [vmem:[%s5176_s25 + $0x488] sm:$0xff] }
 0x180   : > { %v2810_v25 = vpop.permute.xlu1 %2809  ;;  %v2805_v26 = vpop.permute.xlu0 %2804 }
 0x181   : > { %v4615_v31 = vadd.f32 %v4614_v21, %v4232_v22  ;;  %3119 = vperm.xlu1 %5031, %v1609_v19   ;;  %3114 = vperm.xlu0 %5030, %v1608_v20   ;;  %v4234_v38 = vmul.f32 %v2805_v26, %v1930_v23  ;;  %v4235_v46 = vmul.f32 %v2810_v25, %v1931_v32  ;;  %v1617_v19 = vld [vmem:[%s5104_s19 + $0x608] sm:$0xff]  ;;  %v1616_v20 = vld [vmem:[%s5104_s19 + $0x600] sm:$0xff] }
 0x182   : > { %v1938_v23 = vmul.f32 %v1170_v8, %v1170_v8  ;;  %v1939_v32 = vmul.f32 %v1171_v16, %v1171_v16  ;;  %v1178_v8 = vsub.f32 %v410_v60, %v794_v61  ;;  %v1179_v16 = vsub.f32 %v411_v3, %v795_v4  ;;  %v418_v60 = vld [vmem:[%s5170_s22 + $0x490] sm:$0xff]  ;;  %v419_v3 = vld [vmem:[%s5170_s22 + $0x498] sm:$0xff] }
 0x183   : > { %v4616_v37 = vadd.f32 %v4615_v31, %v4233_v30  ;;  %v802_v61 = vld [vmem:[%s5176_s25 + $0x490] sm:$0xff]  ;;  %v803_v4 = vld [vmem:[%s5176_s25 + $0x498] sm:$0xff] }
 0x184   : > { %v2820_v41 = vpop.permute.xlu1 %2819  ;;  %v2815_v43 = vpop.permute.xlu0 %2814 }
 0x185   : > { %v4617_v47 = vadd.f32 %v4616_v37, %v4234_v38  ;;  %3129 = vperm.xlu1 %5031, %v1611_v33   ;;  %3124 = vperm.xlu0 %5030, %v1610_v34   ;;  %v4236_v54 = vmul.f32 %v2815_v43, %v1932_v39  ;;  %v4237_v62 = vmul.f32 %v2820_v41, %v1933_v42  ;;  %v1619_v33 = vld [vmem:[%s5104_s19 + $0x618] sm:$0xff]  ;;  %v1618_v34 = vld [vmem:[%s5104_s19 + $0x610] sm:$0xff] }
 0x186   : > { %v1940_v39 = vmul.f32 %v1172_v24, %v1172_v24  ;;  %v1941_v42 = vmul.f32 %v1173_v27, %v1173_v27  ;;  %v1180_v24 = vsub.f32 %v412_v12, %v796_v13  ;;  %v1181_v27 = vsub.f32 %v413_v17, %v797_v18  ;;  %v420_v12 = vld [vmem:[%s5170_s22 + $0x4a0] sm:$0xff]  ;;  %v421_v17 = vld [vmem:[%s5170_s22 + $0x4a8] sm:$0xff] }
 0x187   : > { %v4618_v53 = vadd.f32 %v4617_v47, %v4235_v46  ;;  %v804_v13 = vld [vmem:[%s5176_s25 + $0x4a0] sm:$0xff]  ;;  %v805_v18 = vld [vmem:[%s5176_s25 + $0x4a8] sm:$0xff] }
 0x188   : > { %v2830_v57 = vpop.permute.xlu1 %2829  ;;  %v2825_v58 = vpop.permute.xlu0 %2824 }
 0x189   : > { %v4619_v63 = vadd.f32 %v4618_v53, %v4236_v54  ;;  %3139 = vperm.xlu1 %5031, %v1613_v51   ;;  %3134 = vperm.xlu0 %5030, %v1612_v52   ;;  %v4238_v6 = vmul.f32 %v2825_v58, %v1934_v55  ;;  %v4239_v14 = vmul.f32 %v2830_v57, %v1935_v0  ;;  %v1621_v51 = vld [vmem:[%s5104_s19 + $0x628] sm:$0xff]  ;;  %v1620_v52 = vld [vmem:[%s5104_s19 + $0x620] sm:$0xff] }
 0x18a   : > { %v1942_v55 = vmul.f32 %v1174_v40, %v1174_v40  ;;  %v1943_v0 = vmul.f32 %v1175_v48, %v1175_v48  ;;  %v1182_v40 = vsub.f32 %v414_v28, %v798_v29  ;;  %v1183_v48 = vsub.f32 %v415_v35, %v799_v36  ;;  %v422_v28 = vld [vmem:[%s5170_s22 + $0x4b0] sm:$0xff]  ;;  %v423_v35 = vld [vmem:[%s5170_s22 + $0x4b8] sm:$0xff] }
 0x18b   : > { %v4620_v5 = vadd.f32 %v4619_v63, %v4237_v62  ;;  %v806_v29 = vld [vmem:[%s5176_s25 + $0x4b0] sm:$0xff]  ;;  %v807_v36 = vld [vmem:[%s5176_s25 + $0x4b8] sm:$0xff] }
 0x18c   : > { %v2840_v9 = vpop.permute.xlu1 %2839  ;;  %v2835_v11 = vpop.permute.xlu0 %2834 }
 0x18d   : > { %v4621_v15 = vadd.f32 %v4620_v5, %v4238_v6  ;;  %3149 = vperm.xlu1 %5031, %v1615_v1   ;;  %3144 = vperm.xlu0 %5030, %v1614_v2   ;;  %v4240_v22 = vmul.f32 %v2835_v11, %v1936_v7  ;;  %v4241_v30 = vmul.f32 %v2840_v9, %v1937_v10  ;;  %v1623_v1 = vld [vmem:[%s5104_s19 + $0x638] sm:$0xff]  ;;  %v1622_v2 = vld [vmem:[%s5104_s19 + $0x630] sm:$0xff] }
 0x18e   : > { %v1944_v7 = vmul.f32 %v1176_v56, %v1176_v56  ;;  %v1945_v10 = vmul.f32 %v1177_v59, %v1177_v59  ;;  %v1184_v56 = vsub.f32 %v416_v44, %v800_v45  ;;  %v1185_v59 = vsub.f32 %v417_v49, %v801_v50  ;;  %v424_v44 = vld [vmem:[%s5170_s22 + $0x4c0] sm:$0xff]  ;;  %v425_v49 = vld [vmem:[%s5170_s22 + $0x4c8] sm:$0xff] }
 0x18f   : > { %v4622_v21 = vadd.f32 %v4621_v15, %v4239_v14  ;;  %v808_v45 = vld [vmem:[%s5176_s25 + $0x4c0] sm:$0xff]  ;;  %v809_v50 = vld [vmem:[%s5176_s25 + $0x4c8] sm:$0xff] }
 0x190   : > { %v2850_v25 = vpop.permute.xlu1 %2849  ;;  %v2845_v26 = vpop.permute.xlu0 %2844 }
 0x191   : > { %v4623_v31 = vadd.f32 %v4622_v21, %v4240_v22  ;;  %3159 = vperm.xlu1 %5031, %v1617_v19   ;;  %3154 = vperm.xlu0 %5030, %v1616_v20   ;;  %v4242_v38 = vmul.f32 %v2845_v26, %v1938_v23  ;;  %v4243_v46 = vmul.f32 %v2850_v25, %v1939_v32  ;;  %v1625_v19 = vld [vmem:[%s5104_s19 + $0x648] sm:$0xff]  ;;  %v1624_v20 = vld [vmem:[%s5104_s19 + $0x640] sm:$0xff] }
 0x192   : > { %v1946_v23 = vmul.f32 %v1178_v8, %v1178_v8  ;;  %v1947_v32 = vmul.f32 %v1179_v16, %v1179_v16  ;;  %v1186_v8 = vsub.f32 %v418_v60, %v802_v61  ;;  %v1187_v16 = vsub.f32 %v419_v3, %v803_v4  ;;  %v426_v60 = vld [vmem:[%s5170_s22 + $0x4d0] sm:$0xff]  ;;  %v427_v3 = vld [vmem:[%s5170_s22 + $0x4d8] sm:$0xff] }
 0x193   : > { %v4624_v37 = vadd.f32 %v4623_v31, %v4241_v30  ;;  %v810_v61 = vld [vmem:[%s5176_s25 + $0x4d0] sm:$0xff]  ;;  %v811_v4 = vld [vmem:[%s5176_s25 + $0x4d8] sm:$0xff] }
 0x194   : > { %v2860_v41 = vpop.permute.xlu1 %2859  ;;  %v2855_v43 = vpop.permute.xlu0 %2854 }
 0x195   : > { %v4625_v47 = vadd.f32 %v4624_v37, %v4242_v38  ;;  %3169 = vperm.xlu1 %5031, %v1619_v33   ;;  %3164 = vperm.xlu0 %5030, %v1618_v34   ;;  %v4244_v54 = vmul.f32 %v2855_v43, %v1940_v39  ;;  %v4245_v62 = vmul.f32 %v2860_v41, %v1941_v42  ;;  %v1627_v33 = vld [vmem:[%s5104_s19 + $0x658] sm:$0xff]  ;;  %v1626_v34 = vld [vmem:[%s5104_s19 + $0x650] sm:$0xff] }
 0x196   : > { %v1948_v39 = vmul.f32 %v1180_v24, %v1180_v24  ;;  %v1949_v42 = vmul.f32 %v1181_v27, %v1181_v27  ;;  %v1188_v24 = vsub.f32 %v420_v12, %v804_v13  ;;  %v1189_v27 = vsub.f32 %v421_v17, %v805_v18  ;;  %v428_v12 = vld [vmem:[%s5170_s22 + $0x4e0] sm:$0xff]  ;;  %v429_v17 = vld [vmem:[%s5170_s22 + $0x4e8] sm:$0xff] }
 0x197   : > { %v4626_v53 = vadd.f32 %v4625_v47, %v4243_v46  ;;  %v812_v13 = vld [vmem:[%s5176_s25 + $0x4e0] sm:$0xff]  ;;  %v813_v18 = vld [vmem:[%s5176_s25 + $0x4e8] sm:$0xff] }
 0x198   : > { %v2870_v57 = vpop.permute.xlu1 %2869  ;;  %v2865_v58 = vpop.permute.xlu0 %2864 }
 0x199   : > { %v4627_v63 = vadd.f32 %v4626_v53, %v4244_v54  ;;  %3179 = vperm.xlu1 %5031, %v1621_v51   ;;  %3174 = vperm.xlu0 %5030, %v1620_v52   ;;  %v4246_v6 = vmul.f32 %v2865_v58, %v1942_v55  ;;  %v4247_v14 = vmul.f32 %v2870_v57, %v1943_v0  ;;  %v1629_v51 = vld [vmem:[%s5104_s19 + $0x668] sm:$0xff]  ;;  %v1628_v52 = vld [vmem:[%s5104_s19 + $0x660] sm:$0xff] }
 0x19a   : > { %v1950_v55 = vmul.f32 %v1182_v40, %v1182_v40  ;;  %v1951_v0 = vmul.f32 %v1183_v48, %v1183_v48  ;;  %v1190_v40 = vsub.f32 %v422_v28, %v806_v29  ;;  %v1191_v48 = vsub.f32 %v423_v35, %v807_v36  ;;  %v430_v28 = vld [vmem:[%s5170_s22 + $0x4f0] sm:$0xff]  ;;  %v431_v35 = vld [vmem:[%s5170_s22 + $0x4f8] sm:$0xff] }
 0x19b   : > { %v4628_v5 = vadd.f32 %v4627_v63, %v4245_v62  ;;  %v814_v29 = vld [vmem:[%s5176_s25 + $0x4f0] sm:$0xff]  ;;  %v815_v36 = vld [vmem:[%s5176_s25 + $0x4f8] sm:$0xff] }
 0x19c   : > { %v2880_v9 = vpop.permute.xlu1 %2879  ;;  %v2875_v11 = vpop.permute.xlu0 %2874 }
 0x19d   : > { %v4629_v15 = vadd.f32 %v4628_v5, %v4246_v6  ;;  %3189 = vperm.xlu1 %5031, %v1623_v1   ;;  %3184 = vperm.xlu0 %5030, %v1622_v2   ;;  %v4248_v22 = vmul.f32 %v2875_v11, %v1944_v7  ;;  %v4249_v30 = vmul.f32 %v2880_v9, %v1945_v10  ;;  %v1631_v1 = vld [vmem:[%s5104_s19 + $0x678] sm:$0xff]  ;;  %v1630_v2 = vld [vmem:[%s5104_s19 + $0x670] sm:$0xff] }
 0x19e   : > { %v1952_v7 = vmul.f32 %v1184_v56, %v1184_v56  ;;  %v1953_v10 = vmul.f32 %v1185_v59, %v1185_v59  ;;  %v1192_v56 = vsub.f32 %v424_v44, %v808_v45  ;;  %v1193_v59 = vsub.f32 %v425_v49, %v809_v50  ;;  %v432_v44 = vld [vmem:[%s5170_s22 + $0x500] sm:$0xff]  ;;  %v433_v49 = vld [vmem:[%s5170_s22 + $0x508] sm:$0xff] }
 0x19f   : > { %v4630_v21 = vadd.f32 %v4629_v15, %v4247_v14  ;;  %v816_v45 = vld [vmem:[%s5176_s25 + $0x500] sm:$0xff]  ;;  %v817_v50 = vld [vmem:[%s5176_s25 + $0x508] sm:$0xff] }
 0x1a0   : > { %v2890_v25 = vpop.permute.xlu1 %2889  ;;  %v2885_v26 = vpop.permute.xlu0 %2884 }
 0x1a1   : > { %v4631_v31 = vadd.f32 %v4630_v21, %v4248_v22  ;;  %3199 = vperm.xlu1 %5031, %v1625_v19   ;;  %3194 = vperm.xlu0 %5030, %v1624_v20   ;;  %v4250_v38 = vmul.f32 %v2885_v26, %v1946_v23  ;;  %v4251_v46 = vmul.f32 %v2890_v25, %v1947_v32  ;;  %v1633_v19 = vld [vmem:[%s5104_s19 + $0x688] sm:$0xff]  ;;  %v1632_v20 = vld [vmem:[%s5104_s19 + $0x680] sm:$0xff] }
 0x1a2   : > { %v1954_v23 = vmul.f32 %v1186_v8, %v1186_v8  ;;  %v1955_v32 = vmul.f32 %v1187_v16, %v1187_v16  ;;  %v1194_v8 = vsub.f32 %v426_v60, %v810_v61  ;;  %v1195_v16 = vsub.f32 %v427_v3, %v811_v4  ;;  %v434_v60 = vld [vmem:[%s5170_s22 + $0x510] sm:$0xff]  ;;  %v435_v3 = vld [vmem:[%s5170_s22 + $0x518] sm:$0xff] }
 0x1a3   : > { %v4632_v37 = vadd.f32 %v4631_v31, %v4249_v30  ;;  %v818_v61 = vld [vmem:[%s5176_s25 + $0x510] sm:$0xff]  ;;  %v819_v4 = vld [vmem:[%s5176_s25 + $0x518] sm:$0xff] }
 0x1a4   : > { %v2900_v41 = vpop.permute.xlu1 %2899  ;;  %v2895_v43 = vpop.permute.xlu0 %2894 }
 0x1a5   : > { %v4633_v47 = vadd.f32 %v4632_v37, %v4250_v38  ;;  %3209 = vperm.xlu1 %5031, %v1627_v33   ;;  %3204 = vperm.xlu0 %5030, %v1626_v34   ;;  %v4252_v54 = vmul.f32 %v2895_v43, %v1948_v39  ;;  %v4253_v62 = vmul.f32 %v2900_v41, %v1949_v42  ;;  %v1635_v33 = vld [vmem:[%s5104_s19 + $0x698] sm:$0xff]  ;;  %v1634_v34 = vld [vmem:[%s5104_s19 + $0x690] sm:$0xff] }
 0x1a6   : > { %v1956_v39 = vmul.f32 %v1188_v24, %v1188_v24  ;;  %v1957_v42 = vmul.f32 %v1189_v27, %v1189_v27  ;;  %v1196_v24 = vsub.f32 %v428_v12, %v812_v13  ;;  %v1197_v27 = vsub.f32 %v429_v17, %v813_v18  ;;  %v436_v12 = vld [vmem:[%s5170_s22 + $0x520] sm:$0xff]  ;;  %v437_v17 = vld [vmem:[%s5170_s22 + $0x528] sm:$0xff] }
 0x1a7   : > { %v4634_v53 = vadd.f32 %v4633_v47, %v4251_v46  ;;  %v820_v13 = vld [vmem:[%s5176_s25 + $0x520] sm:$0xff]  ;;  %v821_v18 = vld [vmem:[%s5176_s25 + $0x528] sm:$0xff] }
 0x1a8   : > { %v2910_v57 = vpop.permute.xlu1 %2909  ;;  %v2905_v58 = vpop.permute.xlu0 %2904 }
 0x1a9   : > { %v4635_v63 = vadd.f32 %v4634_v53, %v4252_v54  ;;  %3219 = vperm.xlu1 %5031, %v1629_v51   ;;  %3214 = vperm.xlu0 %5030, %v1628_v52   ;;  %v4254_v6 = vmul.f32 %v2905_v58, %v1950_v55  ;;  %v4255_v14 = vmul.f32 %v2910_v57, %v1951_v0  ;;  %v1637_v51 = vld [vmem:[%s5104_s19 + $0x6a8] sm:$0xff]  ;;  %v1636_v52 = vld [vmem:[%s5104_s19 + $0x6a0] sm:$0xff] }
 0x1aa   : > { %v1958_v55 = vmul.f32 %v1190_v40, %v1190_v40  ;;  %v1959_v0 = vmul.f32 %v1191_v48, %v1191_v48  ;;  %v1198_v40 = vsub.f32 %v430_v28, %v814_v29  ;;  %v1199_v48 = vsub.f32 %v431_v35, %v815_v36  ;;  %v438_v28 = vld [vmem:[%s5170_s22 + $0x530] sm:$0xff]  ;;  %v439_v35 = vld [vmem:[%s5170_s22 + $0x538] sm:$0xff] }
 0x1ab   : > { %v4636_v5 = vadd.f32 %v4635_v63, %v4253_v62  ;;  %v822_v29 = vld [vmem:[%s5176_s25 + $0x530] sm:$0xff]  ;;  %v823_v36 = vld [vmem:[%s5176_s25 + $0x538] sm:$0xff] }
 0x1ac   : > { %v2920_v9 = vpop.permute.xlu1 %2919  ;;  %v2915_v11 = vpop.permute.xlu0 %2914 }
 0x1ad   : > { %v4637_v15 = vadd.f32 %v4636_v5, %v4254_v6  ;;  %3229 = vperm.xlu1 %5031, %v1631_v1   ;;  %3224 = vperm.xlu0 %5030, %v1630_v2   ;;  %v4256_v22 = vmul.f32 %v2915_v11, %v1952_v7  ;;  %v4257_v30 = vmul.f32 %v2920_v9, %v1953_v10  ;;  %v1639_v1 = vld [vmem:[%s5104_s19 + $0x6b8] sm:$0xff]  ;;  %v1638_v2 = vld [vmem:[%s5104_s19 + $0x6b0] sm:$0xff] }
 0x1ae   : > { %v1960_v7 = vmul.f32 %v1192_v56, %v1192_v56  ;;  %v1961_v10 = vmul.f32 %v1193_v59, %v1193_v59  ;;  %v1200_v56 = vsub.f32 %v432_v44, %v816_v45  ;;  %v1201_v59 = vsub.f32 %v433_v49, %v817_v50  ;;  %v440_v44 = vld [vmem:[%s5170_s22 + $0x540] sm:$0xff]  ;;  %v441_v49 = vld [vmem:[%s5170_s22 + $0x548] sm:$0xff] }
 0x1af   : > { %v4638_v21 = vadd.f32 %v4637_v15, %v4255_v14  ;;  %v824_v45 = vld [vmem:[%s5176_s25 + $0x540] sm:$0xff]  ;;  %v825_v50 = vld [vmem:[%s5176_s25 + $0x548] sm:$0xff] }
 0x1b0   : > { %v2930_v25 = vpop.permute.xlu1 %2929  ;;  %v2925_v26 = vpop.permute.xlu0 %2924 }
 0x1b1   : > { %v4639_v31 = vadd.f32 %v4638_v21, %v4256_v22  ;;  %3239 = vperm.xlu1 %5031, %v1633_v19   ;;  %3234 = vperm.xlu0 %5030, %v1632_v20   ;;  %v4258_v38 = vmul.f32 %v2925_v26, %v1954_v23  ;;  %v4259_v46 = vmul.f32 %v2930_v25, %v1955_v32  ;;  %v1641_v19 = vld [vmem:[%s5104_s19 + $0x6c8] sm:$0xff]  ;;  %v1640_v20 = vld [vmem:[%s5104_s19 + $0x6c0] sm:$0xff] }
 0x1b2   : > { %v1962_v23 = vmul.f32 %v1194_v8, %v1194_v8  ;;  %v1963_v32 = vmul.f32 %v1195_v16, %v1195_v16  ;;  %v1202_v8 = vsub.f32 %v434_v60, %v818_v61  ;;  %v1203_v16 = vsub.f32 %v435_v3, %v819_v4  ;;  %v442_v60 = vld [vmem:[%s5170_s22 + $0x550] sm:$0xff]  ;;  %v443_v3 = vld [vmem:[%s5170_s22 + $0x558] sm:$0xff] }
 0x1b3   : > { %v4640_v37 = vadd.f32 %v4639_v31, %v4257_v30  ;;  %v826_v61 = vld [vmem:[%s5176_s25 + $0x550] sm:$0xff]  ;;  %v827_v4 = vld [vmem:[%s5176_s25 + $0x558] sm:$0xff] }
 0x1b4   : > { %v2940_v41 = vpop.permute.xlu1 %2939  ;;  %v2935_v43 = vpop.permute.xlu0 %2934 }
 0x1b5   : > { %v4641_v47 = vadd.f32 %v4640_v37, %v4258_v38  ;;  %3249 = vperm.xlu1 %5031, %v1635_v33   ;;  %3244 = vperm.xlu0 %5030, %v1634_v34   ;;  %v4260_v54 = vmul.f32 %v2935_v43, %v1956_v39  ;;  %v4261_v62 = vmul.f32 %v2940_v41, %v1957_v42  ;;  %v1643_v33 = vld [vmem:[%s5104_s19 + $0x6d8] sm:$0xff]  ;;  %v1642_v34 = vld [vmem:[%s5104_s19 + $0x6d0] sm:$0xff] }
 0x1b6   : > { %v1964_v39 = vmul.f32 %v1196_v24, %v1196_v24  ;;  %v1965_v42 = vmul.f32 %v1197_v27, %v1197_v27  ;;  %v1204_v24 = vsub.f32 %v436_v12, %v820_v13  ;;  %v1205_v27 = vsub.f32 %v437_v17, %v821_v18  ;;  %v444_v12 = vld [vmem:[%s5170_s22 + $0x560] sm:$0xff]  ;;  %v445_v17 = vld [vmem:[%s5170_s22 + $0x568] sm:$0xff] }
 0x1b7   : > { %v4642_v53 = vadd.f32 %v4641_v47, %v4259_v46  ;;  %v828_v13 = vld [vmem:[%s5176_s25 + $0x560] sm:$0xff]  ;;  %v829_v18 = vld [vmem:[%s5176_s25 + $0x568] sm:$0xff] }
 0x1b8   : > { %v2950_v57 = vpop.permute.xlu1 %2949  ;;  %v2945_v58 = vpop.permute.xlu0 %2944 }
 0x1b9   : > { %v4643_v63 = vadd.f32 %v4642_v53, %v4260_v54  ;;  %3259 = vperm.xlu1 %5031, %v1637_v51   ;;  %3254 = vperm.xlu0 %5030, %v1636_v52   ;;  %v4262_v6 = vmul.f32 %v2945_v58, %v1958_v55  ;;  %v4263_v14 = vmul.f32 %v2950_v57, %v1959_v0  ;;  %v1645_v51 = vld [vmem:[%s5104_s19 + $0x6e8] sm:$0xff]  ;;  %v1644_v52 = vld [vmem:[%s5104_s19 + $0x6e0] sm:$0xff] }
 0x1ba   : > { %v1966_v55 = vmul.f32 %v1198_v40, %v1198_v40  ;;  %v1967_v0 = vmul.f32 %v1199_v48, %v1199_v48  ;;  %v1206_v40 = vsub.f32 %v438_v28, %v822_v29  ;;  %v1207_v48 = vsub.f32 %v439_v35, %v823_v36  ;;  %v446_v28 = vld [vmem:[%s5170_s22 + $0x570] sm:$0xff]  ;;  %v447_v35 = vld [vmem:[%s5170_s22 + $0x578] sm:$0xff] }
 0x1bb   : > { %v4644_v5 = vadd.f32 %v4643_v63, %v4261_v62  ;;  %v830_v29 = vld [vmem:[%s5176_s25 + $0x570] sm:$0xff]  ;;  %v831_v36 = vld [vmem:[%s5176_s25 + $0x578] sm:$0xff] }
 0x1bc   : > { %v2960_v9 = vpop.permute.xlu1 %2959  ;;  %v2955_v11 = vpop.permute.xlu0 %2954 }
 0x1bd   : > { %v4645_v15 = vadd.f32 %v4644_v5, %v4262_v6  ;;  %3269 = vperm.xlu1 %5031, %v1639_v1   ;;  %3264 = vperm.xlu0 %5030, %v1638_v2   ;;  %v4264_v22 = vmul.f32 %v2955_v11, %v1960_v7  ;;  %v4265_v30 = vmul.f32 %v2960_v9, %v1961_v10  ;;  %v1647_v1 = vld [vmem:[%s5104_s19 + $0x6f8] sm:$0xff]  ;;  %v1646_v2 = vld [vmem:[%s5104_s19 + $0x6f0] sm:$0xff] }
 0x1be   : > { %v1968_v7 = vmul.f32 %v1200_v56, %v1200_v56  ;;  %v1969_v10 = vmul.f32 %v1201_v59, %v1201_v59  ;;  %v1208_v56 = vsub.f32 %v440_v44, %v824_v45  ;;  %v1209_v59 = vsub.f32 %v441_v49, %v825_v50  ;;  %v448_v44 = vld [vmem:[%s5170_s22 + $0x580] sm:$0xff]  ;;  %v449_v49 = vld [vmem:[%s5170_s22 + $0x588] sm:$0xff] }
 0x1bf   : > { %v4646_v21 = vadd.f32 %v4645_v15, %v4263_v14  ;;  %v832_v45 = vld [vmem:[%s5176_s25 + $0x580] sm:$0xff]  ;;  %v833_v50 = vld [vmem:[%s5176_s25 + $0x588] sm:$0xff] }
 0x1c0   : > { %v2970_v25 = vpop.permute.xlu1 %2969  ;;  %v2965_v26 = vpop.permute.xlu0 %2964 }
 0x1c1   : > { %v4647_v31 = vadd.f32 %v4646_v21, %v4264_v22  ;;  %3279 = vperm.xlu1 %5031, %v1641_v19   ;;  %3274 = vperm.xlu0 %5030, %v1640_v20   ;;  %v4266_v38 = vmul.f32 %v2965_v26, %v1962_v23  ;;  %v4267_v46 = vmul.f32 %v2970_v25, %v1963_v32  ;;  %v1649_v19 = vld [vmem:[%s5104_s19 + $0x708] sm:$0xff]  ;;  %v1648_v20 = vld [vmem:[%s5104_s19 + $0x700] sm:$0xff] }
 0x1c2   : > { %v1970_v23 = vmul.f32 %v1202_v8, %v1202_v8  ;;  %v1971_v32 = vmul.f32 %v1203_v16, %v1203_v16  ;;  %v1210_v8 = vsub.f32 %v442_v60, %v826_v61  ;;  %v1211_v16 = vsub.f32 %v443_v3, %v827_v4  ;;  %v450_v60 = vld [vmem:[%s5170_s22 + $0x590] sm:$0xff]  ;;  %v451_v3 = vld [vmem:[%s5170_s22 + $0x598] sm:$0xff] }
 0x1c3   : > { %v4648_v37 = vadd.f32 %v4647_v31, %v4265_v30  ;;  %v834_v61 = vld [vmem:[%s5176_s25 + $0x590] sm:$0xff]  ;;  %v835_v4 = vld [vmem:[%s5176_s25 + $0x598] sm:$0xff] }
 0x1c4   : > { %v2980_v41 = vpop.permute.xlu1 %2979  ;;  %v2975_v43 = vpop.permute.xlu0 %2974 }
 0x1c5   : > { %v4649_v47 = vadd.f32 %v4648_v37, %v4266_v38  ;;  %3289 = vperm.xlu1 %5031, %v1643_v33   ;;  %3284 = vperm.xlu0 %5030, %v1642_v34   ;;  %v4268_v54 = vmul.f32 %v2975_v43, %v1964_v39  ;;  %v4269_v62 = vmul.f32 %v2980_v41, %v1965_v42  ;;  %v1651_v33 = vld [vmem:[%s5104_s19 + $0x718] sm:$0xff]  ;;  %v1650_v34 = vld [vmem:[%s5104_s19 + $0x710] sm:$0xff] }
 0x1c6   : > { %v1972_v39 = vmul.f32 %v1204_v24, %v1204_v24  ;;  %v1973_v42 = vmul.f32 %v1205_v27, %v1205_v27  ;;  %v1212_v24 = vsub.f32 %v444_v12, %v828_v13  ;;  %v1213_v27 = vsub.f32 %v445_v17, %v829_v18  ;;  %v452_v12 = vld [vmem:[%s5170_s22 + $0x5a0] sm:$0xff]  ;;  %v453_v17 = vld [vmem:[%s5170_s22 + $0x5a8] sm:$0xff] }
 0x1c7   : > { %v4650_v53 = vadd.f32 %v4649_v47, %v4267_v46  ;;  %v836_v13 = vld [vmem:[%s5176_s25 + $0x5a0] sm:$0xff]  ;;  %v837_v18 = vld [vmem:[%s5176_s25 + $0x5a8] sm:$0xff] }
 0x1c8   : > { %v2990_v57 = vpop.permute.xlu1 %2989  ;;  %v2985_v58 = vpop.permute.xlu0 %2984 }
 0x1c9   : > { %v4651_v63 = vadd.f32 %v4650_v53, %v4268_v54  ;;  %3299 = vperm.xlu1 %5031, %v1645_v51   ;;  %3294 = vperm.xlu0 %5030, %v1644_v52   ;;  %v4270_v6 = vmul.f32 %v2985_v58, %v1966_v55  ;;  %v4271_v14 = vmul.f32 %v2990_v57, %v1967_v0  ;;  %v1653_v51 = vld [vmem:[%s5104_s19 + $0x728] sm:$0xff]  ;;  %v1652_v52 = vld [vmem:[%s5104_s19 + $0x720] sm:$0xff] }
 0x1ca   : > { %v1974_v55 = vmul.f32 %v1206_v40, %v1206_v40  ;;  %v1975_v0 = vmul.f32 %v1207_v48, %v1207_v48  ;;  %v1214_v40 = vsub.f32 %v446_v28, %v830_v29  ;;  %v1215_v48 = vsub.f32 %v447_v35, %v831_v36  ;;  %v454_v28 = vld [vmem:[%s5170_s22 + $0x5b0] sm:$0xff]  ;;  %v455_v35 = vld [vmem:[%s5170_s22 + $0x5b8] sm:$0xff] }
 0x1cb   : > { %v4652_v5 = vadd.f32 %v4651_v63, %v4269_v62  ;;  %v838_v29 = vld [vmem:[%s5176_s25 + $0x5b0] sm:$0xff]  ;;  %v839_v36 = vld [vmem:[%s5176_s25 + $0x5b8] sm:$0xff] }
 0x1cc   : > { %v3000_v9 = vpop.permute.xlu1 %2999  ;;  %v2995_v11 = vpop.permute.xlu0 %2994 }
 0x1cd   : > { %v4653_v15 = vadd.f32 %v4652_v5, %v4270_v6  ;;  %3309 = vperm.xlu1 %5031, %v1647_v1   ;;  %3304 = vperm.xlu0 %5030, %v1646_v2   ;;  %v4272_v22 = vmul.f32 %v2995_v11, %v1968_v7  ;;  %v4273_v30 = vmul.f32 %v3000_v9, %v1969_v10  ;;  %v1655_v1 = vld [vmem:[%s5104_s19 + $0x738] sm:$0xff]  ;;  %v1654_v2 = vld [vmem:[%s5104_s19 + $0x730] sm:$0xff] }
 0x1ce   : > { %v1976_v7 = vmul.f32 %v1208_v56, %v1208_v56  ;;  %v1977_v10 = vmul.f32 %v1209_v59, %v1209_v59  ;;  %v1216_v56 = vsub.f32 %v448_v44, %v832_v45  ;;  %v1217_v59 = vsub.f32 %v449_v49, %v833_v50  ;;  %v456_v44 = vld [vmem:[%s5170_s22 + $0x5c0] sm:$0xff]  ;;  %v457_v49 = vld [vmem:[%s5170_s22 + $0x5c8] sm:$0xff] }
 0x1cf   : > { %v4654_v21 = vadd.f32 %v4653_v15, %v4271_v14  ;;  %v840_v45 = vld [vmem:[%s5176_s25 + $0x5c0] sm:$0xff]  ;;  %v841_v50 = vld [vmem:[%s5176_s25 + $0x5c8] sm:$0xff] }
 0x1d0   : > { %v3010_v25 = vpop.permute.xlu1 %3009  ;;  %v3005_v26 = vpop.permute.xlu0 %3004 }
 0x1d1   : > { %v4655_v31 = vadd.f32 %v4654_v21, %v4272_v22  ;;  %3319 = vperm.xlu1 %5031, %v1649_v19   ;;  %3314 = vperm.xlu0 %5030, %v1648_v20   ;;  %v4274_v38 = vmul.f32 %v3005_v26, %v1970_v23  ;;  %v4275_v46 = vmul.f32 %v3010_v25, %v1971_v32  ;;  %v1657_v19 = vld [vmem:[%s5104_s19 + $0x748] sm:$0xff]  ;;  %v1656_v20 = vld [vmem:[%s5104_s19 + $0x740] sm:$0xff] }
 0x1d2   : > { %v1978_v23 = vmul.f32 %v1210_v8, %v1210_v8  ;;  %v1979_v32 = vmul.f32 %v1211_v16, %v1211_v16  ;;  %v1218_v8 = vsub.f32 %v450_v60, %v834_v61  ;;  %v1219_v16 = vsub.f32 %v451_v3, %v835_v4  ;;  %v458_v60 = vld [vmem:[%s5170_s22 + $0x5d0] sm:$0xff]  ;;  %v459_v3 = vld [vmem:[%s5170_s22 + $0x5d8] sm:$0xff] }
 0x1d3   : > { %v4656_v37 = vadd.f32 %v4655_v31, %v4273_v30  ;;  %v842_v61 = vld [vmem:[%s5176_s25 + $0x5d0] sm:$0xff]  ;;  %v843_v4 = vld [vmem:[%s5176_s25 + $0x5d8] sm:$0xff] }
 0x1d4   : > { %v3020_v41 = vpop.permute.xlu1 %3019  ;;  %v3015_v43 = vpop.permute.xlu0 %3014 }
 0x1d5   : > { %v4657_v47 = vadd.f32 %v4656_v37, %v4274_v38  ;;  %3329 = vperm.xlu1 %5031, %v1651_v33   ;;  %3324 = vperm.xlu0 %5030, %v1650_v34   ;;  %v4276_v54 = vmul.f32 %v3015_v43, %v1972_v39  ;;  %v4277_v62 = vmul.f32 %v3020_v41, %v1973_v42  ;;  %v1659_v33 = vld [vmem:[%s5104_s19 + $0x758] sm:$0xff]  ;;  %v1658_v34 = vld [vmem:[%s5104_s19 + $0x750] sm:$0xff] }
 0x1d6   : > { %v1980_v39 = vmul.f32 %v1212_v24, %v1212_v24  ;;  %v1981_v42 = vmul.f32 %v1213_v27, %v1213_v27  ;;  %v1220_v24 = vsub.f32 %v452_v12, %v836_v13  ;;  %v1221_v27 = vsub.f32 %v453_v17, %v837_v18  ;;  %v460_v12 = vld [vmem:[%s5170_s22 + $0x5e0] sm:$0xff]  ;;  %v461_v17 = vld [vmem:[%s5170_s22 + $0x5e8] sm:$0xff] }
 0x1d7   : > { %v4658_v53 = vadd.f32 %v4657_v47, %v4275_v46  ;;  %v844_v13 = vld [vmem:[%s5176_s25 + $0x5e0] sm:$0xff]  ;;  %v845_v18 = vld [vmem:[%s5176_s25 + $0x5e8] sm:$0xff] }
 0x1d8   : > { %v3030_v57 = vpop.permute.xlu1 %3029  ;;  %v3025_v58 = vpop.permute.xlu0 %3024 }
 0x1d9   : > { %v4659_v63 = vadd.f32 %v4658_v53, %v4276_v54  ;;  %3339 = vperm.xlu1 %5031, %v1653_v51   ;;  %3334 = vperm.xlu0 %5030, %v1652_v52   ;;  %v4278_v6 = vmul.f32 %v3025_v58, %v1974_v55  ;;  %v4279_v14 = vmul.f32 %v3030_v57, %v1975_v0  ;;  %v1661_v51 = vld [vmem:[%s5104_s19 + $0x768] sm:$0xff]  ;;  %v1660_v52 = vld [vmem:[%s5104_s19 + $0x760] sm:$0xff] }
 0x1da   : > { %v1982_v55 = vmul.f32 %v1214_v40, %v1214_v40  ;;  %v1983_v0 = vmul.f32 %v1215_v48, %v1215_v48  ;;  %v1222_v40 = vsub.f32 %v454_v28, %v838_v29  ;;  %v1223_v48 = vsub.f32 %v455_v35, %v839_v36  ;;  %v462_v28 = vld [vmem:[%s5170_s22 + $0x5f0] sm:$0xff]  ;;  %v463_v35 = vld [vmem:[%s5170_s22 + $0x5f8] sm:$0xff] }
 0x1db   : > { %v4660_v5 = vadd.f32 %v4659_v63, %v4277_v62  ;;  %v846_v29 = vld [vmem:[%s5176_s25 + $0x5f0] sm:$0xff]  ;;  %v847_v36 = vld [vmem:[%s5176_s25 + $0x5f8] sm:$0xff] }
 0x1dc   : > { %v3040_v9 = vpop.permute.xlu1 %3039  ;;  %v3035_v11 = vpop.permute.xlu0 %3034 }
 0x1dd   : > { %v4661_v15 = vadd.f32 %v4660_v5, %v4278_v6  ;;  %3349 = vperm.xlu1 %5031, %v1655_v1   ;;  %3344 = vperm.xlu0 %5030, %v1654_v2   ;;  %v4280_v22 = vmul.f32 %v3035_v11, %v1976_v7  ;;  %v4281_v30 = vmul.f32 %v3040_v9, %v1977_v10  ;;  %v1663_v1 = vld [vmem:[%s5104_s19 + $0x778] sm:$0xff]  ;;  %v1662_v2 = vld [vmem:[%s5104_s19 + $0x770] sm:$0xff] }
 0x1de   : > { %v1984_v7 = vmul.f32 %v1216_v56, %v1216_v56  ;;  %v1985_v10 = vmul.f32 %v1217_v59, %v1217_v59  ;;  %v1224_v56 = vsub.f32 %v456_v44, %v840_v45  ;;  %v1225_v59 = vsub.f32 %v457_v49, %v841_v50  ;;  %v464_v44 = vld [vmem:[%s5170_s22 + $0x600] sm:$0xff]  ;;  %v465_v49 = vld [vmem:[%s5170_s22 + $0x608] sm:$0xff] }
 0x1df   : > { %v4662_v21 = vadd.f32 %v4661_v15, %v4279_v14  ;;  %v848_v45 = vld [vmem:[%s5176_s25 + $0x600] sm:$0xff]  ;;  %v849_v50 = vld [vmem:[%s5176_s25 + $0x608] sm:$0xff] }
 0x1e0   : > { %v3050_v25 = vpop.permute.xlu1 %3049  ;;  %v3045_v26 = vpop.permute.xlu0 %3044 }
 0x1e1   : > { %v4663_v31 = vadd.f32 %v4662_v21, %v4280_v22  ;;  %3359 = vperm.xlu1 %5031, %v1657_v19   ;;  %3354 = vperm.xlu0 %5030, %v1656_v20   ;;  %v4282_v38 = vmul.f32 %v3045_v26, %v1978_v23  ;;  %v4283_v46 = vmul.f32 %v3050_v25, %v1979_v32  ;;  %v1665_v19 = vld [vmem:[%s5104_s19 + $0x788] sm:$0xff]  ;;  %v1664_v20 = vld [vmem:[%s5104_s19 + $0x780] sm:$0xff] }
 0x1e2   : > { %v1986_v23 = vmul.f32 %v1218_v8, %v1218_v8  ;;  %v1987_v32 = vmul.f32 %v1219_v16, %v1219_v16  ;;  %v1226_v8 = vsub.f32 %v458_v60, %v842_v61  ;;  %v1227_v16 = vsub.f32 %v459_v3, %v843_v4  ;;  %v466_v60 = vld [vmem:[%s5170_s22 + $0x610] sm:$0xff]  ;;  %v467_v3 = vld [vmem:[%s5170_s22 + $0x618] sm:$0xff] }
 0x1e3   : > { %v4664_v37 = vadd.f32 %v4663_v31, %v4281_v30  ;;  %v850_v61 = vld [vmem:[%s5176_s25 + $0x610] sm:$0xff]  ;;  %v851_v4 = vld [vmem:[%s5176_s25 + $0x618] sm:$0xff] }
 0x1e4   : > { %v3060_v41 = vpop.permute.xlu1 %3059  ;;  %v3055_v43 = vpop.permute.xlu0 %3054 }
 0x1e5   : > { %v4665_v47 = vadd.f32 %v4664_v37, %v4282_v38  ;;  %3369 = vperm.xlu1 %5031, %v1659_v33   ;;  %3364 = vperm.xlu0 %5030, %v1658_v34   ;;  %v4284_v54 = vmul.f32 %v3055_v43, %v1980_v39  ;;  %v4285_v62 = vmul.f32 %v3060_v41, %v1981_v42  ;;  %v1667_v33 = vld [vmem:[%s5104_s19 + $0x798] sm:$0xff]  ;;  %v1666_v34 = vld [vmem:[%s5104_s19 + $0x790] sm:$0xff] }
 0x1e6   : > { %v1988_v39 = vmul.f32 %v1220_v24, %v1220_v24  ;;  %v1989_v42 = vmul.f32 %v1221_v27, %v1221_v27  ;;  %v1228_v24 = vsub.f32 %v460_v12, %v844_v13  ;;  %v1229_v27 = vsub.f32 %v461_v17, %v845_v18  ;;  %v468_v12 = vld [vmem:[%s5170_s22 + $0x620] sm:$0xff]  ;;  %v469_v17 = vld [vmem:[%s5170_s22 + $0x628] sm:$0xff] }
 0x1e7   : > { %v4666_v53 = vadd.f32 %v4665_v47, %v4283_v46  ;;  %v852_v13 = vld [vmem:[%s5176_s25 + $0x620] sm:$0xff]  ;;  %v853_v18 = vld [vmem:[%s5176_s25 + $0x628] sm:$0xff] }
 0x1e8   : > { %v3070_v57 = vpop.permute.xlu1 %3069  ;;  %v3065_v58 = vpop.permute.xlu0 %3064 }
 0x1e9   : > { %v4667_v63 = vadd.f32 %v4666_v53, %v4284_v54  ;;  %3379 = vperm.xlu1 %5031, %v1661_v51   ;;  %3374 = vperm.xlu0 %5030, %v1660_v52   ;;  %v4286_v6 = vmul.f32 %v3065_v58, %v1982_v55  ;;  %v4287_v14 = vmul.f32 %v3070_v57, %v1983_v0  ;;  %v1669_v51 = vld [vmem:[%s5104_s19 + $0x7a8] sm:$0xff]  ;;  %v1668_v52 = vld [vmem:[%s5104_s19 + $0x7a0] sm:$0xff] }
 0x1ea   : > { %v1990_v55 = vmul.f32 %v1222_v40, %v1222_v40  ;;  %v1991_v0 = vmul.f32 %v1223_v48, %v1223_v48  ;;  %v1230_v40 = vsub.f32 %v462_v28, %v846_v29  ;;  %v1231_v48 = vsub.f32 %v463_v35, %v847_v36  ;;  %v470_v28 = vld [vmem:[%s5170_s22 + $0x630] sm:$0xff]  ;;  %v471_v35 = vld [vmem:[%s5170_s22 + $0x638] sm:$0xff] }
 0x1eb   : > { %v4668_v5 = vadd.f32 %v4667_v63, %v4285_v62  ;;  %v854_v29 = vld [vmem:[%s5176_s25 + $0x630] sm:$0xff]  ;;  %v855_v36 = vld [vmem:[%s5176_s25 + $0x638] sm:$0xff] }
 0x1ec   : > { %v3080_v9 = vpop.permute.xlu1 %3079  ;;  %v3075_v11 = vpop.permute.xlu0 %3074 }
 0x1ed   : > { %v4669_v15 = vadd.f32 %v4668_v5, %v4286_v6  ;;  %3389 = vperm.xlu1 %5031, %v1663_v1   ;;  %3384 = vperm.xlu0 %5030, %v1662_v2   ;;  %v4288_v22 = vmul.f32 %v3075_v11, %v1984_v7  ;;  %v4289_v30 = vmul.f32 %v3080_v9, %v1985_v10  ;;  %v1671_v1 = vld [vmem:[%s5104_s19 + $0x7b8] sm:$0xff]  ;;  %v1670_v2 = vld [vmem:[%s5104_s19 + $0x7b0] sm:$0xff] }
 0x1ee   : > { %v1992_v7 = vmul.f32 %v1224_v56, %v1224_v56  ;;  %v1993_v10 = vmul.f32 %v1225_v59, %v1225_v59  ;;  %v1232_v56 = vsub.f32 %v464_v44, %v848_v45  ;;  %v1233_v59 = vsub.f32 %v465_v49, %v849_v50  ;;  %v472_v44 = vld [vmem:[%s5170_s22 + $0x640] sm:$0xff]  ;;  %v473_v49 = vld [vmem:[%s5170_s22 + $0x648] sm:$0xff] }
 0x1ef   : > { %v4670_v21 = vadd.f32 %v4669_v15, %v4287_v14  ;;  %v856_v45 = vld [vmem:[%s5176_s25 + $0x640] sm:$0xff]  ;;  %v857_v50 = vld [vmem:[%s5176_s25 + $0x648] sm:$0xff] }
 0x1f0   : > { %v3090_v25 = vpop.permute.xlu1 %3089  ;;  %v3085_v26 = vpop.permute.xlu0 %3084 }
 0x1f1   : > { %v4671_v31 = vadd.f32 %v4670_v21, %v4288_v22  ;;  %3399 = vperm.xlu1 %5031, %v1665_v19   ;;  %3394 = vperm.xlu0 %5030, %v1664_v20   ;;  %v4290_v38 = vmul.f32 %v3085_v26, %v1986_v23  ;;  %v4291_v46 = vmul.f32 %v3090_v25, %v1987_v32  ;;  %v1673_v19 = vld [vmem:[%s5104_s19 + $0x7c8] sm:$0xff]  ;;  %v1672_v20 = vld [vmem:[%s5104_s19 + $0x7c0] sm:$0xff] }
 0x1f2   : > { %v1994_v23 = vmul.f32 %v1226_v8, %v1226_v8  ;;  %v1995_v32 = vmul.f32 %v1227_v16, %v1227_v16  ;;  %v1234_v8 = vsub.f32 %v466_v60, %v850_v61  ;;  %v1235_v16 = vsub.f32 %v467_v3, %v851_v4  ;;  %v474_v60 = vld [vmem:[%s5170_s22 + $0x650] sm:$0xff]  ;;  %v475_v3 = vld [vmem:[%s5170_s22 + $0x658] sm:$0xff] }
 0x1f3   : > { %v4672_v37 = vadd.f32 %v4671_v31, %v4289_v30  ;;  %v858_v61 = vld [vmem:[%s5176_s25 + $0x650] sm:$0xff]  ;;  %v859_v4 = vld [vmem:[%s5176_s25 + $0x658] sm:$0xff] }
 0x1f4   : > { %v3100_v41 = vpop.permute.xlu1 %3099  ;;  %v3095_v43 = vpop.permute.xlu0 %3094 }
 0x1f5   : > { %v4673_v47 = vadd.f32 %v4672_v37, %v4290_v38  ;;  %3409 = vperm.xlu1 %5031, %v1667_v33   ;;  %3404 = vperm.xlu0 %5030, %v1666_v34   ;;  %v4292_v54 = vmul.f32 %v3095_v43, %v1988_v39  ;;  %v4293_v62 = vmul.f32 %v3100_v41, %v1989_v42  ;;  %v1675_v33 = vld [vmem:[%s5104_s19 + $0x7d8] sm:$0xff]  ;;  %v1674_v34 = vld [vmem:[%s5104_s19 + $0x7d0] sm:$0xff] }
 0x1f6   : > { %v1996_v39 = vmul.f32 %v1228_v24, %v1228_v24  ;;  %v1997_v42 = vmul.f32 %v1229_v27, %v1229_v27  ;;  %v1236_v24 = vsub.f32 %v468_v12, %v852_v13  ;;  %v1237_v27 = vsub.f32 %v469_v17, %v853_v18  ;;  %v476_v12 = vld [vmem:[%s5170_s22 + $0x660] sm:$0xff]  ;;  %v477_v17 = vld [vmem:[%s5170_s22 + $0x668] sm:$0xff] }
 0x1f7   : > { %v4674_v53 = vadd.f32 %v4673_v47, %v4291_v46  ;;  %v860_v13 = vld [vmem:[%s5176_s25 + $0x660] sm:$0xff]  ;;  %v861_v18 = vld [vmem:[%s5176_s25 + $0x668] sm:$0xff] }
 0x1f8   : > { %v3110_v57 = vpop.permute.xlu1 %3109  ;;  %v3105_v58 = vpop.permute.xlu0 %3104 }
 0x1f9   : > { %v4675_v63 = vadd.f32 %v4674_v53, %v4292_v54  ;;  %3419 = vperm.xlu1 %5031, %v1669_v51   ;;  %3414 = vperm.xlu0 %5030, %v1668_v52   ;;  %v4294_v6 = vmul.f32 %v3105_v58, %v1990_v55  ;;  %v4295_v14 = vmul.f32 %v3110_v57, %v1991_v0  ;;  %v1677_v51 = vld [vmem:[%s5104_s19 + $0x7e8] sm:$0xff]  ;;  %v1676_v52 = vld [vmem:[%s5104_s19 + $0x7e0] sm:$0xff] }
 0x1fa   : > { %v1998_v55 = vmul.f32 %v1230_v40, %v1230_v40  ;;  %v1999_v0 = vmul.f32 %v1231_v48, %v1231_v48  ;;  %v1238_v40 = vsub.f32 %v470_v28, %v854_v29  ;;  %v1239_v48 = vsub.f32 %v471_v35, %v855_v36  ;;  %v478_v28 = vld [vmem:[%s5170_s22 + $0x670] sm:$0xff]  ;;  %v479_v35 = vld [vmem:[%s5170_s22 + $0x678] sm:$0xff] }
 0x1fb   : > { %v4676_v5 = vadd.f32 %v4675_v63, %v4293_v62  ;;  %v862_v29 = vld [vmem:[%s5176_s25 + $0x670] sm:$0xff]  ;;  %v863_v36 = vld [vmem:[%s5176_s25 + $0x678] sm:$0xff] }
 0x1fc   : > { %v3120_v9 = vpop.permute.xlu1 %3119  ;;  %v3115_v11 = vpop.permute.xlu0 %3114 }
 0x1fd   : > { %v4677_v15 = vadd.f32 %v4676_v5, %v4294_v6  ;;  %3429 = vperm.xlu1 %5031, %v1671_v1   ;;  %3424 = vperm.xlu0 %5030, %v1670_v2   ;;  %v4296_v22 = vmul.f32 %v3115_v11, %v1992_v7  ;;  %v4297_v30 = vmul.f32 %v3120_v9, %v1993_v10  ;;  %v1679_v1 = vld [vmem:[%s5104_s19 + $0x7f8] sm:$0xff]  ;;  %v1678_v2 = vld [vmem:[%s5104_s19 + $0x7f0] sm:$0xff] }
 0x1fe   : > { %v2000_v7 = vmul.f32 %v1232_v56, %v1232_v56  ;;  %v2001_v10 = vmul.f32 %v1233_v59, %v1233_v59  ;;  %v1240_v56 = vsub.f32 %v472_v44, %v856_v45  ;;  %v1241_v59 = vsub.f32 %v473_v49, %v857_v50  ;;  %v480_v44 = vld [vmem:[%s5170_s22 + $0x680] sm:$0xff]  ;;  %v481_v49 = vld [vmem:[%s5170_s22 + $0x688] sm:$0xff] }
 0x1ff   : > { %v4678_v21 = vadd.f32 %v4677_v15, %v4295_v14  ;;  %v864_v45 = vld [vmem:[%s5176_s25 + $0x680] sm:$0xff]  ;;  %v865_v50 = vld [vmem:[%s5176_s25 + $0x688] sm:$0xff] }
 0x200   : > { %v3130_v25 = vpop.permute.xlu1 %3129  ;;  %v3125_v26 = vpop.permute.xlu0 %3124 }
 0x201   : > { %v4679_v31 = vadd.f32 %v4678_v21, %v4296_v22  ;;  %3439 = vperm.xlu1 %5031, %v1673_v19   ;;  %3434 = vperm.xlu0 %5030, %v1672_v20   ;;  %v4298_v38 = vmul.f32 %v3125_v26, %v1994_v23  ;;  %v4299_v46 = vmul.f32 %v3130_v25, %v1995_v32  ;;  %v1681_v19 = vld [vmem:[%s5104_s19 + $0x808] sm:$0xff]  ;;  %v1680_v20 = vld [vmem:[%s5104_s19 + $0x800] sm:$0xff] }
 0x202   : > { %v2002_v23 = vmul.f32 %v1234_v8, %v1234_v8  ;;  %v2003_v32 = vmul.f32 %v1235_v16, %v1235_v16  ;;  %v1242_v8 = vsub.f32 %v474_v60, %v858_v61  ;;  %v1243_v16 = vsub.f32 %v475_v3, %v859_v4  ;;  %v482_v60 = vld [vmem:[%s5170_s22 + $0x690] sm:$0xff]  ;;  %v483_v3 = vld [vmem:[%s5170_s22 + $0x698] sm:$0xff] }
 0x203   : > { %v4680_v37 = vadd.f32 %v4679_v31, %v4297_v30  ;;  %v866_v61 = vld [vmem:[%s5176_s25 + $0x690] sm:$0xff]  ;;  %v867_v4 = vld [vmem:[%s5176_s25 + $0x698] sm:$0xff] }
 0x204   : > { %v3140_v41 = vpop.permute.xlu1 %3139  ;;  %v3135_v43 = vpop.permute.xlu0 %3134 }
 0x205   : > { %v4681_v47 = vadd.f32 %v4680_v37, %v4298_v38  ;;  %3449 = vperm.xlu1 %5031, %v1675_v33   ;;  %3444 = vperm.xlu0 %5030, %v1674_v34   ;;  %v4300_v54 = vmul.f32 %v3135_v43, %v1996_v39  ;;  %v4301_v62 = vmul.f32 %v3140_v41, %v1997_v42  ;;  %v1683_v33 = vld [vmem:[%s5104_s19 + $0x818] sm:$0xff]  ;;  %v1682_v34 = vld [vmem:[%s5104_s19 + $0x810] sm:$0xff] }
 0x206   : > { %v2004_v39 = vmul.f32 %v1236_v24, %v1236_v24  ;;  %v2005_v42 = vmul.f32 %v1237_v27, %v1237_v27  ;;  %v1244_v24 = vsub.f32 %v476_v12, %v860_v13  ;;  %v1245_v27 = vsub.f32 %v477_v17, %v861_v18  ;;  %v484_v12 = vld [vmem:[%s5170_s22 + $0x6a0] sm:$0xff]  ;;  %v485_v17 = vld [vmem:[%s5170_s22 + $0x6a8] sm:$0xff] }
 0x207   : > { %v4682_v53 = vadd.f32 %v4681_v47, %v4299_v46  ;;  %v868_v13 = vld [vmem:[%s5176_s25 + $0x6a0] sm:$0xff]  ;;  %v869_v18 = vld [vmem:[%s5176_s25 + $0x6a8] sm:$0xff] }
 0x208   : > { %v3150_v57 = vpop.permute.xlu1 %3149  ;;  %v3145_v58 = vpop.permute.xlu0 %3144 }
 0x209   : > { %v4683_v63 = vadd.f32 %v4682_v53, %v4300_v54  ;;  %3459 = vperm.xlu1 %5031, %v1677_v51   ;;  %3454 = vperm.xlu0 %5030, %v1676_v52   ;;  %v4302_v6 = vmul.f32 %v3145_v58, %v1998_v55  ;;  %v4303_v14 = vmul.f32 %v3150_v57, %v1999_v0  ;;  %v1685_v51 = vld [vmem:[%s5104_s19 + $0x828] sm:$0xff]  ;;  %v1684_v52 = vld [vmem:[%s5104_s19 + $0x820] sm:$0xff] }
 0x20a   : > { %v2006_v55 = vmul.f32 %v1238_v40, %v1238_v40  ;;  %v2007_v0 = vmul.f32 %v1239_v48, %v1239_v48  ;;  %v1246_v40 = vsub.f32 %v478_v28, %v862_v29  ;;  %v1247_v48 = vsub.f32 %v479_v35, %v863_v36  ;;  %v486_v28 = vld [vmem:[%s5170_s22 + $0x6b0] sm:$0xff]  ;;  %v487_v35 = vld [vmem:[%s5170_s22 + $0x6b8] sm:$0xff] }
 0x20b   : > { %v4684_v5 = vadd.f32 %v4683_v63, %v4301_v62  ;;  %v870_v29 = vld [vmem:[%s5176_s25 + $0x6b0] sm:$0xff]  ;;  %v871_v36 = vld [vmem:[%s5176_s25 + $0x6b8] sm:$0xff] }
 0x20c   : > { %v3160_v9 = vpop.permute.xlu1 %3159  ;;  %v3155_v11 = vpop.permute.xlu0 %3154 }
 0x20d   : > { %v4685_v15 = vadd.f32 %v4684_v5, %v4302_v6  ;;  %3469 = vperm.xlu1 %5031, %v1679_v1   ;;  %3464 = vperm.xlu0 %5030, %v1678_v2   ;;  %v4304_v22 = vmul.f32 %v3155_v11, %v2000_v7  ;;  %v4305_v30 = vmul.f32 %v3160_v9, %v2001_v10  ;;  %v1687_v1 = vld [vmem:[%s5104_s19 + $0x838] sm:$0xff]  ;;  %v1686_v2 = vld [vmem:[%s5104_s19 + $0x830] sm:$0xff] }
 0x20e   : > { %v2008_v7 = vmul.f32 %v1240_v56, %v1240_v56  ;;  %v2009_v10 = vmul.f32 %v1241_v59, %v1241_v59  ;;  %v1248_v56 = vsub.f32 %v480_v44, %v864_v45  ;;  %v1249_v59 = vsub.f32 %v481_v49, %v865_v50  ;;  %v488_v44 = vld [vmem:[%s5170_s22 + $0x6c0] sm:$0xff]  ;;  %v489_v49 = vld [vmem:[%s5170_s22 + $0x6c8] sm:$0xff] }
 0x20f   : > { %v4686_v21 = vadd.f32 %v4685_v15, %v4303_v14  ;;  %v872_v45 = vld [vmem:[%s5176_s25 + $0x6c0] sm:$0xff]  ;;  %v873_v50 = vld [vmem:[%s5176_s25 + $0x6c8] sm:$0xff] }
 0x210   : > { %v3170_v25 = vpop.permute.xlu1 %3169  ;;  %v3165_v26 = vpop.permute.xlu0 %3164 }
 0x211   : > { %v4687_v31 = vadd.f32 %v4686_v21, %v4304_v22  ;;  %3479 = vperm.xlu1 %5031, %v1681_v19   ;;  %3474 = vperm.xlu0 %5030, %v1680_v20   ;;  %v4306_v38 = vmul.f32 %v3165_v26, %v2002_v23  ;;  %v4307_v46 = vmul.f32 %v3170_v25, %v2003_v32  ;;  %v1689_v19 = vld [vmem:[%s5104_s19 + $0x848] sm:$0xff]  ;;  %v1688_v20 = vld [vmem:[%s5104_s19 + $0x840] sm:$0xff] }
 0x212   : > { %v2010_v23 = vmul.f32 %v1242_v8, %v1242_v8  ;;  %v2011_v32 = vmul.f32 %v1243_v16, %v1243_v16  ;;  %v1250_v8 = vsub.f32 %v482_v60, %v866_v61  ;;  %v1251_v16 = vsub.f32 %v483_v3, %v867_v4  ;;  %v490_v60 = vld [vmem:[%s5170_s22 + $0x6d0] sm:$0xff]  ;;  %v491_v3 = vld [vmem:[%s5170_s22 + $0x6d8] sm:$0xff] }
 0x213   : > { %v4688_v37 = vadd.f32 %v4687_v31, %v4305_v30  ;;  %v874_v61 = vld [vmem:[%s5176_s25 + $0x6d0] sm:$0xff]  ;;  %v875_v4 = vld [vmem:[%s5176_s25 + $0x6d8] sm:$0xff] }
 0x214   : > { %v3180_v41 = vpop.permute.xlu1 %3179  ;;  %v3175_v43 = vpop.permute.xlu0 %3174 }
 0x215   : > { %v4689_v47 = vadd.f32 %v4688_v37, %v4306_v38  ;;  %3489 = vperm.xlu1 %5031, %v1683_v33   ;;  %3484 = vperm.xlu0 %5030, %v1682_v34   ;;  %v4308_v54 = vmul.f32 %v3175_v43, %v2004_v39  ;;  %v4309_v62 = vmul.f32 %v3180_v41, %v2005_v42  ;;  %v1691_v33 = vld [vmem:[%s5104_s19 + $0x858] sm:$0xff]  ;;  %v1690_v34 = vld [vmem:[%s5104_s19 + $0x850] sm:$0xff] }
 0x216   : > { %v2012_v39 = vmul.f32 %v1244_v24, %v1244_v24  ;;  %v2013_v42 = vmul.f32 %v1245_v27, %v1245_v27  ;;  %v1252_v24 = vsub.f32 %v484_v12, %v868_v13  ;;  %v1253_v27 = vsub.f32 %v485_v17, %v869_v18  ;;  %v492_v12 = vld [vmem:[%s5170_s22 + $0x6e0] sm:$0xff]  ;;  %v493_v17 = vld [vmem:[%s5170_s22 + $0x6e8] sm:$0xff] }
 0x217   : > { %v4690_v53 = vadd.f32 %v4689_v47, %v4307_v46  ;;  %v876_v13 = vld [vmem:[%s5176_s25 + $0x6e0] sm:$0xff]  ;;  %v877_v18 = vld [vmem:[%s5176_s25 + $0x6e8] sm:$0xff] }
 0x218   : > { %v3190_v57 = vpop.permute.xlu1 %3189  ;;  %v3185_v58 = vpop.permute.xlu0 %3184 }
 0x219   : > { %v4691_v63 = vadd.f32 %v4690_v53, %v4308_v54  ;;  %3499 = vperm.xlu1 %5031, %v1685_v51   ;;  %3494 = vperm.xlu0 %5030, %v1684_v52   ;;  %v4310_v6 = vmul.f32 %v3185_v58, %v2006_v55  ;;  %v4311_v14 = vmul.f32 %v3190_v57, %v2007_v0  ;;  %v1693_v51 = vld [vmem:[%s5104_s19 + $0x868] sm:$0xff]  ;;  %v1692_v52 = vld [vmem:[%s5104_s19 + $0x860] sm:$0xff] }
 0x21a   : > { %v2014_v55 = vmul.f32 %v1246_v40, %v1246_v40  ;;  %v2015_v0 = vmul.f32 %v1247_v48, %v1247_v48  ;;  %v1254_v40 = vsub.f32 %v486_v28, %v870_v29  ;;  %v1255_v48 = vsub.f32 %v487_v35, %v871_v36  ;;  %v494_v28 = vld [vmem:[%s5170_s22 + $0x6f0] sm:$0xff]  ;;  %v495_v35 = vld [vmem:[%s5170_s22 + $0x6f8] sm:$0xff] }
 0x21b   : > { %v4692_v5 = vadd.f32 %v4691_v63, %v4309_v62  ;;  %v878_v29 = vld [vmem:[%s5176_s25 + $0x6f0] sm:$0xff]  ;;  %v879_v36 = vld [vmem:[%s5176_s25 + $0x6f8] sm:$0xff] }
 0x21c   : > { %v3200_v9 = vpop.permute.xlu1 %3199  ;;  %v3195_v11 = vpop.permute.xlu0 %3194 }
 0x21d   : > { %v4693_v15 = vadd.f32 %v4692_v5, %v4310_v6  ;;  %3509 = vperm.xlu1 %5031, %v1687_v1   ;;  %3504 = vperm.xlu0 %5030, %v1686_v2   ;;  %v4312_v22 = vmul.f32 %v3195_v11, %v2008_v7  ;;  %v4313_v30 = vmul.f32 %v3200_v9, %v2009_v10  ;;  %v1695_v1 = vld [vmem:[%s5104_s19 + $0x878] sm:$0xff]  ;;  %v1694_v2 = vld [vmem:[%s5104_s19 + $0x870] sm:$0xff] }
 0x21e   : > { %v2016_v7 = vmul.f32 %v1248_v56, %v1248_v56  ;;  %v2017_v10 = vmul.f32 %v1249_v59, %v1249_v59  ;;  %v1256_v56 = vsub.f32 %v488_v44, %v872_v45  ;;  %v1257_v59 = vsub.f32 %v489_v49, %v873_v50  ;;  %v496_v44 = vld [vmem:[%s5170_s22 + $0x700] sm:$0xff]  ;;  %v497_v49 = vld [vmem:[%s5170_s22 + $0x708] sm:$0xff] }
 0x21f   : > { %v4694_v21 = vadd.f32 %v4693_v15, %v4311_v14  ;;  %v880_v45 = vld [vmem:[%s5176_s25 + $0x700] sm:$0xff]  ;;  %v881_v50 = vld [vmem:[%s5176_s25 + $0x708] sm:$0xff] }
 0x220   : > { %v3210_v25 = vpop.permute.xlu1 %3209  ;;  %v3205_v26 = vpop.permute.xlu0 %3204 }
 0x221   : > { %v4695_v31 = vadd.f32 %v4694_v21, %v4312_v22  ;;  %3519 = vperm.xlu1 %5031, %v1689_v19   ;;  %3514 = vperm.xlu0 %5030, %v1688_v20   ;;  %v4314_v38 = vmul.f32 %v3205_v26, %v2010_v23  ;;  %v4315_v46 = vmul.f32 %v3210_v25, %v2011_v32  ;;  %v1697_v19 = vld [vmem:[%s5104_s19 + $0x888] sm:$0xff]  ;;  %v1696_v20 = vld [vmem:[%s5104_s19 + $0x880] sm:$0xff] }
 0x222   : > { %v2018_v23 = vmul.f32 %v1250_v8, %v1250_v8  ;;  %v2019_v32 = vmul.f32 %v1251_v16, %v1251_v16  ;;  %v1258_v8 = vsub.f32 %v490_v60, %v874_v61  ;;  %v1259_v16 = vsub.f32 %v491_v3, %v875_v4  ;;  %v498_v60 = vld [vmem:[%s5170_s22 + $0x710] sm:$0xff]  ;;  %v499_v3 = vld [vmem:[%s5170_s22 + $0x718] sm:$0xff] }
 0x223   : > { %v4696_v37 = vadd.f32 %v4695_v31, %v4313_v30  ;;  %v882_v61 = vld [vmem:[%s5176_s25 + $0x710] sm:$0xff]  ;;  %v883_v4 = vld [vmem:[%s5176_s25 + $0x718] sm:$0xff] }
 0x224   : > { %v3220_v41 = vpop.permute.xlu1 %3219  ;;  %v3215_v43 = vpop.permute.xlu0 %3214 }
 0x225   : > { %v4697_v47 = vadd.f32 %v4696_v37, %v4314_v38  ;;  %3529 = vperm.xlu1 %5031, %v1691_v33   ;;  %3524 = vperm.xlu0 %5030, %v1690_v34   ;;  %v4316_v54 = vmul.f32 %v3215_v43, %v2012_v39  ;;  %v4317_v62 = vmul.f32 %v3220_v41, %v2013_v42  ;;  %v1699_v33 = vld [vmem:[%s5104_s19 + $0x898] sm:$0xff]  ;;  %v1698_v34 = vld [vmem:[%s5104_s19 + $0x890] sm:$0xff] }
 0x226   : > { %v2020_v39 = vmul.f32 %v1252_v24, %v1252_v24  ;;  %v2021_v42 = vmul.f32 %v1253_v27, %v1253_v27  ;;  %v1260_v24 = vsub.f32 %v492_v12, %v876_v13  ;;  %v1261_v27 = vsub.f32 %v493_v17, %v877_v18  ;;  %v500_v12 = vld [vmem:[%s5170_s22 + $0x720] sm:$0xff]  ;;  %v501_v17 = vld [vmem:[%s5170_s22 + $0x728] sm:$0xff] }
 0x227   : > { %v4698_v53 = vadd.f32 %v4697_v47, %v4315_v46  ;;  %v884_v13 = vld [vmem:[%s5176_s25 + $0x720] sm:$0xff]  ;;  %v885_v18 = vld [vmem:[%s5176_s25 + $0x728] sm:$0xff] }
 0x228   : > { %v3230_v57 = vpop.permute.xlu1 %3229  ;;  %v3225_v58 = vpop.permute.xlu0 %3224 }
 0x229   : > { %v4699_v63 = vadd.f32 %v4698_v53, %v4316_v54  ;;  %3539 = vperm.xlu1 %5031, %v1693_v51   ;;  %3534 = vperm.xlu0 %5030, %v1692_v52   ;;  %v4318_v6 = vmul.f32 %v3225_v58, %v2014_v55  ;;  %v4319_v14 = vmul.f32 %v3230_v57, %v2015_v0  ;;  %v1701_v51 = vld [vmem:[%s5104_s19 + $0x8a8] sm:$0xff]  ;;  %v1700_v52 = vld [vmem:[%s5104_s19 + $0x8a0] sm:$0xff] }
 0x22a   : > { %v2022_v55 = vmul.f32 %v1254_v40, %v1254_v40  ;;  %v2023_v0 = vmul.f32 %v1255_v48, %v1255_v48  ;;  %v1262_v40 = vsub.f32 %v494_v28, %v878_v29  ;;  %v1263_v48 = vsub.f32 %v495_v35, %v879_v36  ;;  %v502_v28 = vld [vmem:[%s5170_s22 + $0x730] sm:$0xff]  ;;  %v503_v35 = vld [vmem:[%s5170_s22 + $0x738] sm:$0xff] }
 0x22b   : > { %v4700_v5 = vadd.f32 %v4699_v63, %v4317_v62  ;;  %v886_v29 = vld [vmem:[%s5176_s25 + $0x730] sm:$0xff]  ;;  %v887_v36 = vld [vmem:[%s5176_s25 + $0x738] sm:$0xff] }
 0x22c   : > { %v3240_v9 = vpop.permute.xlu1 %3239  ;;  %v3235_v11 = vpop.permute.xlu0 %3234 }
 0x22d   : > { %v4701_v15 = vadd.f32 %v4700_v5, %v4318_v6  ;;  %3549 = vperm.xlu1 %5031, %v1695_v1   ;;  %3544 = vperm.xlu0 %5030, %v1694_v2   ;;  %v4320_v22 = vmul.f32 %v3235_v11, %v2016_v7  ;;  %v4321_v30 = vmul.f32 %v3240_v9, %v2017_v10  ;;  %v1703_v1 = vld [vmem:[%s5104_s19 + $0x8b8] sm:$0xff]  ;;  %v1702_v2 = vld [vmem:[%s5104_s19 + $0x8b0] sm:$0xff] }
 0x22e   : > { %v2024_v7 = vmul.f32 %v1256_v56, %v1256_v56  ;;  %v2025_v10 = vmul.f32 %v1257_v59, %v1257_v59  ;;  %v1264_v56 = vsub.f32 %v496_v44, %v880_v45  ;;  %v1265_v59 = vsub.f32 %v497_v49, %v881_v50  ;;  %v504_v44 = vld [vmem:[%s5170_s22 + $0x740] sm:$0xff]  ;;  %v505_v49 = vld [vmem:[%s5170_s22 + $0x748] sm:$0xff] }
 0x22f   : > { %v4702_v21 = vadd.f32 %v4701_v15, %v4319_v14  ;;  %v888_v45 = vld [vmem:[%s5176_s25 + $0x740] sm:$0xff]  ;;  %v889_v50 = vld [vmem:[%s5176_s25 + $0x748] sm:$0xff] }
 0x230   : > { %v3250_v25 = vpop.permute.xlu1 %3249  ;;  %v3245_v26 = vpop.permute.xlu0 %3244 }
 0x231   : > { %v4703_v31 = vadd.f32 %v4702_v21, %v4320_v22  ;;  %3559 = vperm.xlu1 %5031, %v1697_v19   ;;  %3554 = vperm.xlu0 %5030, %v1696_v20   ;;  %v4322_v38 = vmul.f32 %v3245_v26, %v2018_v23  ;;  %v4323_v46 = vmul.f32 %v3250_v25, %v2019_v32  ;;  %v1705_v19 = vld [vmem:[%s5104_s19 + $0x8c8] sm:$0xff]  ;;  %v1704_v20 = vld [vmem:[%s5104_s19 + $0x8c0] sm:$0xff] }
 0x232   : > { %v2026_v23 = vmul.f32 %v1258_v8, %v1258_v8  ;;  %v2027_v32 = vmul.f32 %v1259_v16, %v1259_v16  ;;  %v1266_v8 = vsub.f32 %v498_v60, %v882_v61  ;;  %v1267_v16 = vsub.f32 %v499_v3, %v883_v4  ;;  %v506_v60 = vld [vmem:[%s5170_s22 + $0x750] sm:$0xff]  ;;  %v507_v3 = vld [vmem:[%s5170_s22 + $0x758] sm:$0xff] }
 0x233   : > { %v4704_v37 = vadd.f32 %v4703_v31, %v4321_v30  ;;  %v890_v61 = vld [vmem:[%s5176_s25 + $0x750] sm:$0xff]  ;;  %v891_v4 = vld [vmem:[%s5176_s25 + $0x758] sm:$0xff] }
 0x234   : > { %v3260_v41 = vpop.permute.xlu1 %3259  ;;  %v3255_v43 = vpop.permute.xlu0 %3254 }
 0x235   : > { %v4705_v47 = vadd.f32 %v4704_v37, %v4322_v38  ;;  %3569 = vperm.xlu1 %5031, %v1699_v33   ;;  %3564 = vperm.xlu0 %5030, %v1698_v34   ;;  %v4324_v54 = vmul.f32 %v3255_v43, %v2020_v39  ;;  %v4325_v62 = vmul.f32 %v3260_v41, %v2021_v42  ;;  %v1707_v33 = vld [vmem:[%s5104_s19 + $0x8d8] sm:$0xff]  ;;  %v1706_v34 = vld [vmem:[%s5104_s19 + $0x8d0] sm:$0xff] }
 0x236   : > { %v2028_v39 = vmul.f32 %v1260_v24, %v1260_v24  ;;  %v2029_v42 = vmul.f32 %v1261_v27, %v1261_v27  ;;  %v1268_v24 = vsub.f32 %v500_v12, %v884_v13  ;;  %v1269_v27 = vsub.f32 %v501_v17, %v885_v18  ;;  %v508_v12 = vld [vmem:[%s5170_s22 + $0x760] sm:$0xff]  ;;  %v509_v17 = vld [vmem:[%s5170_s22 + $0x768] sm:$0xff] }
 0x237   : > { %v4706_v53 = vadd.f32 %v4705_v47, %v4323_v46  ;;  %v892_v13 = vld [vmem:[%s5176_s25 + $0x760] sm:$0xff]  ;;  %v893_v18 = vld [vmem:[%s5176_s25 + $0x768] sm:$0xff] }
 0x238   : > { %v3270_v57 = vpop.permute.xlu1 %3269  ;;  %v3265_v58 = vpop.permute.xlu0 %3264 }
 0x239   : > { %v4707_v63 = vadd.f32 %v4706_v53, %v4324_v54  ;;  %3579 = vperm.xlu1 %5031, %v1701_v51   ;;  %3574 = vperm.xlu0 %5030, %v1700_v52   ;;  %v4326_v6 = vmul.f32 %v3265_v58, %v2022_v55  ;;  %v4327_v14 = vmul.f32 %v3270_v57, %v2023_v0  ;;  %v1709_v51 = vld [vmem:[%s5104_s19 + $0x8e8] sm:$0xff]  ;;  %v1708_v52 = vld [vmem:[%s5104_s19 + $0x8e0] sm:$0xff] }
 0x23a   : > { %v2030_v55 = vmul.f32 %v1262_v40, %v1262_v40  ;;  %v2031_v0 = vmul.f32 %v1263_v48, %v1263_v48  ;;  %v1270_v40 = vsub.f32 %v502_v28, %v886_v29  ;;  %v1271_v48 = vsub.f32 %v503_v35, %v887_v36  ;;  %v510_v28 = vld [vmem:[%s5170_s22 + $0x770] sm:$0xff]  ;;  %v511_v35 = vld [vmem:[%s5170_s22 + $0x778] sm:$0xff] }
 0x23b   : > { %v4708_v5 = vadd.f32 %v4707_v63, %v4325_v62  ;;  %v894_v29 = vld [vmem:[%s5176_s25 + $0x770] sm:$0xff]  ;;  %v895_v36 = vld [vmem:[%s5176_s25 + $0x778] sm:$0xff] }
 0x23c   : > { %v3280_v9 = vpop.permute.xlu1 %3279  ;;  %v3275_v11 = vpop.permute.xlu0 %3274 }
 0x23d   : > { %v4709_v15 = vadd.f32 %v4708_v5, %v4326_v6  ;;  %3589 = vperm.xlu1 %5031, %v1703_v1   ;;  %3584 = vperm.xlu0 %5030, %v1702_v2   ;;  %v4328_v22 = vmul.f32 %v3275_v11, %v2024_v7  ;;  %v4329_v30 = vmul.f32 %v3280_v9, %v2025_v10  ;;  %v1711_v1 = vld [vmem:[%s5104_s19 + $0x8f8] sm:$0xff]  ;;  %v1710_v2 = vld [vmem:[%s5104_s19 + $0x8f0] sm:$0xff] }
 0x23e   : > { %v2032_v7 = vmul.f32 %v1264_v56, %v1264_v56  ;;  %v2033_v10 = vmul.f32 %v1265_v59, %v1265_v59  ;;  %v1272_v56 = vsub.f32 %v504_v44, %v888_v45  ;;  %v1273_v59 = vsub.f32 %v505_v49, %v889_v50  ;;  %v512_v44 = vld [vmem:[%s5170_s22 + $0x780] sm:$0xff]  ;;  %v513_v49 = vld [vmem:[%s5170_s22 + $0x788] sm:$0xff] }
 0x23f   : > { %v4710_v21 = vadd.f32 %v4709_v15, %v4327_v14  ;;  %v896_v45 = vld [vmem:[%s5176_s25 + $0x780] sm:$0xff]  ;;  %v897_v50 = vld [vmem:[%s5176_s25 + $0x788] sm:$0xff] }
 0x240   : > { %v3290_v25 = vpop.permute.xlu1 %3289  ;;  %v3285_v26 = vpop.permute.xlu0 %3284 }
 0x241   : > { %v4711_v31 = vadd.f32 %v4710_v21, %v4328_v22  ;;  %3599 = vperm.xlu1 %5031, %v1705_v19   ;;  %3594 = vperm.xlu0 %5030, %v1704_v20   ;;  %v4330_v38 = vmul.f32 %v3285_v26, %v2026_v23  ;;  %v4331_v46 = vmul.f32 %v3290_v25, %v2027_v32  ;;  %v1713_v19 = vld [vmem:[%s5104_s19 + $0x908] sm:$0xff]  ;;  %v1712_v20 = vld [vmem:[%s5104_s19 + $0x900] sm:$0xff] }
 0x242   : > { %v2034_v23 = vmul.f32 %v1266_v8, %v1266_v8  ;;  %v2035_v32 = vmul.f32 %v1267_v16, %v1267_v16  ;;  %v1274_v8 = vsub.f32 %v506_v60, %v890_v61  ;;  %v1275_v16 = vsub.f32 %v507_v3, %v891_v4  ;;  %v514_v60 = vld [vmem:[%s5170_s22 + $0x790] sm:$0xff]  ;;  %v515_v3 = vld [vmem:[%s5170_s22 + $0x798] sm:$0xff] }
 0x243   : > { %v4712_v37 = vadd.f32 %v4711_v31, %v4329_v30  ;;  %v898_v61 = vld [vmem:[%s5176_s25 + $0x790] sm:$0xff]  ;;  %v899_v4 = vld [vmem:[%s5176_s25 + $0x798] sm:$0xff] }
 0x244   : > { %v3300_v41 = vpop.permute.xlu1 %3299  ;;  %v3295_v43 = vpop.permute.xlu0 %3294 }
 0x245   : > { %v4713_v47 = vadd.f32 %v4712_v37, %v4330_v38  ;;  %3609 = vperm.xlu1 %5031, %v1707_v33   ;;  %3604 = vperm.xlu0 %5030, %v1706_v34   ;;  %v4332_v54 = vmul.f32 %v3295_v43, %v2028_v39  ;;  %v4333_v62 = vmul.f32 %v3300_v41, %v2029_v42  ;;  %v1715_v33 = vld [vmem:[%s5104_s19 + $0x918] sm:$0xff]  ;;  %v1714_v34 = vld [vmem:[%s5104_s19 + $0x910] sm:$0xff] }
 0x246   : > { %v2036_v39 = vmul.f32 %v1268_v24, %v1268_v24  ;;  %v2037_v42 = vmul.f32 %v1269_v27, %v1269_v27  ;;  %v1276_v24 = vsub.f32 %v508_v12, %v892_v13  ;;  %v1277_v27 = vsub.f32 %v509_v17, %v893_v18  ;;  %v516_v12 = vld [vmem:[%s5170_s22 + $0x7a0] sm:$0xff]  ;;  %v517_v17 = vld [vmem:[%s5170_s22 + $0x7a8] sm:$0xff] }
 0x247   : > { %v4714_v53 = vadd.f32 %v4713_v47, %v4331_v46  ;;  %v900_v13 = vld [vmem:[%s5176_s25 + $0x7a0] sm:$0xff]  ;;  %v901_v18 = vld [vmem:[%s5176_s25 + $0x7a8] sm:$0xff] }
 0x248   : > { %v3310_v57 = vpop.permute.xlu1 %3309  ;;  %v3305_v58 = vpop.permute.xlu0 %3304 }
 0x249   : > { %v4715_v63 = vadd.f32 %v4714_v53, %v4332_v54  ;;  %3619 = vperm.xlu1 %5031, %v1709_v51   ;;  %3614 = vperm.xlu0 %5030, %v1708_v52   ;;  %v4334_v6 = vmul.f32 %v3305_v58, %v2030_v55  ;;  %v4335_v14 = vmul.f32 %v3310_v57, %v2031_v0  ;;  %v1717_v51 = vld [vmem:[%s5104_s19 + $0x928] sm:$0xff]  ;;  %v1716_v52 = vld [vmem:[%s5104_s19 + $0x920] sm:$0xff] }
 0x24a   : > { %v2038_v55 = vmul.f32 %v1270_v40, %v1270_v40  ;;  %v2039_v0 = vmul.f32 %v1271_v48, %v1271_v48  ;;  %v1278_v40 = vsub.f32 %v510_v28, %v894_v29  ;;  %v1279_v48 = vsub.f32 %v511_v35, %v895_v36  ;;  %v518_v28 = vld [vmem:[%s5170_s22 + $0x7b0] sm:$0xff]  ;;  %v519_v35 = vld [vmem:[%s5170_s22 + $0x7b8] sm:$0xff] }
 0x24b   : > { %v4716_v5 = vadd.f32 %v4715_v63, %v4333_v62  ;;  %v902_v29 = vld [vmem:[%s5176_s25 + $0x7b0] sm:$0xff]  ;;  %v903_v36 = vld [vmem:[%s5176_s25 + $0x7b8] sm:$0xff] }
 0x24c   : > { %v3320_v9 = vpop.permute.xlu1 %3319  ;;  %v3315_v11 = vpop.permute.xlu0 %3314 }
 0x24d   : > { %v4717_v15 = vadd.f32 %v4716_v5, %v4334_v6  ;;  %3629 = vperm.xlu1 %5031, %v1711_v1   ;;  %3624 = vperm.xlu0 %5030, %v1710_v2   ;;  %v4336_v22 = vmul.f32 %v3315_v11, %v2032_v7  ;;  %v4337_v30 = vmul.f32 %v3320_v9, %v2033_v10  ;;  %v1719_v1 = vld [vmem:[%s5104_s19 + $0x938] sm:$0xff]  ;;  %v1718_v2 = vld [vmem:[%s5104_s19 + $0x930] sm:$0xff] }
 0x24e   : > { %v2040_v7 = vmul.f32 %v1272_v56, %v1272_v56  ;;  %v2041_v10 = vmul.f32 %v1273_v59, %v1273_v59  ;;  %v1280_v56 = vsub.f32 %v512_v44, %v896_v45  ;;  %v1281_v59 = vsub.f32 %v513_v49, %v897_v50  ;;  %v520_v44 = vld [vmem:[%s5170_s22 + $0x7c0] sm:$0xff]  ;;  %v521_v49 = vld [vmem:[%s5170_s22 + $0x7c8] sm:$0xff] }
 0x24f   : > { %v4718_v21 = vadd.f32 %v4717_v15, %v4335_v14  ;;  %v904_v45 = vld [vmem:[%s5176_s25 + $0x7c0] sm:$0xff]  ;;  %v905_v50 = vld [vmem:[%s5176_s25 + $0x7c8] sm:$0xff] }
 0x250   : > { %v3330_v25 = vpop.permute.xlu1 %3329  ;;  %v3325_v26 = vpop.permute.xlu0 %3324 }
 0x251   : > { %v4719_v31 = vadd.f32 %v4718_v21, %v4336_v22  ;;  %3639 = vperm.xlu1 %5031, %v1713_v19   ;;  %3634 = vperm.xlu0 %5030, %v1712_v20   ;;  %v4338_v38 = vmul.f32 %v3325_v26, %v2034_v23  ;;  %v4339_v46 = vmul.f32 %v3330_v25, %v2035_v32  ;;  %v1721_v19 = vld [vmem:[%s5104_s19 + $0x948] sm:$0xff]  ;;  %v1720_v20 = vld [vmem:[%s5104_s19 + $0x940] sm:$0xff] }
 0x252   : > { %v2042_v23 = vmul.f32 %v1274_v8, %v1274_v8  ;;  %v2043_v32 = vmul.f32 %v1275_v16, %v1275_v16  ;;  %v1282_v8 = vsub.f32 %v514_v60, %v898_v61  ;;  %v1283_v16 = vsub.f32 %v515_v3, %v899_v4  ;;  %v522_v60 = vld [vmem:[%s5170_s22 + $0x7d0] sm:$0xff]  ;;  %v523_v3 = vld [vmem:[%s5170_s22 + $0x7d8] sm:$0xff] }
 0x253   : > { %v4720_v37 = vadd.f32 %v4719_v31, %v4337_v30  ;;  %v906_v61 = vld [vmem:[%s5176_s25 + $0x7d0] sm:$0xff]  ;;  %v907_v4 = vld [vmem:[%s5176_s25 + $0x7d8] sm:$0xff] }
 0x254   : > { %v3340_v41 = vpop.permute.xlu1 %3339  ;;  %v3335_v43 = vpop.permute.xlu0 %3334 }
 0x255   : > { %v4721_v47 = vadd.f32 %v4720_v37, %v4338_v38  ;;  %3649 = vperm.xlu1 %5031, %v1715_v33   ;;  %3644 = vperm.xlu0 %5030, %v1714_v34   ;;  %v4340_v54 = vmul.f32 %v3335_v43, %v2036_v39  ;;  %v4341_v62 = vmul.f32 %v3340_v41, %v2037_v42  ;;  %v1723_v33 = vld [vmem:[%s5104_s19 + $0x958] sm:$0xff]  ;;  %v1722_v34 = vld [vmem:[%s5104_s19 + $0x950] sm:$0xff] }
 0x256   : > { %v2044_v39 = vmul.f32 %v1276_v24, %v1276_v24  ;;  %v2045_v42 = vmul.f32 %v1277_v27, %v1277_v27  ;;  %v1284_v24 = vsub.f32 %v516_v12, %v900_v13  ;;  %v1285_v27 = vsub.f32 %v517_v17, %v901_v18  ;;  %v524_v12 = vld [vmem:[%s5170_s22 + $0x7e0] sm:$0xff]  ;;  %v525_v17 = vld [vmem:[%s5170_s22 + $0x7e8] sm:$0xff] }
 0x257   : > { %v4722_v53 = vadd.f32 %v4721_v47, %v4339_v46  ;;  %v908_v13 = vld [vmem:[%s5176_s25 + $0x7e0] sm:$0xff]  ;;  %v909_v18 = vld [vmem:[%s5176_s25 + $0x7e8] sm:$0xff] }
 0x258   : > { %v3350_v57 = vpop.permute.xlu1 %3349  ;;  %v3345_v58 = vpop.permute.xlu0 %3344 }
 0x259   : > { %v4723_v63 = vadd.f32 %v4722_v53, %v4340_v54  ;;  %3659 = vperm.xlu1 %5031, %v1717_v51   ;;  %3654 = vperm.xlu0 %5030, %v1716_v52   ;;  %v4342_v6 = vmul.f32 %v3345_v58, %v2038_v55  ;;  %v4343_v14 = vmul.f32 %v3350_v57, %v2039_v0  ;;  %v1725_v51 = vld [vmem:[%s5104_s19 + $0x968] sm:$0xff]  ;;  %v1724_v52 = vld [vmem:[%s5104_s19 + $0x960] sm:$0xff] }
 0x25a   : > { %v2046_v55 = vmul.f32 %v1278_v40, %v1278_v40  ;;  %v2047_v0 = vmul.f32 %v1279_v48, %v1279_v48  ;;  %v1286_v40 = vsub.f32 %v518_v28, %v902_v29  ;;  %v1287_v48 = vsub.f32 %v519_v35, %v903_v36  ;;  %v526_v28 = vld [vmem:[%s5170_s22 + $0x7f0] sm:$0xff]  ;;  %v527_v35 = vld [vmem:[%s5170_s22 + $0x7f8] sm:$0xff] }
 0x25b   : > { %v4724_v5 = vadd.f32 %v4723_v63, %v4341_v62  ;;  %v910_v29 = vld [vmem:[%s5176_s25 + $0x7f0] sm:$0xff]  ;;  %v911_v36 = vld [vmem:[%s5176_s25 + $0x7f8] sm:$0xff] }
 0x25c   : > { %v3360_v9 = vpop.permute.xlu1 %3359  ;;  %v3355_v11 = vpop.permute.xlu0 %3354 }
 0x25d   : > { %v4725_v15 = vadd.f32 %v4724_v5, %v4342_v6  ;;  %3669 = vperm.xlu1 %5031, %v1719_v1   ;;  %3664 = vperm.xlu0 %5030, %v1718_v2   ;;  %v4344_v22 = vmul.f32 %v3355_v11, %v2040_v7  ;;  %v4345_v30 = vmul.f32 %v3360_v9, %v2041_v10  ;;  %v1727_v1 = vld [vmem:[%s5104_s19 + $0x978] sm:$0xff]  ;;  %v1726_v2 = vld [vmem:[%s5104_s19 + $0x970] sm:$0xff] }
 0x25e   : > { %v2048_v7 = vmul.f32 %v1280_v56, %v1280_v56  ;;  %v2049_v10 = vmul.f32 %v1281_v59, %v1281_v59  ;;  %v1288_v56 = vsub.f32 %v520_v44, %v904_v45  ;;  %v1289_v59 = vsub.f32 %v521_v49, %v905_v50  ;;  %v528_v44 = vld [vmem:[%s5170_s22 + $0x800] sm:$0xff]  ;;  %v529_v49 = vld [vmem:[%s5170_s22 + $0x808] sm:$0xff] }
 0x25f   : > { %v4726_v21 = vadd.f32 %v4725_v15, %v4343_v14  ;;  %v912_v45 = vld [vmem:[%s5176_s25 + $0x800] sm:$0xff]  ;;  %v913_v50 = vld [vmem:[%s5176_s25 + $0x808] sm:$0xff] }
 0x260   : > { %v3370_v25 = vpop.permute.xlu1 %3369  ;;  %v3365_v26 = vpop.permute.xlu0 %3364 }
 0x261   : > { %v4727_v31 = vadd.f32 %v4726_v21, %v4344_v22  ;;  %3679 = vperm.xlu1 %5031, %v1721_v19   ;;  %3674 = vperm.xlu0 %5030, %v1720_v20   ;;  %v4346_v38 = vmul.f32 %v3365_v26, %v2042_v23  ;;  %v4347_v46 = vmul.f32 %v3370_v25, %v2043_v32  ;;  %v1729_v19 = vld [vmem:[%s5104_s19 + $0x988] sm:$0xff]  ;;  %v1728_v20 = vld [vmem:[%s5104_s19 + $0x980] sm:$0xff] }
 0x262   : > { %v2050_v23 = vmul.f32 %v1282_v8, %v1282_v8  ;;  %v2051_v32 = vmul.f32 %v1283_v16, %v1283_v16  ;;  %v1290_v8 = vsub.f32 %v522_v60, %v906_v61  ;;  %v1291_v16 = vsub.f32 %v523_v3, %v907_v4  ;;  %v530_v60 = vld [vmem:[%s5170_s22 + $0x810] sm:$0xff]  ;;  %v531_v3 = vld [vmem:[%s5170_s22 + $0x818] sm:$0xff] }
 0x263   : > { %v4728_v37 = vadd.f32 %v4727_v31, %v4345_v30  ;;  %v914_v61 = vld [vmem:[%s5176_s25 + $0x810] sm:$0xff]  ;;  %v915_v4 = vld [vmem:[%s5176_s25 + $0x818] sm:$0xff] }
 0x264   : > { %v3380_v41 = vpop.permute.xlu1 %3379  ;;  %v3375_v43 = vpop.permute.xlu0 %3374 }
 0x265   : > { %v4729_v47 = vadd.f32 %v4728_v37, %v4346_v38  ;;  %3689 = vperm.xlu1 %5031, %v1723_v33   ;;  %3684 = vperm.xlu0 %5030, %v1722_v34   ;;  %v4348_v54 = vmul.f32 %v3375_v43, %v2044_v39  ;;  %v4349_v62 = vmul.f32 %v3380_v41, %v2045_v42  ;;  %v1731_v33 = vld [vmem:[%s5104_s19 + $0x998] sm:$0xff]  ;;  %v1730_v34 = vld [vmem:[%s5104_s19 + $0x990] sm:$0xff] }
 0x266   : > { %v2052_v39 = vmul.f32 %v1284_v24, %v1284_v24  ;;  %v2053_v42 = vmul.f32 %v1285_v27, %v1285_v27  ;;  %v1292_v24 = vsub.f32 %v524_v12, %v908_v13  ;;  %v1293_v27 = vsub.f32 %v525_v17, %v909_v18  ;;  %v532_v12 = vld [vmem:[%s5170_s22 + $0x820] sm:$0xff]  ;;  %v533_v17 = vld [vmem:[%s5170_s22 + $0x828] sm:$0xff] }
 0x267   : > { %v4730_v53 = vadd.f32 %v4729_v47, %v4347_v46  ;;  %v916_v13 = vld [vmem:[%s5176_s25 + $0x820] sm:$0xff]  ;;  %v917_v18 = vld [vmem:[%s5176_s25 + $0x828] sm:$0xff] }
 0x268   : > { %v3390_v57 = vpop.permute.xlu1 %3389  ;;  %v3385_v58 = vpop.permute.xlu0 %3384 }
 0x269   : > { %v4731_v63 = vadd.f32 %v4730_v53, %v4348_v54  ;;  %3699 = vperm.xlu1 %5031, %v1725_v51   ;;  %3694 = vperm.xlu0 %5030, %v1724_v52   ;;  %v4350_v6 = vmul.f32 %v3385_v58, %v2046_v55  ;;  %v4351_v14 = vmul.f32 %v3390_v57, %v2047_v0  ;;  %v1733_v51 = vld [vmem:[%s5104_s19 + $0x9a8] sm:$0xff]  ;;  %v1732_v52 = vld [vmem:[%s5104_s19 + $0x9a0] sm:$0xff] }
 0x26a   : > { %v2054_v55 = vmul.f32 %v1286_v40, %v1286_v40  ;;  %v2055_v0 = vmul.f32 %v1287_v48, %v1287_v48  ;;  %v1294_v40 = vsub.f32 %v526_v28, %v910_v29  ;;  %v1295_v48 = vsub.f32 %v527_v35, %v911_v36  ;;  %v534_v28 = vld [vmem:[%s5170_s22 + $0x830] sm:$0xff]  ;;  %v535_v35 = vld [vmem:[%s5170_s22 + $0x838] sm:$0xff] }
 0x26b   : > { %v4732_v5 = vadd.f32 %v4731_v63, %v4349_v62  ;;  %v918_v29 = vld [vmem:[%s5176_s25 + $0x830] sm:$0xff]  ;;  %v919_v36 = vld [vmem:[%s5176_s25 + $0x838] sm:$0xff] }
 0x26c   : > { %v3400_v9 = vpop.permute.xlu1 %3399  ;;  %v3395_v11 = vpop.permute.xlu0 %3394 }
 0x26d   : > { %v4733_v15 = vadd.f32 %v4732_v5, %v4350_v6  ;;  %3709 = vperm.xlu1 %5031, %v1727_v1   ;;  %3704 = vperm.xlu0 %5030, %v1726_v2   ;;  %v4352_v22 = vmul.f32 %v3395_v11, %v2048_v7  ;;  %v4353_v30 = vmul.f32 %v3400_v9, %v2049_v10  ;;  %v1735_v1 = vld [vmem:[%s5104_s19 + $0x9b8] sm:$0xff]  ;;  %v1734_v2 = vld [vmem:[%s5104_s19 + $0x9b0] sm:$0xff] }
 0x26e   : > { %v2056_v7 = vmul.f32 %v1288_v56, %v1288_v56  ;;  %v2057_v10 = vmul.f32 %v1289_v59, %v1289_v59  ;;  %v1296_v56 = vsub.f32 %v528_v44, %v912_v45  ;;  %v1297_v59 = vsub.f32 %v529_v49, %v913_v50  ;;  %v536_v44 = vld [vmem:[%s5170_s22 + $0x840] sm:$0xff]  ;;  %v537_v49 = vld [vmem:[%s5170_s22 + $0x848] sm:$0xff] }
 0x26f   : > { %v4734_v21 = vadd.f32 %v4733_v15, %v4351_v14  ;;  %v920_v45 = vld [vmem:[%s5176_s25 + $0x840] sm:$0xff]  ;;  %v921_v50 = vld [vmem:[%s5176_s25 + $0x848] sm:$0xff] }
 0x270   : > { %v3410_v25 = vpop.permute.xlu1 %3409  ;;  %v3405_v26 = vpop.permute.xlu0 %3404 }
 0x271   : > { %v4735_v31 = vadd.f32 %v4734_v21, %v4352_v22  ;;  %3719 = vperm.xlu1 %5031, %v1729_v19   ;;  %3714 = vperm.xlu0 %5030, %v1728_v20   ;;  %v4354_v38 = vmul.f32 %v3405_v26, %v2050_v23  ;;  %v4355_v46 = vmul.f32 %v3410_v25, %v2051_v32  ;;  %v1737_v19 = vld [vmem:[%s5104_s19 + $0x9c8] sm:$0xff]  ;;  %v1736_v20 = vld [vmem:[%s5104_s19 + $0x9c0] sm:$0xff] }
 0x272   : > { %v2058_v23 = vmul.f32 %v1290_v8, %v1290_v8  ;;  %v2059_v32 = vmul.f32 %v1291_v16, %v1291_v16  ;;  %v1298_v8 = vsub.f32 %v530_v60, %v914_v61  ;;  %v1299_v16 = vsub.f32 %v531_v3, %v915_v4  ;;  %v538_v60 = vld [vmem:[%s5170_s22 + $0x850] sm:$0xff]  ;;  %v539_v3 = vld [vmem:[%s5170_s22 + $0x858] sm:$0xff] }
 0x273   : > { %v4736_v37 = vadd.f32 %v4735_v31, %v4353_v30  ;;  %v922_v61 = vld [vmem:[%s5176_s25 + $0x850] sm:$0xff]  ;;  %v923_v4 = vld [vmem:[%s5176_s25 + $0x858] sm:$0xff] }
 0x274   : > { %v3420_v41 = vpop.permute.xlu1 %3419  ;;  %v3415_v43 = vpop.permute.xlu0 %3414 }
 0x275   : > { %v4737_v47 = vadd.f32 %v4736_v37, %v4354_v38  ;;  %3729 = vperm.xlu1 %5031, %v1731_v33   ;;  %3724 = vperm.xlu0 %5030, %v1730_v34   ;;  %v4356_v54 = vmul.f32 %v3415_v43, %v2052_v39  ;;  %v4357_v62 = vmul.f32 %v3420_v41, %v2053_v42  ;;  %v1739_v33 = vld [vmem:[%s5104_s19 + $0x9d8] sm:$0xff]  ;;  %v1738_v34 = vld [vmem:[%s5104_s19 + $0x9d0] sm:$0xff] }
 0x276   : > { %v2060_v39 = vmul.f32 %v1292_v24, %v1292_v24  ;;  %v2061_v42 = vmul.f32 %v1293_v27, %v1293_v27  ;;  %v1300_v24 = vsub.f32 %v532_v12, %v916_v13  ;;  %v1301_v27 = vsub.f32 %v533_v17, %v917_v18  ;;  %v540_v12 = vld [vmem:[%s5170_s22 + $0x860] sm:$0xff]  ;;  %v541_v17 = vld [vmem:[%s5170_s22 + $0x868] sm:$0xff] }
 0x277   : > { %v4738_v53 = vadd.f32 %v4737_v47, %v4355_v46  ;;  %v924_v13 = vld [vmem:[%s5176_s25 + $0x860] sm:$0xff]  ;;  %v925_v18 = vld [vmem:[%s5176_s25 + $0x868] sm:$0xff] }
 0x278   : > { %v3430_v57 = vpop.permute.xlu1 %3429  ;;  %v3425_v58 = vpop.permute.xlu0 %3424 }
 0x279   : > { %v4739_v63 = vadd.f32 %v4738_v53, %v4356_v54  ;;  %3739 = vperm.xlu1 %5031, %v1733_v51   ;;  %3734 = vperm.xlu0 %5030, %v1732_v52   ;;  %v4358_v6 = vmul.f32 %v3425_v58, %v2054_v55  ;;  %v4359_v14 = vmul.f32 %v3430_v57, %v2055_v0  ;;  %v1741_v51 = vld [vmem:[%s5104_s19 + $0x9e8] sm:$0xff]  ;;  %v1740_v52 = vld [vmem:[%s5104_s19 + $0x9e0] sm:$0xff] }
 0x27a   : > { %v2062_v55 = vmul.f32 %v1294_v40, %v1294_v40  ;;  %v2063_v0 = vmul.f32 %v1295_v48, %v1295_v48  ;;  %v1302_v40 = vsub.f32 %v534_v28, %v918_v29  ;;  %v1303_v48 = vsub.f32 %v535_v35, %v919_v36  ;;  %v542_v28 = vld [vmem:[%s5170_s22 + $0x870] sm:$0xff]  ;;  %v543_v35 = vld [vmem:[%s5170_s22 + $0x878] sm:$0xff] }
 0x27b   : > { %v4740_v5 = vadd.f32 %v4739_v63, %v4357_v62  ;;  %v926_v29 = vld [vmem:[%s5176_s25 + $0x870] sm:$0xff]  ;;  %v927_v36 = vld [vmem:[%s5176_s25 + $0x878] sm:$0xff] }
 0x27c   : > { %v3440_v9 = vpop.permute.xlu1 %3439  ;;  %v3435_v11 = vpop.permute.xlu0 %3434 }
 0x27d   : > { %v4741_v15 = vadd.f32 %v4740_v5, %v4358_v6  ;;  %3749 = vperm.xlu1 %5031, %v1735_v1   ;;  %3744 = vperm.xlu0 %5030, %v1734_v2   ;;  %v4360_v22 = vmul.f32 %v3435_v11, %v2056_v7  ;;  %v4361_v30 = vmul.f32 %v3440_v9, %v2057_v10  ;;  %v1743_v1 = vld [vmem:[%s5104_s19 + $0x9f8] sm:$0xff]  ;;  %v1742_v2 = vld [vmem:[%s5104_s19 + $0x9f0] sm:$0xff] }
 0x27e   : > { %v2064_v7 = vmul.f32 %v1296_v56, %v1296_v56  ;;  %v2065_v10 = vmul.f32 %v1297_v59, %v1297_v59  ;;  %v1304_v56 = vsub.f32 %v536_v44, %v920_v45  ;;  %v1305_v59 = vsub.f32 %v537_v49, %v921_v50  ;;  %v544_v44 = vld [vmem:[%s5170_s22 + $0x880] sm:$0xff]  ;;  %v545_v49 = vld [vmem:[%s5170_s22 + $0x888] sm:$0xff] }
 0x27f   : > { %v4742_v21 = vadd.f32 %v4741_v15, %v4359_v14  ;;  %v928_v45 = vld [vmem:[%s5176_s25 + $0x880] sm:$0xff]  ;;  %v929_v50 = vld [vmem:[%s5176_s25 + $0x888] sm:$0xff] }
 0x280   : > { %v3450_v25 = vpop.permute.xlu1 %3449  ;;  %v3445_v26 = vpop.permute.xlu0 %3444 }
 0x281   : > { %v4743_v31 = vadd.f32 %v4742_v21, %v4360_v22  ;;  %3759 = vperm.xlu1 %5031, %v1737_v19   ;;  %3754 = vperm.xlu0 %5030, %v1736_v20   ;;  %v4362_v38 = vmul.f32 %v3445_v26, %v2058_v23  ;;  %v4363_v46 = vmul.f32 %v3450_v25, %v2059_v32  ;;  %v1745_v19 = vld [vmem:[%s5104_s19 + $0xa08] sm:$0xff]  ;;  %v1744_v20 = vld [vmem:[%s5104_s19 + $0xa00] sm:$0xff] }
 0x282   : > { %v2066_v23 = vmul.f32 %v1298_v8, %v1298_v8  ;;  %v2067_v32 = vmul.f32 %v1299_v16, %v1299_v16  ;;  %v1306_v8 = vsub.f32 %v538_v60, %v922_v61  ;;  %v1307_v16 = vsub.f32 %v539_v3, %v923_v4  ;;  %v546_v60 = vld [vmem:[%s5170_s22 + $0x890] sm:$0xff]  ;;  %v547_v3 = vld [vmem:[%s5170_s22 + $0x898] sm:$0xff] }
 0x283   : > { %v4744_v37 = vadd.f32 %v4743_v31, %v4361_v30  ;;  %v930_v61 = vld [vmem:[%s5176_s25 + $0x890] sm:$0xff]  ;;  %v931_v4 = vld [vmem:[%s5176_s25 + $0x898] sm:$0xff] }
 0x284   : > { %v3460_v41 = vpop.permute.xlu1 %3459  ;;  %v3455_v43 = vpop.permute.xlu0 %3454 }
 0x285   : > { %v4745_v47 = vadd.f32 %v4744_v37, %v4362_v38  ;;  %3769 = vperm.xlu1 %5031, %v1739_v33   ;;  %3764 = vperm.xlu0 %5030, %v1738_v34   ;;  %v4364_v54 = vmul.f32 %v3455_v43, %v2060_v39  ;;  %v4365_v62 = vmul.f32 %v3460_v41, %v2061_v42  ;;  %v1747_v33 = vld [vmem:[%s5104_s19 + $0xa18] sm:$0xff]  ;;  %v1746_v34 = vld [vmem:[%s5104_s19 + $0xa10] sm:$0xff] }
 0x286   : > { %v2068_v39 = vmul.f32 %v1300_v24, %v1300_v24  ;;  %v2069_v42 = vmul.f32 %v1301_v27, %v1301_v27  ;;  %v1308_v24 = vsub.f32 %v540_v12, %v924_v13  ;;  %v1309_v27 = vsub.f32 %v541_v17, %v925_v18  ;;  %v548_v12 = vld [vmem:[%s5170_s22 + $0x8a0] sm:$0xff]  ;;  %v549_v17 = vld [vmem:[%s5170_s22 + $0x8a8] sm:$0xff] }
 0x287   : > { %v4746_v53 = vadd.f32 %v4745_v47, %v4363_v46  ;;  %v932_v13 = vld [vmem:[%s5176_s25 + $0x8a0] sm:$0xff]  ;;  %v933_v18 = vld [vmem:[%s5176_s25 + $0x8a8] sm:$0xff] }
 0x288   : > { %v3470_v57 = vpop.permute.xlu1 %3469  ;;  %v3465_v58 = vpop.permute.xlu0 %3464 }
 0x289   : > { %v4747_v63 = vadd.f32 %v4746_v53, %v4364_v54  ;;  %3779 = vperm.xlu1 %5031, %v1741_v51   ;;  %3774 = vperm.xlu0 %5030, %v1740_v52   ;;  %v4366_v6 = vmul.f32 %v3465_v58, %v2062_v55  ;;  %v4367_v14 = vmul.f32 %v3470_v57, %v2063_v0  ;;  %v1749_v51 = vld [vmem:[%s5104_s19 + $0xa28] sm:$0xff]  ;;  %v1748_v52 = vld [vmem:[%s5104_s19 + $0xa20] sm:$0xff] }
 0x28a   : > { %v2070_v55 = vmul.f32 %v1302_v40, %v1302_v40  ;;  %v2071_v0 = vmul.f32 %v1303_v48, %v1303_v48  ;;  %v1310_v40 = vsub.f32 %v542_v28, %v926_v29  ;;  %v1311_v48 = vsub.f32 %v543_v35, %v927_v36  ;;  %v550_v28 = vld [vmem:[%s5170_s22 + $0x8b0] sm:$0xff]  ;;  %v551_v35 = vld [vmem:[%s5170_s22 + $0x8b8] sm:$0xff] }
 0x28b   : > { %v4748_v5 = vadd.f32 %v4747_v63, %v4365_v62  ;;  %v934_v29 = vld [vmem:[%s5176_s25 + $0x8b0] sm:$0xff]  ;;  %v935_v36 = vld [vmem:[%s5176_s25 + $0x8b8] sm:$0xff] }
 0x28c   : > { %v3480_v9 = vpop.permute.xlu1 %3479  ;;  %v3475_v11 = vpop.permute.xlu0 %3474 }
 0x28d   : > { %v4749_v15 = vadd.f32 %v4748_v5, %v4366_v6  ;;  %3789 = vperm.xlu1 %5031, %v1743_v1   ;;  %3784 = vperm.xlu0 %5030, %v1742_v2   ;;  %v4368_v22 = vmul.f32 %v3475_v11, %v2064_v7  ;;  %v4369_v30 = vmul.f32 %v3480_v9, %v2065_v10  ;;  %v1751_v1 = vld [vmem:[%s5104_s19 + $0xa38] sm:$0xff]  ;;  %v1750_v2 = vld [vmem:[%s5104_s19 + $0xa30] sm:$0xff] }
 0x28e   : > { %v2072_v7 = vmul.f32 %v1304_v56, %v1304_v56  ;;  %v2073_v10 = vmul.f32 %v1305_v59, %v1305_v59  ;;  %v1312_v56 = vsub.f32 %v544_v44, %v928_v45  ;;  %v1313_v59 = vsub.f32 %v545_v49, %v929_v50  ;;  %v552_v44 = vld [vmem:[%s5170_s22 + $0x8c0] sm:$0xff]  ;;  %v553_v49 = vld [vmem:[%s5170_s22 + $0x8c8] sm:$0xff] }
 0x28f   : > { %v4750_v21 = vadd.f32 %v4749_v15, %v4367_v14  ;;  %v936_v45 = vld [vmem:[%s5176_s25 + $0x8c0] sm:$0xff]  ;;  %v937_v50 = vld [vmem:[%s5176_s25 + $0x8c8] sm:$0xff] }
 0x290   : > { %v3490_v25 = vpop.permute.xlu1 %3489  ;;  %v3485_v26 = vpop.permute.xlu0 %3484 }
 0x291   : > { %v4751_v31 = vadd.f32 %v4750_v21, %v4368_v22  ;;  %3799 = vperm.xlu1 %5031, %v1745_v19   ;;  %3794 = vperm.xlu0 %5030, %v1744_v20   ;;  %v4370_v38 = vmul.f32 %v3485_v26, %v2066_v23  ;;  %v4371_v46 = vmul.f32 %v3490_v25, %v2067_v32  ;;  %v1753_v19 = vld [vmem:[%s5104_s19 + $0xa48] sm:$0xff]  ;;  %v1752_v20 = vld [vmem:[%s5104_s19 + $0xa40] sm:$0xff] }
 0x292   : > { %v2074_v23 = vmul.f32 %v1306_v8, %v1306_v8  ;;  %v2075_v32 = vmul.f32 %v1307_v16, %v1307_v16  ;;  %v1314_v8 = vsub.f32 %v546_v60, %v930_v61  ;;  %v1315_v16 = vsub.f32 %v547_v3, %v931_v4  ;;  %v554_v60 = vld [vmem:[%s5170_s22 + $0x8d0] sm:$0xff]  ;;  %v555_v3 = vld [vmem:[%s5170_s22 + $0x8d8] sm:$0xff] }
 0x293   : > { %v4752_v37 = vadd.f32 %v4751_v31, %v4369_v30  ;;  %v938_v61 = vld [vmem:[%s5176_s25 + $0x8d0] sm:$0xff]  ;;  %v939_v4 = vld [vmem:[%s5176_s25 + $0x8d8] sm:$0xff] }
 0x294   : > { %v3500_v41 = vpop.permute.xlu1 %3499  ;;  %v3495_v43 = vpop.permute.xlu0 %3494 }
 0x295   : > { %v4753_v47 = vadd.f32 %v4752_v37, %v4370_v38  ;;  %3809 = vperm.xlu1 %5031, %v1747_v33   ;;  %3804 = vperm.xlu0 %5030, %v1746_v34   ;;  %v4372_v54 = vmul.f32 %v3495_v43, %v2068_v39  ;;  %v4373_v62 = vmul.f32 %v3500_v41, %v2069_v42  ;;  %v1755_v33 = vld [vmem:[%s5104_s19 + $0xa58] sm:$0xff]  ;;  %v1754_v34 = vld [vmem:[%s5104_s19 + $0xa50] sm:$0xff] }
 0x296   : > { %v2076_v39 = vmul.f32 %v1308_v24, %v1308_v24  ;;  %v2077_v42 = vmul.f32 %v1309_v27, %v1309_v27  ;;  %v1316_v24 = vsub.f32 %v548_v12, %v932_v13  ;;  %v1317_v27 = vsub.f32 %v549_v17, %v933_v18  ;;  %v556_v12 = vld [vmem:[%s5170_s22 + $0x8e0] sm:$0xff]  ;;  %v557_v17 = vld [vmem:[%s5170_s22 + $0x8e8] sm:$0xff] }
 0x297   : > { %v4754_v53 = vadd.f32 %v4753_v47, %v4371_v46  ;;  %v940_v13 = vld [vmem:[%s5176_s25 + $0x8e0] sm:$0xff]  ;;  %v941_v18 = vld [vmem:[%s5176_s25 + $0x8e8] sm:$0xff] }
 0x298   : > { %v3510_v57 = vpop.permute.xlu1 %3509  ;;  %v3505_v58 = vpop.permute.xlu0 %3504 }
 0x299   : > { %v4755_v63 = vadd.f32 %v4754_v53, %v4372_v54  ;;  %3819 = vperm.xlu1 %5031, %v1749_v51   ;;  %3814 = vperm.xlu0 %5030, %v1748_v52   ;;  %v4374_v6 = vmul.f32 %v3505_v58, %v2070_v55  ;;  %v4375_v14 = vmul.f32 %v3510_v57, %v2071_v0  ;;  %v1757_v51 = vld [vmem:[%s5104_s19 + $0xa68] sm:$0xff]  ;;  %v1756_v52 = vld [vmem:[%s5104_s19 + $0xa60] sm:$0xff] }
 0x29a   : > { %v2078_v55 = vmul.f32 %v1310_v40, %v1310_v40  ;;  %v2079_v0 = vmul.f32 %v1311_v48, %v1311_v48  ;;  %v1318_v40 = vsub.f32 %v550_v28, %v934_v29  ;;  %v1319_v48 = vsub.f32 %v551_v35, %v935_v36  ;;  %v558_v28 = vld [vmem:[%s5170_s22 + $0x8f0] sm:$0xff]  ;;  %v559_v35 = vld [vmem:[%s5170_s22 + $0x8f8] sm:$0xff] }
 0x29b   : > { %v4756_v5 = vadd.f32 %v4755_v63, %v4373_v62  ;;  %v942_v29 = vld [vmem:[%s5176_s25 + $0x8f0] sm:$0xff]  ;;  %v943_v36 = vld [vmem:[%s5176_s25 + $0x8f8] sm:$0xff] }
 0x29c   : > { %v3520_v9 = vpop.permute.xlu1 %3519  ;;  %v3515_v11 = vpop.permute.xlu0 %3514 }
 0x29d   : > { %v4757_v15 = vadd.f32 %v4756_v5, %v4374_v6  ;;  %3829 = vperm.xlu1 %5031, %v1751_v1   ;;  %3824 = vperm.xlu0 %5030, %v1750_v2   ;;  %v4376_v22 = vmul.f32 %v3515_v11, %v2072_v7  ;;  %v4377_v30 = vmul.f32 %v3520_v9, %v2073_v10  ;;  %v1759_v1 = vld [vmem:[%s5104_s19 + $0xa78] sm:$0xff]  ;;  %v1758_v2 = vld [vmem:[%s5104_s19 + $0xa70] sm:$0xff] }
 0x29e   : > { %v2080_v7 = vmul.f32 %v1312_v56, %v1312_v56  ;;  %v2081_v10 = vmul.f32 %v1313_v59, %v1313_v59  ;;  %v1320_v56 = vsub.f32 %v552_v44, %v936_v45  ;;  %v1321_v59 = vsub.f32 %v553_v49, %v937_v50  ;;  %v560_v44 = vld [vmem:[%s5170_s22 + $0x900] sm:$0xff]  ;;  %v561_v49 = vld [vmem:[%s5170_s22 + $0x908] sm:$0xff] }
 0x29f   : > { %v4758_v21 = vadd.f32 %v4757_v15, %v4375_v14  ;;  %v944_v45 = vld [vmem:[%s5176_s25 + $0x900] sm:$0xff]  ;;  %v945_v50 = vld [vmem:[%s5176_s25 + $0x908] sm:$0xff] }
 0x2a0   : > { %v3530_v25 = vpop.permute.xlu1 %3529  ;;  %v3525_v26 = vpop.permute.xlu0 %3524 }
 0x2a1   : > { %v4759_v31 = vadd.f32 %v4758_v21, %v4376_v22  ;;  %3839 = vperm.xlu1 %5031, %v1753_v19   ;;  %3834 = vperm.xlu0 %5030, %v1752_v20   ;;  %v4378_v38 = vmul.f32 %v3525_v26, %v2074_v23  ;;  %v4379_v46 = vmul.f32 %v3530_v25, %v2075_v32  ;;  %v1761_v19 = vld [vmem:[%s5104_s19 + $0xa88] sm:$0xff]  ;;  %v1760_v20 = vld [vmem:[%s5104_s19 + $0xa80] sm:$0xff] }
 0x2a2   : > { %v2082_v23 = vmul.f32 %v1314_v8, %v1314_v8  ;;  %v2083_v32 = vmul.f32 %v1315_v16, %v1315_v16  ;;  %v1322_v8 = vsub.f32 %v554_v60, %v938_v61  ;;  %v1323_v16 = vsub.f32 %v555_v3, %v939_v4  ;;  %v562_v60 = vld [vmem:[%s5170_s22 + $0x910] sm:$0xff]  ;;  %v563_v3 = vld [vmem:[%s5170_s22 + $0x918] sm:$0xff] }
 0x2a3   : > { %v4760_v37 = vadd.f32 %v4759_v31, %v4377_v30  ;;  %v946_v61 = vld [vmem:[%s5176_s25 + $0x910] sm:$0xff]  ;;  %v947_v4 = vld [vmem:[%s5176_s25 + $0x918] sm:$0xff] }
 0x2a4   : > { %v3540_v41 = vpop.permute.xlu1 %3539  ;;  %v3535_v43 = vpop.permute.xlu0 %3534 }
 0x2a5   : > { %v4761_v47 = vadd.f32 %v4760_v37, %v4378_v38  ;;  %3849 = vperm.xlu1 %5031, %v1755_v33   ;;  %3844 = vperm.xlu0 %5030, %v1754_v34   ;;  %v4380_v54 = vmul.f32 %v3535_v43, %v2076_v39  ;;  %v4381_v62 = vmul.f32 %v3540_v41, %v2077_v42  ;;  %v1763_v33 = vld [vmem:[%s5104_s19 + $0xa98] sm:$0xff]  ;;  %v1762_v34 = vld [vmem:[%s5104_s19 + $0xa90] sm:$0xff] }
 0x2a6   : > { %v2084_v39 = vmul.f32 %v1316_v24, %v1316_v24  ;;  %v2085_v42 = vmul.f32 %v1317_v27, %v1317_v27  ;;  %v1324_v24 = vsub.f32 %v556_v12, %v940_v13  ;;  %v1325_v27 = vsub.f32 %v557_v17, %v941_v18  ;;  %v564_v12 = vld [vmem:[%s5170_s22 + $0x920] sm:$0xff]  ;;  %v565_v17 = vld [vmem:[%s5170_s22 + $0x928] sm:$0xff] }
 0x2a7   : > { %v4762_v53 = vadd.f32 %v4761_v47, %v4379_v46  ;;  %v948_v13 = vld [vmem:[%s5176_s25 + $0x920] sm:$0xff]  ;;  %v949_v18 = vld [vmem:[%s5176_s25 + $0x928] sm:$0xff] }
 0x2a8   : > { %v3550_v57 = vpop.permute.xlu1 %3549  ;;  %v3545_v58 = vpop.permute.xlu0 %3544 }
 0x2a9   : > { %v4763_v63 = vadd.f32 %v4762_v53, %v4380_v54  ;;  %3859 = vperm.xlu1 %5031, %v1757_v51   ;;  %3854 = vperm.xlu0 %5030, %v1756_v52   ;;  %v4382_v6 = vmul.f32 %v3545_v58, %v2078_v55  ;;  %v4383_v14 = vmul.f32 %v3550_v57, %v2079_v0  ;;  %v1765_v51 = vld [vmem:[%s5104_s19 + $0xaa8] sm:$0xff]  ;;  %v1764_v52 = vld [vmem:[%s5104_s19 + $0xaa0] sm:$0xff] }
 0x2aa   : > { %v2086_v55 = vmul.f32 %v1318_v40, %v1318_v40  ;;  %v2087_v0 = vmul.f32 %v1319_v48, %v1319_v48  ;;  %v1326_v40 = vsub.f32 %v558_v28, %v942_v29  ;;  %v1327_v48 = vsub.f32 %v559_v35, %v943_v36  ;;  %v566_v28 = vld [vmem:[%s5170_s22 + $0x930] sm:$0xff]  ;;  %v567_v35 = vld [vmem:[%s5170_s22 + $0x938] sm:$0xff] }
 0x2ab   : > { %v4764_v5 = vadd.f32 %v4763_v63, %v4381_v62  ;;  %v950_v29 = vld [vmem:[%s5176_s25 + $0x930] sm:$0xff]  ;;  %v951_v36 = vld [vmem:[%s5176_s25 + $0x938] sm:$0xff] }
 0x2ac   : > { %v3560_v9 = vpop.permute.xlu1 %3559  ;;  %v3555_v11 = vpop.permute.xlu0 %3554 }
 0x2ad   : > { %v4765_v15 = vadd.f32 %v4764_v5, %v4382_v6  ;;  %3869 = vperm.xlu1 %5031, %v1759_v1   ;;  %3864 = vperm.xlu0 %5030, %v1758_v2   ;;  %v4384_v22 = vmul.f32 %v3555_v11, %v2080_v7  ;;  %v4385_v30 = vmul.f32 %v3560_v9, %v2081_v10  ;;  %v1767_v1 = vld [vmem:[%s5104_s19 + $0xab8] sm:$0xff]  ;;  %v1766_v2 = vld [vmem:[%s5104_s19 + $0xab0] sm:$0xff] }
 0x2ae   : > { %v2088_v7 = vmul.f32 %v1320_v56, %v1320_v56  ;;  %v2089_v10 = vmul.f32 %v1321_v59, %v1321_v59  ;;  %v1328_v56 = vsub.f32 %v560_v44, %v944_v45  ;;  %v1329_v59 = vsub.f32 %v561_v49, %v945_v50  ;;  %v568_v44 = vld [vmem:[%s5170_s22 + $0x940] sm:$0xff]  ;;  %v569_v49 = vld [vmem:[%s5170_s22 + $0x948] sm:$0xff] }
 0x2af   : > { %v4766_v21 = vadd.f32 %v4765_v15, %v4383_v14  ;;  %v952_v45 = vld [vmem:[%s5176_s25 + $0x940] sm:$0xff]  ;;  %v953_v50 = vld [vmem:[%s5176_s25 + $0x948] sm:$0xff] }
 0x2b0   : > { %v3570_v25 = vpop.permute.xlu1 %3569  ;;  %v3565_v26 = vpop.permute.xlu0 %3564 }
 0x2b1   : > { %v4767_v31 = vadd.f32 %v4766_v21, %v4384_v22  ;;  %3879 = vperm.xlu1 %5031, %v1761_v19   ;;  %3874 = vperm.xlu0 %5030, %v1760_v20   ;;  %v4386_v38 = vmul.f32 %v3565_v26, %v2082_v23  ;;  %v4387_v46 = vmul.f32 %v3570_v25, %v2083_v32  ;;  %v1769_v19 = vld [vmem:[%s5104_s19 + $0xac8] sm:$0xff]  ;;  %v1768_v20 = vld [vmem:[%s5104_s19 + $0xac0] sm:$0xff] }
 0x2b2   : > { %v2090_v23 = vmul.f32 %v1322_v8, %v1322_v8  ;;  %v2091_v32 = vmul.f32 %v1323_v16, %v1323_v16  ;;  %v1330_v8 = vsub.f32 %v562_v60, %v946_v61  ;;  %v1331_v16 = vsub.f32 %v563_v3, %v947_v4  ;;  %v570_v60 = vld [vmem:[%s5170_s22 + $0x950] sm:$0xff]  ;;  %v571_v3 = vld [vmem:[%s5170_s22 + $0x958] sm:$0xff] }
 0x2b3   : > { %v4768_v37 = vadd.f32 %v4767_v31, %v4385_v30  ;;  %v954_v61 = vld [vmem:[%s5176_s25 + $0x950] sm:$0xff]  ;;  %v955_v4 = vld [vmem:[%s5176_s25 + $0x958] sm:$0xff] }
 0x2b4   : > { %v3580_v41 = vpop.permute.xlu1 %3579  ;;  %v3575_v43 = vpop.permute.xlu0 %3574 }
 0x2b5   : > { %v4769_v47 = vadd.f32 %v4768_v37, %v4386_v38  ;;  %3889 = vperm.xlu1 %5031, %v1763_v33   ;;  %3884 = vperm.xlu0 %5030, %v1762_v34   ;;  %v4388_v54 = vmul.f32 %v3575_v43, %v2084_v39  ;;  %v4389_v62 = vmul.f32 %v3580_v41, %v2085_v42  ;;  %v1771_v33 = vld [vmem:[%s5104_s19 + $0xad8] sm:$0xff]  ;;  %v1770_v34 = vld [vmem:[%s5104_s19 + $0xad0] sm:$0xff] }
 0x2b6   : > { %v2092_v39 = vmul.f32 %v1324_v24, %v1324_v24  ;;  %v2093_v42 = vmul.f32 %v1325_v27, %v1325_v27  ;;  %v1332_v24 = vsub.f32 %v564_v12, %v948_v13  ;;  %v1333_v27 = vsub.f32 %v565_v17, %v949_v18  ;;  %v572_v12 = vld [vmem:[%s5170_s22 + $0x960] sm:$0xff]  ;;  %v573_v17 = vld [vmem:[%s5170_s22 + $0x968] sm:$0xff] }
 0x2b7   : > { %v4770_v53 = vadd.f32 %v4769_v47, %v4387_v46  ;;  %v956_v13 = vld [vmem:[%s5176_s25 + $0x960] sm:$0xff]  ;;  %v957_v18 = vld [vmem:[%s5176_s25 + $0x968] sm:$0xff] }
 0x2b8   : > { %v3590_v57 = vpop.permute.xlu1 %3589  ;;  %v3585_v58 = vpop.permute.xlu0 %3584 }
 0x2b9   : > { %v4771_v63 = vadd.f32 %v4770_v53, %v4388_v54  ;;  %3899 = vperm.xlu1 %5031, %v1765_v51   ;;  %3894 = vperm.xlu0 %5030, %v1764_v52   ;;  %v4390_v6 = vmul.f32 %v3585_v58, %v2086_v55  ;;  %v4391_v14 = vmul.f32 %v3590_v57, %v2087_v0  ;;  %v1773_v51 = vld [vmem:[%s5104_s19 + $0xae8] sm:$0xff]  ;;  %v1772_v52 = vld [vmem:[%s5104_s19 + $0xae0] sm:$0xff] }
 0x2ba   : > { %v2094_v55 = vmul.f32 %v1326_v40, %v1326_v40  ;;  %v2095_v0 = vmul.f32 %v1327_v48, %v1327_v48  ;;  %v1334_v40 = vsub.f32 %v566_v28, %v950_v29  ;;  %v1335_v48 = vsub.f32 %v567_v35, %v951_v36  ;;  %v574_v28 = vld [vmem:[%s5170_s22 + $0x970] sm:$0xff]  ;;  %v575_v35 = vld [vmem:[%s5170_s22 + $0x978] sm:$0xff] }
 0x2bb   : > { %v4772_v5 = vadd.f32 %v4771_v63, %v4389_v62  ;;  %v958_v29 = vld [vmem:[%s5176_s25 + $0x970] sm:$0xff]  ;;  %v959_v36 = vld [vmem:[%s5176_s25 + $0x978] sm:$0xff] }
 0x2bc   : > { %v3600_v9 = vpop.permute.xlu1 %3599  ;;  %v3595_v11 = vpop.permute.xlu0 %3594 }
 0x2bd   : > { %v4773_v15 = vadd.f32 %v4772_v5, %v4390_v6  ;;  %3909 = vperm.xlu1 %5031, %v1767_v1   ;;  %3904 = vperm.xlu0 %5030, %v1766_v2   ;;  %v4392_v22 = vmul.f32 %v3595_v11, %v2088_v7  ;;  %v4393_v30 = vmul.f32 %v3600_v9, %v2089_v10  ;;  %v1775_v1 = vld [vmem:[%s5104_s19 + $0xaf8] sm:$0xff]  ;;  %v1774_v2 = vld [vmem:[%s5104_s19 + $0xaf0] sm:$0xff] }
 0x2be   : > { %v2096_v7 = vmul.f32 %v1328_v56, %v1328_v56  ;;  %v2097_v10 = vmul.f32 %v1329_v59, %v1329_v59  ;;  %v1336_v56 = vsub.f32 %v568_v44, %v952_v45  ;;  %v1337_v59 = vsub.f32 %v569_v49, %v953_v50  ;;  %v576_v44 = vld [vmem:[%s5170_s22 + $0x980] sm:$0xff]  ;;  %v577_v49 = vld [vmem:[%s5170_s22 + $0x988] sm:$0xff] }
 0x2bf   : > { %v4774_v21 = vadd.f32 %v4773_v15, %v4391_v14  ;;  %v960_v45 = vld [vmem:[%s5176_s25 + $0x980] sm:$0xff]  ;;  %v961_v50 = vld [vmem:[%s5176_s25 + $0x988] sm:$0xff] }
 0x2c0   : > { %v3610_v25 = vpop.permute.xlu1 %3609  ;;  %v3605_v26 = vpop.permute.xlu0 %3604 }
 0x2c1   : > { %v4775_v31 = vadd.f32 %v4774_v21, %v4392_v22  ;;  %3919 = vperm.xlu1 %5031, %v1769_v19   ;;  %3914 = vperm.xlu0 %5030, %v1768_v20   ;;  %v4394_v38 = vmul.f32 %v3605_v26, %v2090_v23  ;;  %v4395_v46 = vmul.f32 %v3610_v25, %v2091_v32  ;;  %v1777_v19 = vld [vmem:[%s5104_s19 + $0xb08] sm:$0xff]  ;;  %v1776_v20 = vld [vmem:[%s5104_s19 + $0xb00] sm:$0xff] }
 0x2c2   : > { %v2098_v23 = vmul.f32 %v1330_v8, %v1330_v8  ;;  %v2099_v32 = vmul.f32 %v1331_v16, %v1331_v16  ;;  %v1338_v8 = vsub.f32 %v570_v60, %v954_v61  ;;  %v1339_v16 = vsub.f32 %v571_v3, %v955_v4  ;;  %v578_v60 = vld [vmem:[%s5170_s22 + $0x990] sm:$0xff]  ;;  %v579_v3 = vld [vmem:[%s5170_s22 + $0x998] sm:$0xff] }
 0x2c3   : > { %v4776_v37 = vadd.f32 %v4775_v31, %v4393_v30  ;;  %v962_v61 = vld [vmem:[%s5176_s25 + $0x990] sm:$0xff]  ;;  %v963_v4 = vld [vmem:[%s5176_s25 + $0x998] sm:$0xff] }
 0x2c4   : > { %v3620_v41 = vpop.permute.xlu1 %3619  ;;  %v3615_v43 = vpop.permute.xlu0 %3614 }
 0x2c5   : > { %v4777_v47 = vadd.f32 %v4776_v37, %v4394_v38  ;;  %3929 = vperm.xlu1 %5031, %v1771_v33   ;;  %3924 = vperm.xlu0 %5030, %v1770_v34   ;;  %v4396_v54 = vmul.f32 %v3615_v43, %v2092_v39  ;;  %v4397_v62 = vmul.f32 %v3620_v41, %v2093_v42  ;;  %v1779_v33 = vld [vmem:[%s5104_s19 + $0xb18] sm:$0xff]  ;;  %v1778_v34 = vld [vmem:[%s5104_s19 + $0xb10] sm:$0xff] }
 0x2c6   : > { %v2100_v39 = vmul.f32 %v1332_v24, %v1332_v24  ;;  %v2101_v42 = vmul.f32 %v1333_v27, %v1333_v27  ;;  %v1340_v24 = vsub.f32 %v572_v12, %v956_v13  ;;  %v1341_v27 = vsub.f32 %v573_v17, %v957_v18  ;;  %v580_v12 = vld [vmem:[%s5170_s22 + $0x9a0] sm:$0xff]  ;;  %v581_v17 = vld [vmem:[%s5170_s22 + $0x9a8] sm:$0xff] }
 0x2c7   : > { %v4778_v53 = vadd.f32 %v4777_v47, %v4395_v46  ;;  %v964_v13 = vld [vmem:[%s5176_s25 + $0x9a0] sm:$0xff]  ;;  %v965_v18 = vld [vmem:[%s5176_s25 + $0x9a8] sm:$0xff] }
 0x2c8   : > { %v3630_v57 = vpop.permute.xlu1 %3629  ;;  %v3625_v58 = vpop.permute.xlu0 %3624 }
 0x2c9   : > { %v4779_v63 = vadd.f32 %v4778_v53, %v4396_v54  ;;  %3939 = vperm.xlu1 %5031, %v1773_v51   ;;  %3934 = vperm.xlu0 %5030, %v1772_v52   ;;  %v4398_v6 = vmul.f32 %v3625_v58, %v2094_v55  ;;  %v4399_v14 = vmul.f32 %v3630_v57, %v2095_v0  ;;  %v1781_v51 = vld [vmem:[%s5104_s19 + $0xb28] sm:$0xff]  ;;  %v1780_v52 = vld [vmem:[%s5104_s19 + $0xb20] sm:$0xff] }
 0x2ca   : > { %v2102_v55 = vmul.f32 %v1334_v40, %v1334_v40  ;;  %v2103_v0 = vmul.f32 %v1335_v48, %v1335_v48  ;;  %v1342_v40 = vsub.f32 %v574_v28, %v958_v29  ;;  %v1343_v48 = vsub.f32 %v575_v35, %v959_v36  ;;  %v582_v28 = vld [vmem:[%s5170_s22 + $0x9b0] sm:$0xff]  ;;  %v583_v35 = vld [vmem:[%s5170_s22 + $0x9b8] sm:$0xff] }
 0x2cb   : > { %v4780_v5 = vadd.f32 %v4779_v63, %v4397_v62  ;;  %v966_v29 = vld [vmem:[%s5176_s25 + $0x9b0] sm:$0xff]  ;;  %v967_v36 = vld [vmem:[%s5176_s25 + $0x9b8] sm:$0xff] }
 0x2cc   : > { %v3640_v9 = vpop.permute.xlu1 %3639  ;;  %v3635_v11 = vpop.permute.xlu0 %3634 }
 0x2cd   : > { %v4781_v15 = vadd.f32 %v4780_v5, %v4398_v6  ;;  %3949 = vperm.xlu1 %5031, %v1775_v1   ;;  %3944 = vperm.xlu0 %5030, %v1774_v2   ;;  %v4400_v22 = vmul.f32 %v3635_v11, %v2096_v7  ;;  %v4401_v30 = vmul.f32 %v3640_v9, %v2097_v10  ;;  %v1783_v1 = vld [vmem:[%s5104_s19 + $0xb38] sm:$0xff]  ;;  %v1782_v2 = vld [vmem:[%s5104_s19 + $0xb30] sm:$0xff] }
 0x2ce   : > { %v2104_v7 = vmul.f32 %v1336_v56, %v1336_v56  ;;  %v2105_v10 = vmul.f32 %v1337_v59, %v1337_v59  ;;  %v1344_v56 = vsub.f32 %v576_v44, %v960_v45  ;;  %v1345_v59 = vsub.f32 %v577_v49, %v961_v50  ;;  %v584_v44 = vld [vmem:[%s5170_s22 + $0x9c0] sm:$0xff]  ;;  %v585_v49 = vld [vmem:[%s5170_s22 + $0x9c8] sm:$0xff] }
 0x2cf   : > { %v4782_v21 = vadd.f32 %v4781_v15, %v4399_v14  ;;  %v968_v45 = vld [vmem:[%s5176_s25 + $0x9c0] sm:$0xff]  ;;  %v969_v50 = vld [vmem:[%s5176_s25 + $0x9c8] sm:$0xff] }
 0x2d0   : > { %v3650_v25 = vpop.permute.xlu1 %3649  ;;  %v3645_v26 = vpop.permute.xlu0 %3644 }
 0x2d1   : > { %v4783_v31 = vadd.f32 %v4782_v21, %v4400_v22  ;;  %3959 = vperm.xlu1 %5031, %v1777_v19   ;;  %3954 = vperm.xlu0 %5030, %v1776_v20   ;;  %v4402_v38 = vmul.f32 %v3645_v26, %v2098_v23  ;;  %v4403_v46 = vmul.f32 %v3650_v25, %v2099_v32  ;;  %v1785_v19 = vld [vmem:[%s5104_s19 + $0xb48] sm:$0xff]  ;;  %v1784_v20 = vld [vmem:[%s5104_s19 + $0xb40] sm:$0xff] }
 0x2d2   : > { %v2106_v23 = vmul.f32 %v1338_v8, %v1338_v8  ;;  %v2107_v32 = vmul.f32 %v1339_v16, %v1339_v16  ;;  %v1346_v8 = vsub.f32 %v578_v60, %v962_v61  ;;  %v1347_v16 = vsub.f32 %v579_v3, %v963_v4  ;;  %v586_v60 = vld [vmem:[%s5170_s22 + $0x9d0] sm:$0xff]  ;;  %v587_v3 = vld [vmem:[%s5170_s22 + $0x9d8] sm:$0xff] }
 0x2d3   : > { %v4784_v37 = vadd.f32 %v4783_v31, %v4401_v30  ;;  %v970_v61 = vld [vmem:[%s5176_s25 + $0x9d0] sm:$0xff]  ;;  %v971_v4 = vld [vmem:[%s5176_s25 + $0x9d8] sm:$0xff] }
 0x2d4   : > { %v3660_v41 = vpop.permute.xlu1 %3659  ;;  %v3655_v43 = vpop.permute.xlu0 %3654 }
 0x2d5   : > { %v4785_v47 = vadd.f32 %v4784_v37, %v4402_v38  ;;  %3969 = vperm.xlu1 %5031, %v1779_v33   ;;  %3964 = vperm.xlu0 %5030, %v1778_v34   ;;  %v4404_v54 = vmul.f32 %v3655_v43, %v2100_v39  ;;  %v4405_v62 = vmul.f32 %v3660_v41, %v2101_v42  ;;  %v1787_v33 = vld [vmem:[%s5104_s19 + $0xb58] sm:$0xff]  ;;  %v1786_v34 = vld [vmem:[%s5104_s19 + $0xb50] sm:$0xff] }
 0x2d6   : > { %v2108_v39 = vmul.f32 %v1340_v24, %v1340_v24  ;;  %v2109_v42 = vmul.f32 %v1341_v27, %v1341_v27  ;;  %v1348_v24 = vsub.f32 %v580_v12, %v964_v13  ;;  %v1349_v27 = vsub.f32 %v581_v17, %v965_v18  ;;  %v588_v12 = vld [vmem:[%s5170_s22 + $0x9e0] sm:$0xff]  ;;  %v589_v17 = vld [vmem:[%s5170_s22 + $0x9e8] sm:$0xff] }
 0x2d7   : > { %v4786_v53 = vadd.f32 %v4785_v47, %v4403_v46  ;;  %v972_v13 = vld [vmem:[%s5176_s25 + $0x9e0] sm:$0xff]  ;;  %v973_v18 = vld [vmem:[%s5176_s25 + $0x9e8] sm:$0xff] }
 0x2d8   : > { %v3670_v57 = vpop.permute.xlu1 %3669  ;;  %v3665_v58 = vpop.permute.xlu0 %3664 }
 0x2d9   : > { %v4787_v63 = vadd.f32 %v4786_v53, %v4404_v54  ;;  %3979 = vperm.xlu1 %5031, %v1781_v51   ;;  %3974 = vperm.xlu0 %5030, %v1780_v52   ;;  %v4406_v6 = vmul.f32 %v3665_v58, %v2102_v55  ;;  %v4407_v14 = vmul.f32 %v3670_v57, %v2103_v0  ;;  %v1789_v51 = vld [vmem:[%s5104_s19 + $0xb68] sm:$0xff]  ;;  %v1788_v52 = vld [vmem:[%s5104_s19 + $0xb60] sm:$0xff] }
 0x2da   : > { %v2110_v55 = vmul.f32 %v1342_v40, %v1342_v40  ;;  %v2111_v0 = vmul.f32 %v1343_v48, %v1343_v48  ;;  %v1350_v40 = vsub.f32 %v582_v28, %v966_v29  ;;  %v1351_v48 = vsub.f32 %v583_v35, %v967_v36  ;;  %v590_v28 = vld [vmem:[%s5170_s22 + $0x9f0] sm:$0xff]  ;;  %v591_v35 = vld [vmem:[%s5170_s22 + $0x9f8] sm:$0xff] }
 0x2db   : > { %v4788_v5 = vadd.f32 %v4787_v63, %v4405_v62  ;;  %v974_v29 = vld [vmem:[%s5176_s25 + $0x9f0] sm:$0xff]  ;;  %v975_v36 = vld [vmem:[%s5176_s25 + $0x9f8] sm:$0xff] }
 0x2dc   : > { %v3680_v9 = vpop.permute.xlu1 %3679  ;;  %v3675_v11 = vpop.permute.xlu0 %3674 }
 0x2dd   : > { %v4789_v15 = vadd.f32 %v4788_v5, %v4406_v6  ;;  %3989 = vperm.xlu1 %5031, %v1783_v1   ;;  %3984 = vperm.xlu0 %5030, %v1782_v2   ;;  %v4408_v22 = vmul.f32 %v3675_v11, %v2104_v7  ;;  %v4409_v30 = vmul.f32 %v3680_v9, %v2105_v10  ;;  %v1791_v1 = vld [vmem:[%s5104_s19 + $0xb78] sm:$0xff]  ;;  %v1790_v2 = vld [vmem:[%s5104_s19 + $0xb70] sm:$0xff] }
 0x2de   : > { %v2112_v7 = vmul.f32 %v1344_v56, %v1344_v56  ;;  %v2113_v10 = vmul.f32 %v1345_v59, %v1345_v59  ;;  %v1352_v56 = vsub.f32 %v584_v44, %v968_v45  ;;  %v1353_v59 = vsub.f32 %v585_v49, %v969_v50  ;;  %v592_v44 = vld [vmem:[%s5170_s22 + $0xa00] sm:$0xff]  ;;  %v593_v49 = vld [vmem:[%s5170_s22 + $0xa08] sm:$0xff] }
 0x2df   : > { %v4790_v21 = vadd.f32 %v4789_v15, %v4407_v14  ;;  %v976_v45 = vld [vmem:[%s5176_s25 + $0xa00] sm:$0xff]  ;;  %v977_v50 = vld [vmem:[%s5176_s25 + $0xa08] sm:$0xff] }
 0x2e0   : > { %v3690_v25 = vpop.permute.xlu1 %3689  ;;  %v3685_v26 = vpop.permute.xlu0 %3684 }
 0x2e1   : > { %v4791_v31 = vadd.f32 %v4790_v21, %v4408_v22  ;;  %3999 = vperm.xlu1 %5031, %v1785_v19   ;;  %3994 = vperm.xlu0 %5030, %v1784_v20   ;;  %v4410_v38 = vmul.f32 %v3685_v26, %v2106_v23  ;;  %v4411_v46 = vmul.f32 %v3690_v25, %v2107_v32  ;;  %v1793_v19 = vld [vmem:[%s5104_s19 + $0xb88] sm:$0xff]  ;;  %v1792_v20 = vld [vmem:[%s5104_s19 + $0xb80] sm:$0xff] }
 0x2e2   : > { %v2114_v23 = vmul.f32 %v1346_v8, %v1346_v8  ;;  %v2115_v32 = vmul.f32 %v1347_v16, %v1347_v16  ;;  %v1354_v8 = vsub.f32 %v586_v60, %v970_v61  ;;  %v1355_v16 = vsub.f32 %v587_v3, %v971_v4  ;;  %v594_v60 = vld [vmem:[%s5170_s22 + $0xa10] sm:$0xff]  ;;  %v595_v3 = vld [vmem:[%s5170_s22 + $0xa18] sm:$0xff] }
 0x2e3   : > { %v4792_v37 = vadd.f32 %v4791_v31, %v4409_v30  ;;  %v978_v61 = vld [vmem:[%s5176_s25 + $0xa10] sm:$0xff]  ;;  %v979_v4 = vld [vmem:[%s5176_s25 + $0xa18] sm:$0xff] }
 0x2e4   : > { %v3700_v41 = vpop.permute.xlu1 %3699  ;;  %v3695_v43 = vpop.permute.xlu0 %3694 }
 0x2e5   : > { %v4793_v47 = vadd.f32 %v4792_v37, %v4410_v38  ;;  %4009 = vperm.xlu1 %5031, %v1787_v33   ;;  %4004 = vperm.xlu0 %5030, %v1786_v34   ;;  %v4412_v54 = vmul.f32 %v3695_v43, %v2108_v39  ;;  %v4413_v62 = vmul.f32 %v3700_v41, %v2109_v42  ;;  %v1795_v33 = vld [vmem:[%s5104_s19 + $0xb98] sm:$0xff]  ;;  %v1794_v34 = vld [vmem:[%s5104_s19 + $0xb90] sm:$0xff] }
 0x2e6   : > { %v2116_v39 = vmul.f32 %v1348_v24, %v1348_v24  ;;  %v2117_v42 = vmul.f32 %v1349_v27, %v1349_v27  ;;  %v1356_v24 = vsub.f32 %v588_v12, %v972_v13  ;;  %v1357_v27 = vsub.f32 %v589_v17, %v973_v18  ;;  %v596_v12 = vld [vmem:[%s5170_s22 + $0xa20] sm:$0xff]  ;;  %v597_v17 = vld [vmem:[%s5170_s22 + $0xa28] sm:$0xff] }
 0x2e7   : > { %v4794_v53 = vadd.f32 %v4793_v47, %v4411_v46  ;;  %v980_v13 = vld [vmem:[%s5176_s25 + $0xa20] sm:$0xff]  ;;  %v981_v18 = vld [vmem:[%s5176_s25 + $0xa28] sm:$0xff] }
 0x2e8   : > { %v3710_v57 = vpop.permute.xlu1 %3709  ;;  %v3705_v58 = vpop.permute.xlu0 %3704 }
 0x2e9   : > { %v4795_v63 = vadd.f32 %v4794_v53, %v4412_v54  ;;  %4019 = vperm.xlu1 %5031, %v1789_v51   ;;  %4014 = vperm.xlu0 %5030, %v1788_v52   ;;  %v4414_v6 = vmul.f32 %v3705_v58, %v2110_v55  ;;  %v4415_v14 = vmul.f32 %v3710_v57, %v2111_v0  ;;  %v1797_v51 = vld [vmem:[%s5104_s19 + $0xba8] sm:$0xff]  ;;  %v1796_v52 = vld [vmem:[%s5104_s19 + $0xba0] sm:$0xff] }
 0x2ea   : > { %v2118_v55 = vmul.f32 %v1350_v40, %v1350_v40  ;;  %v2119_v0 = vmul.f32 %v1351_v48, %v1351_v48  ;;  %v1358_v40 = vsub.f32 %v590_v28, %v974_v29  ;;  %v1359_v48 = vsub.f32 %v591_v35, %v975_v36 }
 0x2eb   : > { %v4796_v5 = vadd.f32 %v4795_v63, %v4413_v62 }
 0x2ec   : > { %v3720_v9 = vpop.permute.xlu1 %3719  ;;  %v3715_v11 = vpop.permute.xlu0 %3714 }
 0x2ed   : > { %v4797_v15 = vadd.f32 %v4796_v5, %v4414_v6  ;;  %4029 = vperm.xlu1 %5031, %v1791_v1   ;;  %4024 = vperm.xlu0 %5030, %v1790_v2   ;;  %v4416_v22 = vmul.f32 %v3715_v11, %v2112_v7  ;;  %v4417_v30 = vmul.f32 %v3720_v9, %v2113_v10  ;;  %v1799_v1 = vld [vmem:[%s5104_s19 + $0xbb8] sm:$0xff]  ;;  %v1798_v2 = vld [vmem:[%s5104_s19 + $0xbb0] sm:$0xff] }
 0x2ee   : > { %v2120_v7 = vmul.f32 %v1352_v56, %v1352_v56  ;;  %v2121_v10 = vmul.f32 %v1353_v59, %v1353_v59  ;;  %v1360_v56 = vsub.f32 %v592_v44, %v976_v45  ;;  %v1361_v59 = vsub.f32 %v593_v49, %v977_v50  ;;  %v601_v45 = vld [vmem:[%s5170_s22 + $0xa48] sm:$0xff] }
 0x2ef   : > { %v4798_v21 = vadd.f32 %v4797_v15, %v4415_v14 }
 0x2f0   : > { %v3730_v25 = vpop.permute.xlu1 %3729  ;;  %v3725_v26 = vpop.permute.xlu0 %3724 }
 0x2f1   : > { %v4799_v31 = vadd.f32 %v4798_v21, %v4416_v22  ;;  %4039 = vperm.xlu1 %5031, %v1793_v19   ;;  %4034 = vperm.xlu0 %5030, %v1792_v20   ;;  %v4418_v38 = vmul.f32 %v3725_v26, %v2114_v23  ;;  %v4419_v46 = vmul.f32 %v3730_v25, %v2115_v32  ;;  %v1801_v19 = vld [vmem:[%s5104_s19 + $0xbc8] sm:$0xff]  ;;  %v1800_v20 = vld [vmem:[%s5104_s19 + $0xbc0] sm:$0xff] }
 0x2f2   : > { %v2122_v23 = vmul.f32 %v1354_v8, %v1354_v8  ;;  %v2123_v32 = vmul.f32 %v1355_v16, %v1355_v16  ;;  %v1362_v8 = vsub.f32 %v594_v60, %v978_v61  ;;  %v1363_v16 = vsub.f32 %v595_v3, %v979_v4  ;;  %v987_v60 = vld [vmem:[%s5176_s25 + $0xa58] sm:$0xff]  ;;  %v604_v3 = vld [vmem:[%s5170_s22 + $0xa60] sm:$0xff] }
 0x2f3   : > { %v4800_v37 = vadd.f32 %v4799_v31, %v4417_v30  ;;  %v988_v4 = vld [vmem:[%s5176_s25 + $0xa60] sm:$0xff] }
 0x2f4   : > { %v3740_v41 = vpop.permute.xlu1 %3739  ;;  %v3735_v43 = vpop.permute.xlu0 %3734  ;;  %v2131_v29 = vmul.f32 %v1363_v16, %v1363_v16 }
 0x2f5   : > { %v4801_v47 = vadd.f32 %v4800_v37, %v4418_v38  ;;  %4049 = vperm.xlu1 %5031, %v1795_v33   ;;  %4044 = vperm.xlu0 %5030, %v1794_v34   ;;  %v4420_v54 = vmul.f32 %v3735_v43, %v2116_v39  ;;  %v4421_v62 = vmul.f32 %v3740_v41, %v2117_v42  ;;  %v1803_v33 = vld [vmem:[%s5104_s19 + $0xbd8] sm:$0xff]  ;;  %v1802_v34 = vld [vmem:[%s5104_s19 + $0xbd0] sm:$0xff] }
 0x2f6   : > { %v2124_v39 = vmul.f32 %v1356_v24, %v1356_v24  ;;  %v2125_v42 = vmul.f32 %v1357_v27, %v1357_v27 }
 0x2f7   : > { %v4802_v53 = vadd.f32 %v4801_v47, %v4419_v46 }
 0x2f8   : > { %v3750_v57 = vpop.permute.xlu1 %3749  ;;  %v3745_v58 = vpop.permute.xlu0 %3744 }
 0x2f9   : > { %v4803_v63 = vadd.f32 %v4802_v53, %v4420_v54  ;;  %4059 = vperm.xlu1 %5031, %v1797_v51   ;;  %4054 = vperm.xlu0 %5030, %v1796_v52   ;;  %v4422_v6 = vmul.f32 %v3745_v58, %v2118_v55  ;;  %v4423_v14 = vmul.f32 %v3750_v57, %v2119_v0  ;;  %v1805_v51 = vld [vmem:[%s5104_s19 + $0xbe8] sm:$0xff]  ;;  %v1804_v52 = vld [vmem:[%s5104_s19 + $0xbe0] sm:$0xff] }
 0x2fa   : > { %v2126_v55 = vmul.f32 %v1358_v40, %v1358_v40  ;;  %v2127_v0 = vmul.f32 %v1359_v48, %v1359_v48  ;;  %v984_v40 = vld [vmem:[%s5176_s25 + $0xa40] sm:$0xff] }
 0x2fb   : > { %v4804_v5 = vadd.f32 %v4803_v63, %v4421_v62 }
 0x2fc   : > { %v3760_v9 = vpop.permute.xlu1 %3759  ;;  %v3755_v11 = vpop.permute.xlu0 %3754 }
 0x2fd   : > { %v4805_v15 = vadd.f32 %v4804_v5, %v4422_v6  ;;  %4069 = vperm.xlu1 %5031, %v1799_v1   ;;  %4064 = vperm.xlu0 %5030, %v1798_v2   ;;  %v4424_v22 = vmul.f32 %v3755_v11, %v2120_v7  ;;  %v4425_v30 = vmul.f32 %v3760_v9, %v2121_v10  ;;  %v1807_v1 = vld [vmem:[%s5104_s19 + $0xbf8] sm:$0xff]  ;;  %v1806_v2 = vld [vmem:[%s5104_s19 + $0xbf0] sm:$0xff] }
 0x2fe   : > { %v2128_v7 = vmul.f32 %v1360_v56, %v1360_v56  ;;  %v2129_v10 = vmul.f32 %v1361_v59, %v1361_v59  ;;  %v603_v59 = vld [vmem:[%s5170_s22 + $0xa58] sm:$0xff] }
 0x2ff   : > { %v4806_v21 = vadd.f32 %v4805_v15, %v4423_v14 }
 0x300   : > { %v3770_v25 = vpop.permute.xlu1 %3769  ;;  %v3765_v26 = vpop.permute.xlu0 %3764 }
 0x301   : > { %v4807_v31 = vadd.f32 %v4806_v21, %v4424_v22  ;;  %4079 = vperm.xlu1 %5031, %v1801_v19   ;;  %4074 = vperm.xlu0 %5030, %v1800_v20   ;;  %v4426_v38 = vmul.f32 %v3765_v26, %v2122_v23  ;;  %v4427_v46 = vmul.f32 %v3770_v25, %v2123_v32  ;;  %v598_v25 = vld [vmem:[%s5170_s22 + $0xa30] sm:$0xff]  ;;  %v983_v32 = vld [vmem:[%s5176_s25 + $0xa38] sm:$0xff] }
 0x302   : > { %v2130_v21 = vmul.f32 %v1362_v8, %v1362_v8  ;;  %v1364_v22 = vsub.f32 %v596_v12, %v980_v13  ;;  %v982_v26 = vld [vmem:[%s5176_s25 + $0xa30] sm:$0xff]  ;;  %v1371_v8 = vsub.f32 %v603_v59, %v987_v60  ;;  %v612_v59 = vld [vmem:[%s5170_s22 + $0xaa0] sm:$0xff] }
 0x303   : > { %v4808_v37 = vadd.f32 %v4807_v31, %v4425_v30  ;;  %v1365_v30 = vsub.f32 %v597_v17, %v981_v18  ;;  %v599_v31 = vld [vmem:[%s5170_s22 + $0xa38] sm:$0xff]  ;;  %v1366_v36 = vsub.f32 %v598_v25, %v982_v26  ;;  %v606_v17 = vld [vmem:[%s5170_s22 + $0xa70] sm:$0xff]  ;;  %v996_v60 = vld [vmem:[%s5176_s25 + $0xaa0] sm:$0xff] }
 0x304   : > { %v3780_v41 = vpop.permute.xlu1 %3779  ;;  %v3775_v43 = vpop.permute.xlu0 %3774  ;;  %v2132_v35 = vmul.f32 %v1364_v22, %v1364_v22  ;;  %v1367_v44 = vsub.f32 %v599_v31, %v983_v32  ;;  %v990_v18 = vld [vmem:[%s5176_s25 + $0xa70] sm:$0xff]  ;;  %v608_v31 = vld [vmem:[%s5170_s22 + $0xa80] sm:$0xff] }
 0x305   : > { %v4809_v47 = vadd.f32 %v4808_v37, %v4426_v38  ;;  %4089 = vperm.xlu1 %5031, %v1803_v33   ;;  %4084 = vperm.xlu0 %5030, %v1802_v34   ;;  %v4428_v54 = vmul.f32 %v3775_v43, %v2124_v39  ;;  %v4429_v62 = vmul.f32 %v3780_v41, %v2125_v42  ;;  %v600_v39 = vld [vmem:[%s5170_s22 + $0xa40] sm:$0xff] }
 0x306   : > { %v2133_v43 = vmul.f32 %v1365_v30, %v1365_v30  ;;  %v2134_v49 = vmul.f32 %v1366_v36, %v1366_v36  ;;  %v1368_v50 = vsub.f32 %v600_v39, %v984_v40  ;;  %v992_v32 = vld [vmem:[%s5176_s25 + $0xa80] sm:$0xff] }
 0x307   : > { %v4810_v53 = vadd.f32 %v4809_v47, %v4427_v46  ;;  %v985_v46 = vld [vmem:[%s5176_s25 + $0xa48] sm:$0xff] }
 0x308   : > { %v3790_v57 = vpop.permute.xlu1 %3789  ;;  %v3785_v58 = vpop.permute.xlu0 %3784 }
 0x309   : > { %v4811_v63 = vadd.f32 %v4810_v53, %v4428_v54  ;;  %4099 = vperm.xlu1 %5031, %v1805_v51   ;;  %4094 = vperm.xlu0 %5030, %v1804_v52   ;;  %v4430_v6 = vmul.f32 %v3785_v58, %v2126_v55  ;;  %v4431_v14 = vmul.f32 %v3790_v57, %v2127_v0  ;;  %v602_v53 = vld [vmem:[%s5170_s22 + $0xa50] sm:$0xff] }
 0x30a   : > { %v986_v54 = vld [vmem:[%s5176_s25 + $0xa50] sm:$0xff]  ;;  %v2135_v57 = vmul.f32 %v1367_v44, %v1367_v44  ;;  %v1369_v58 = vsub.f32 %v601_v45, %v985_v46 }
 0x30b   : > { %v4812_v5 = vadd.f32 %v4811_v63, %v4429_v62  ;;  %v2136_v63 = vmul.f32 %v1368_v50, %v1368_v50  ;;  %v1370_v0 = vsub.f32 %v602_v53, %v986_v54  ;;  %v610_v45 = vld [vmem:[%s5170_s22 + $0xa90] sm:$0xff] }
 0x30c   : > { %v3800_v9 = vpop.permute.xlu1 %3799  ;;  %v3795_v11 = vpop.permute.xlu0 %3794  ;;  %v994_v46 = vld [vmem:[%s5176_s25 + $0xa90] sm:$0xff] }
 0x30d   : > { %v4813_v15 = vadd.f32 %v4812_v5, %v4430_v6  ;;  %4109 = vperm.xlu1 %5031, %v1807_v1   ;;  %4104 = vperm.xlu0 %5030, %v1806_v2   ;;  %v4432_v20 = vmul.f32 %v3795_v11, %v2128_v7  ;;  %v4433_v27 = vmul.f32 %v3800_v9, %v2129_v10  ;;  %v605_v9 = vld [vmem:[%s5170_s22 + $0xa68] sm:$0xff] }
 0x30e   : > { %v2137_v7 = vmul.f32 %v1369_v58, %v1369_v58  ;;  %v989_v10 = vld [vmem:[%s5176_s25 + $0xa68] sm:$0xff]  ;;  %v2138_v13 = vmul.f32 %v1370_v0, %v1370_v0 }
 0x30f   : > { %v4814_v19 = vadd.f32 %v4813_v15, %v4431_v14  ;;  %v1372_v14 = vsub.f32 %v604_v3, %v988_v4  ;;  %v1373_v22 = vsub.f32 %v605_v9, %v989_v10  ;;  %v614_v9 = vld [vmem:[%s5170_s22 + $0xab0] sm:$0xff] }
 0x310   : > { %v3810_v23 = vpop.permute.xlu1 %3809  ;;  %v3805_v24 = vpop.permute.xlu0 %3804  ;;  %v998_v10 = vld [vmem:[%s5176_s25 + $0xab0] sm:$0xff] }
 0x311   : > { %v4815_v28 = vadd.f32 %v4814_v19, %v4432_v20  ;;  %v4434_v34 = vmul.f32 %v3805_v24, %v2130_v21  ;;  %v4435_v41 = vmul.f32 %v3810_v23, %v2131_v29  ;;  %v2139_v21 = vmul.f32 %v1371_v8, %v1371_v8  ;;  %v607_v23 = vld [vmem:[%s5170_s22 + $0xa78] sm:$0xff] }
 0x312   : > { %v991_v24 = vld [vmem:[%s5176_s25 + $0xa78] sm:$0xff] }
 0x313   : > { %v4816_v33 = vadd.f32 %v4815_v28, %v4433_v27  ;;  %v2140_v27 = vmul.f32 %v1372_v14, %v1372_v14  ;;  %v1374_v28 = vsub.f32 %v606_v17, %v990_v18  ;;  %v1375_v36 = vsub.f32 %v607_v23, %v991_v24  ;;  %v616_v23 = vld [vmem:[%s5170_s22 + $0xac0] sm:$0xff] }
 0x314   : > { %v3820_v37 = vpop.permute.xlu1 %3819  ;;  %v3815_v38 = vpop.permute.xlu0 %3814  ;;  %v1000_v24 = vld [vmem:[%s5176_s25 + $0xac0] sm:$0xff] }
 0x315   : > { %v4817_v42 = vadd.f32 %v4816_v33, %v4434_v34  ;;  %v4436_v48 = vmul.f32 %v3815_v38, %v2132_v35  ;;  %v4437_v55 = vmul.f32 %v3820_v37, %v2133_v43  ;;  %v2141_v35 = vmul.f32 %v1373_v22, %v1373_v22  ;;  %v609_v37 = vld [vmem:[%s5170_s22 + $0xa88] sm:$0xff] }
 0x316   : > { %v993_v38 = vld [vmem:[%s5176_s25 + $0xa88] sm:$0xff] }
 0x317   : > { %v4818_v47 = vadd.f32 %v4817_v42, %v4435_v41  ;;  %v2142_v41 = vmul.f32 %v1374_v28, %v1374_v28  ;;  %v1376_v42 = vsub.f32 %v608_v31, %v992_v32  ;;  %v1377_v50 = vsub.f32 %v609_v37, %v993_v38  ;;  %v618_v37 = vld [vmem:[%s5170_s22 + $0xad0] sm:$0xff] }
 0x318   : > { %v3830_v51 = vpop.permute.xlu1 %3829  ;;  %v3825_v52 = vpop.permute.xlu0 %3824  ;;  %v1002_v38 = vld [vmem:[%s5176_s25 + $0xad0] sm:$0xff] }
 0x319   : > { %v4819_v56 = vadd.f32 %v4818_v47, %v4436_v48  ;;  %v4438_v61 = vmul.f32 %v3825_v52, %v2134_v49  ;;  %v4439_v5 = vmul.f32 %v3830_v51, %v2135_v57  ;;  %v2143_v49 = vmul.f32 %v1375_v36, %v1375_v36  ;;  %v611_v51 = vld [vmem:[%s5170_s22 + $0xa98] sm:$0xff] }
 0x31a   : > { %v995_v52 = vld [vmem:[%s5176_s25 + $0xa98] sm:$0xff] }
 0x31b   : > { %v4820_v62 = vadd.f32 %v4819_v56, %v4437_v55  ;;  %v2144_v55 = vmul.f32 %v1376_v42, %v1376_v42  ;;  %v1378_v56 = vsub.f32 %v610_v45, %v994_v46  ;;  %v1379_v0 = vsub.f32 %v611_v51, %v995_v52  ;;  %v620_v51 = vld [vmem:[%s5170_s22 + $0xae0] sm:$0xff] }
 0x31c   : > { %v3840_v1 = vpop.permute.xlu1 %3839  ;;  %v3835_v2 = vpop.permute.xlu0 %3834  ;;  %v1004_v52 = vld [vmem:[%s5176_s25 + $0xae0] sm:$0xff] }
 0x31d   : > { %v4821_v6 = vadd.f32 %v4820_v62, %v4438_v61  ;;  %v4440_v11 = vmul.f32 %v3835_v2, %v2136_v63  ;;  %v4441_v19 = vmul.f32 %v3840_v1, %v2137_v7  ;;  %v2145_v63 = vmul.f32 %v1377_v50, %v1377_v50  ;;  %v613_v1 = vld [vmem:[%s5170_s22 + $0xaa8] sm:$0xff] }
 0x31e   : > { %v997_v2 = vld [vmem:[%s5176_s25 + $0xaa8] sm:$0xff] }
 0x31f   : > { %v4822_v12 = vadd.f32 %v4821_v6, %v4439_v5  ;;  %v2146_v5 = vmul.f32 %v1378_v56, %v1378_v56  ;;  %v1380_v6 = vsub.f32 %v612_v59, %v996_v60  ;;  %v1381_v14 = vsub.f32 %v613_v1, %v997_v2  ;;  %v622_v1 = vld [vmem:[%s5170_s22 + $0xaf0] sm:$0xff] }
 0x320   : > { %v3850_v15 = vpop.permute.xlu1 %3849  ;;  %v3845_v16 = vpop.permute.xlu0 %3844  ;;  %v1006_v2 = vld [vmem:[%s5176_s25 + $0xaf0] sm:$0xff] }
 0x321   : > { %v4823_v20 = vadd.f32 %v4822_v12, %v4440_v11  ;;  %v4442_v25 = vmul.f32 %v3845_v16, %v2138_v13  ;;  %v4443_v33 = vmul.f32 %v3850_v15, %v2139_v21  ;;  %v2147_v13 = vmul.f32 %v1379_v0, %v1379_v0  ;;  %v615_v15 = vld [vmem:[%s5170_s22 + $0xab8] sm:$0xff] }
 0x322   : > { %v999_v16 = vld [vmem:[%s5176_s25 + $0xab8] sm:$0xff] }
 0x323   : > { %v4824_v26 = vadd.f32 %v4823_v20, %v4441_v19  ;;  %v2148_v19 = vmul.f32 %v1380_v6, %v1380_v6  ;;  %v1382_v20 = vsub.f32 %v614_v9, %v998_v10  ;;  %v1383_v28 = vsub.f32 %v615_v15, %v999_v16  ;;  %v624_v15 = vld [vmem:[%s5170_s22 + $0xb00] sm:$0xff] }
 0x324   : > { %v3860_v29 = vpop.permute.xlu1 %3859  ;;  %v3855_v30 = vpop.permute.xlu0 %3854  ;;  %v1008_v16 = vld [vmem:[%s5176_s25 + $0xb00] sm:$0xff] }
 0x325   : > { %v4825_v34 = vadd.f32 %v4824_v26, %v4442_v25  ;;  %v4444_v39 = vmul.f32 %v3855_v30, %v2140_v27  ;;  %v4445_v47 = vmul.f32 %v3860_v29, %v2141_v35  ;;  %v2149_v27 = vmul.f32 %v1381_v14, %v1381_v14  ;;  %v617_v29 = vld [vmem:[%s5170_s22 + $0xac8] sm:$0xff] }
 0x326   : > { %v1001_v30 = vld [vmem:[%s5176_s25 + $0xac8] sm:$0xff] }
 0x327   : > { %v4826_v40 = vadd.f32 %v4825_v34, %v4443_v33  ;;  %v2150_v33 = vmul.f32 %v1382_v20, %v1382_v20  ;;  %v1384_v34 = vsub.f32 %v616_v23, %v1000_v24  ;;  %v1385_v42 = vsub.f32 %v617_v29, %v1001_v30  ;;  %v626_v29 = vld [vmem:[%s5170_s22 + $0xb10] sm:$0xff] }
 0x328   : > { %v3870_v43 = vpop.permute.xlu1 %3869  ;;  %v3865_v44 = vpop.permute.xlu0 %3864  ;;  %v1010_v30 = vld [vmem:[%s5176_s25 + $0xb10] sm:$0xff] }
 0x329   : > { %v4827_v48 = vadd.f32 %v4826_v40, %v4444_v39  ;;  %v4446_v53 = vmul.f32 %v3865_v44, %v2142_v41  ;;  %v4447_v61 = vmul.f32 %v3870_v43, %v2143_v49  ;;  %v2151_v41 = vmul.f32 %v1383_v28, %v1383_v28  ;;  %v619_v43 = vld [vmem:[%s5170_s22 + $0xad8] sm:$0xff] }
 0x32a   : > { %v1003_v44 = vld [vmem:[%s5176_s25 + $0xad8] sm:$0xff] }
 0x32b   : > { %v4828_v54 = vadd.f32 %v4827_v48, %v4445_v47  ;;  %v2152_v47 = vmul.f32 %v1384_v34, %v1384_v34  ;;  %v1386_v48 = vsub.f32 %v618_v37, %v1002_v38  ;;  %v1387_v56 = vsub.f32 %v619_v43, %v1003_v44  ;;  %v628_v43 = vld [vmem:[%s5170_s22 + $0xb20] sm:$0xff] }
 0x32c   : > { %v3880_v57 = vpop.permute.xlu1 %3879  ;;  %v3875_v58 = vpop.permute.xlu0 %3874  ;;  %v1012_v44 = vld [vmem:[%s5176_s25 + $0xb20] sm:$0xff] }
 0x32d   : > { %v4829_v62 = vadd.f32 %v4828_v54, %v4446_v53  ;;  %v4448_v3 = vmul.f32 %v3875_v58, %v2144_v55  ;;  %v4449_v11 = vmul.f32 %v3880_v57, %v2145_v63  ;;  %v2153_v55 = vmul.f32 %v1385_v42, %v1385_v42  ;;  %v621_v57 = vld [vmem:[%s5170_s22 + $0xae8] sm:$0xff] }
 0x32e   : > { %v1005_v58 = vld [vmem:[%s5176_s25 + $0xae8] sm:$0xff] }
 0x32f   : > { %v4830_v4 = vadd.f32 %v4829_v62, %v4447_v61  ;;  %v2154_v61 = vmul.f32 %v1386_v48, %v1386_v48  ;;  %v1388_v62 = vsub.f32 %v620_v51, %v1004_v52  ;;  %v1389_v6 = vsub.f32 %v621_v57, %v1005_v58  ;;  %v630_v57 = vld [vmem:[%s5170_s22 + $0xb30] sm:$0xff] }
 0x330   : > { %v3890_v7 = vpop.permute.xlu1 %3889  ;;  %v3885_v8 = vpop.permute.xlu0 %3884  ;;  %v1014_v58 = vld [vmem:[%s5176_s25 + $0xb30] sm:$0xff] }
 0x331   : > { %v4831_v12 = vadd.f32 %v4830_v4, %v4448_v3  ;;  %v4450_v17 = vmul.f32 %v3885_v8, %v2146_v5  ;;  %v4451_v25 = vmul.f32 %v3890_v7, %v2147_v13  ;;  %v2155_v5 = vmul.f32 %v1387_v56, %v1387_v56  ;;  %v623_v7 = vld [vmem:[%s5170_s22 + $0xaf8] sm:$0xff] }
 0x332   : > { %v1007_v8 = vld [vmem:[%s5176_s25 + $0xaf8] sm:$0xff] }
 0x333   : > { %v4832_v18 = vadd.f32 %v4831_v12, %v4449_v11  ;;  %v2156_v11 = vmul.f32 %v1388_v62, %v1388_v62  ;;  %v1390_v12 = vsub.f32 %v622_v1, %v1006_v2  ;;  %v1391_v20 = vsub.f32 %v623_v7, %v1007_v8  ;;  %v632_v7 = vld [vmem:[%s5170_s22 + $0xb40] sm:$0xff] }
 0x334   : > { %v3900_v21 = vpop.permute.xlu1 %3899  ;;  %v3895_v22 = vpop.permute.xlu0 %3894  ;;  %v1016_v8 = vld [vmem:[%s5176_s25 + $0xb40] sm:$0xff] }
 0x335   : > { %v4833_v26 = vadd.f32 %v4832_v18, %v4450_v17  ;;  %v4452_v31 = vmul.f32 %v3895_v22, %v2148_v19  ;;  %v4453_v39 = vmul.f32 %v3900_v21, %v2149_v27  ;;  %v2157_v19 = vmul.f32 %v1389_v6, %v1389_v6  ;;  %v625_v21 = vld [vmem:[%s5170_s22 + $0xb08] sm:$0xff] }
 0x336   : > { %v1009_v22 = vld [vmem:[%s5176_s25 + $0xb08] sm:$0xff] }
 0x337   : > { %v4834_v32 = vadd.f32 %v4833_v26, %v4451_v25  ;;  %v2158_v25 = vmul.f32 %v1390_v12, %v1390_v12  ;;  %v1392_v26 = vsub.f32 %v624_v15, %v1008_v16  ;;  %v1393_v34 = vsub.f32 %v625_v21, %v1009_v22  ;;  %v634_v21 = vld [vmem:[%s5170_s22 + $0xb50] sm:$0xff] }
 0x338   : > { %v3910_v35 = vpop.permute.xlu1 %3909  ;;  %v3905_v36 = vpop.permute.xlu0 %3904  ;;  %v1018_v22 = vld [vmem:[%s5176_s25 + $0xb50] sm:$0xff] }
 0x339   : > { %v4835_v40 = vadd.f32 %v4834_v32, %v4452_v31  ;;  %v4454_v45 = vmul.f32 %v3905_v36, %v2150_v33  ;;  %v4455_v53 = vmul.f32 %v3910_v35, %v2151_v41  ;;  %v2159_v33 = vmul.f32 %v1391_v20, %v1391_v20  ;;  %v627_v35 = vld [vmem:[%s5170_s22 + $0xb18] sm:$0xff] }
 0x33a   : > { %v1011_v36 = vld [vmem:[%s5176_s25 + $0xb18] sm:$0xff] }
 0x33b   : > { %v4836_v46 = vadd.f32 %v4835_v40, %v4453_v39  ;;  %v2160_v39 = vmul.f32 %v1392_v26, %v1392_v26  ;;  %v1394_v40 = vsub.f32 %v626_v29, %v1010_v30  ;;  %v1395_v48 = vsub.f32 %v627_v35, %v1011_v36  ;;  %v636_v35 = vld [vmem:[%s5170_s22 + $0xb60] sm:$0xff] }
 0x33c   : > { %v3920_v49 = vpop.permute.xlu1 %3919  ;;  %v3915_v50 = vpop.permute.xlu0 %3914  ;;  %v1020_v36 = vld [vmem:[%s5176_s25 + $0xb60] sm:$0xff] }
 0x33d   : > { %v4837_v54 = vadd.f32 %v4836_v46, %v4454_v45  ;;  %v4456_v59 = vmul.f32 %v3915_v50, %v2152_v47  ;;  %v4457_v3 = vmul.f32 %v3920_v49, %v2153_v55  ;;  %v2161_v47 = vmul.f32 %v1393_v34, %v1393_v34  ;;  %v629_v49 = vld [vmem:[%s5170_s22 + $0xb28] sm:$0xff] }
 0x33e   : > { %v1013_v50 = vld [vmem:[%s5176_s25 + $0xb28] sm:$0xff] }
 0x33f   : > { %v4838_v60 = vadd.f32 %v4837_v54, %v4455_v53  ;;  %v2162_v53 = vmul.f32 %v1394_v40, %v1394_v40  ;;  %v1396_v54 = vsub.f32 %v628_v43, %v1012_v44  ;;  %v1397_v62 = vsub.f32 %v629_v49, %v1013_v50  ;;  %v638_v49 = vld [vmem:[%s5170_s22 + $0xb70] sm:$0xff] }
 0x340   : > { %v3930_v63 = vpop.permute.xlu1 %3929  ;;  %v3925_v0 = vpop.permute.xlu0 %3924  ;;  %v1022_v50 = vld [vmem:[%s5176_s25 + $0xb70] sm:$0xff] }
 0x341   : > { %v4839_v4 = vadd.f32 %v4838_v60, %v4456_v59  ;;  %v4458_v9 = vmul.f32 %v3925_v0, %v2154_v61  ;;  %v4459_v17 = vmul.f32 %v3930_v63, %v2155_v5  ;;  %v2163_v61 = vmul.f32 %v1395_v48, %v1395_v48  ;;  %v631_v63 = vld [vmem:[%s5170_s22 + $0xb38] sm:$0xff] }
 0x342   : > { %v1015_v0 = vld [vmem:[%s5176_s25 + $0xb38] sm:$0xff] }
 0x343   : > { %v4840_v10 = vadd.f32 %v4839_v4, %v4457_v3  ;;  %v2164_v3 = vmul.f32 %v1396_v54, %v1396_v54  ;;  %v1398_v4 = vsub.f32 %v630_v57, %v1014_v58  ;;  %v1399_v12 = vsub.f32 %v631_v63, %v1015_v0  ;;  %v640_v63 = vld [vmem:[%s5170_s22 + $0xb80] sm:$0xff] }
 0x344   : > { %v3940_v13 = vpop.permute.xlu1 %3939  ;;  %v3935_v14 = vpop.permute.xlu0 %3934  ;;  %v1024_v0 = vld [vmem:[%s5176_s25 + $0xb80] sm:$0xff] }
 0x345   : > { %v4841_v18 = vadd.f32 %v4840_v10, %v4458_v9  ;;  %v4460_v23 = vmul.f32 %v3935_v14, %v2156_v11  ;;  %v4461_v31 = vmul.f32 %v3940_v13, %v2157_v19  ;;  %v2165_v11 = vmul.f32 %v1397_v62, %v1397_v62  ;;  %v633_v13 = vld [vmem:[%s5170_s22 + $0xb48] sm:$0xff] }
 0x346   : > { %v1017_v14 = vld [vmem:[%s5176_s25 + $0xb48] sm:$0xff] }
 0x347   : > { %v4842_v24 = vadd.f32 %v4841_v18, %v4459_v17  ;;  %v2166_v17 = vmul.f32 %v1398_v4, %v1398_v4  ;;  %v1400_v18 = vsub.f32 %v632_v7, %v1016_v8  ;;  %v1401_v26 = vsub.f32 %v633_v13, %v1017_v14  ;;  %v642_v13 = vld [vmem:[%s5170_s22 + $0xb90] sm:$0xff] }
 0x348   : > { %v3950_v27 = vpop.permute.xlu1 %3949  ;;  %v3945_v28 = vpop.permute.xlu0 %3944  ;;  %v1026_v14 = vld [vmem:[%s5176_s25 + $0xb90] sm:$0xff] }
 0x349   : > { %v4843_v32 = vadd.f32 %v4842_v24, %v4460_v23  ;;  %v4462_v37 = vmul.f32 %v3945_v28, %v2158_v25  ;;  %v4463_v45 = vmul.f32 %v3950_v27, %v2159_v33  ;;  %v2167_v25 = vmul.f32 %v1399_v12, %v1399_v12  ;;  %v635_v27 = vld [vmem:[%s5170_s22 + $0xb58] sm:$0xff] }
 0x34a   : > { %v1019_v28 = vld [vmem:[%s5176_s25 + $0xb58] sm:$0xff] }
 0x34b   : > { %v4844_v38 = vadd.f32 %v4843_v32, %v4461_v31  ;;  %v2168_v31 = vmul.f32 %v1400_v18, %v1400_v18  ;;  %v1402_v32 = vsub.f32 %v634_v21, %v1018_v22  ;;  %v1403_v40 = vsub.f32 %v635_v27, %v1019_v28  ;;  %v644_v27 = vld [vmem:[%s5170_s22 + $0xba0] sm:$0xff] }
 0x34c   : > { %v3960_v41 = vpop.permute.xlu1 %3959  ;;  %v3955_v42 = vpop.permute.xlu0 %3954  ;;  %v1028_v28 = vld [vmem:[%s5176_s25 + $0xba0] sm:$0xff] }
 0x34d   : > { %v4845_v46 = vadd.f32 %v4844_v38, %v4462_v37  ;;  %v4464_v51 = vmul.f32 %v3955_v42, %v2160_v39  ;;  %v4465_v59 = vmul.f32 %v3960_v41, %v2161_v47  ;;  %v2169_v39 = vmul.f32 %v1401_v26, %v1401_v26  ;;  %v637_v41 = vld [vmem:[%s5170_s22 + $0xb68] sm:$0xff] }
 0x34e   : > { %v1021_v42 = vld [vmem:[%s5176_s25 + $0xb68] sm:$0xff] }
 0x34f   : > { %v4846_v52 = vadd.f32 %v4845_v46, %v4463_v45  ;;  %v2170_v45 = vmul.f32 %v1402_v32, %v1402_v32  ;;  %v1404_v46 = vsub.f32 %v636_v35, %v1020_v36  ;;  %v1405_v54 = vsub.f32 %v637_v41, %v1021_v42  ;;  %v646_v41 = vld [vmem:[%s5170_s22 + $0xbb0] sm:$0xff] }
 0x350   : > { %v3970_v55 = vpop.permute.xlu1 %3969  ;;  %v3965_v56 = vpop.permute.xlu0 %3964  ;;  %v1030_v42 = vld [vmem:[%s5176_s25 + $0xbb0] sm:$0xff] }
 0x351   : > { %v4847_v60 = vadd.f32 %v4846_v52, %v4464_v51  ;;  %v4466_v1 = vmul.f32 %v3965_v56, %v2162_v53  ;;  %v4467_v9 = vmul.f32 %v3970_v55, %v2163_v61  ;;  %v2171_v53 = vmul.f32 %v1403_v40, %v1403_v40  ;;  %v639_v55 = vld [vmem:[%s5170_s22 + $0xb78] sm:$0xff] }
 0x352   : > { %v1023_v56 = vld [vmem:[%s5176_s25 + $0xb78] sm:$0xff] }
 0x353   : > { %v4848_v2 = vadd.f32 %v4847_v60, %v4465_v59  ;;  %v2172_v59 = vmul.f32 %v1404_v46, %v1404_v46  ;;  %v1406_v60 = vsub.f32 %v638_v49, %v1022_v50  ;;  %v1407_v4 = vsub.f32 %v639_v55, %v1023_v56  ;;  %v648_v55 = vld [vmem:[%s5170_s22 + $0xbc0] sm:$0xff] }
 0x354   : > { %v3980_v5 = vpop.permute.xlu1 %3979  ;;  %v3975_v6 = vpop.permute.xlu0 %3974  ;;  %v1032_v56 = vld [vmem:[%s5176_s25 + $0xbc0] sm:$0xff] }
 0x355   : > { %v4849_v10 = vadd.f32 %v4848_v2, %v4466_v1  ;;  %v4468_v15 = vmul.f32 %v3975_v6, %v2164_v3  ;;  %v4469_v23 = vmul.f32 %v3980_v5, %v2165_v11  ;;  %v2173_v3 = vmul.f32 %v1405_v54, %v1405_v54  ;;  %v641_v5 = vld [vmem:[%s5170_s22 + $0xb88] sm:$0xff] }
 0x356   : > { %v1025_v6 = vld [vmem:[%s5176_s25 + $0xb88] sm:$0xff] }
 0x357   : > { %v4850_v16 = vadd.f32 %v4849_v10, %v4467_v9  ;;  %v2174_v9 = vmul.f32 %v1406_v60, %v1406_v60  ;;  %v1408_v10 = vsub.f32 %v640_v63, %v1024_v0  ;;  %v1409_v18 = vsub.f32 %v641_v5, %v1025_v6  ;;  %v650_v5 = vld [vmem:[%s5170_s22 + $0xbd0] sm:$0xff] }
 0x358   : > { %v3990_v19 = vpop.permute.xlu1 %3989  ;;  %v3985_v20 = vpop.permute.xlu0 %3984  ;;  %v1034_v6 = vld [vmem:[%s5176_s25 + $0xbd0] sm:$0xff] }
 0x359   : > { %v4851_v24 = vadd.f32 %v4850_v16, %v4468_v15  ;;  %v4470_v29 = vmul.f32 %v3985_v20, %v2166_v17  ;;  %v4471_v37 = vmul.f32 %v3990_v19, %v2167_v25  ;;  %v2175_v17 = vmul.f32 %v1407_v4, %v1407_v4  ;;  %v643_v19 = vld [vmem:[%s5170_s22 + $0xb98] sm:$0xff] }
 0x35a   : > { %v1027_v20 = vld [vmem:[%s5176_s25 + $0xb98] sm:$0xff] }
 0x35b   : > { %v4852_v30 = vadd.f32 %v4851_v24, %v4469_v23  ;;  %v2176_v23 = vmul.f32 %v1408_v10, %v1408_v10  ;;  %v1410_v24 = vsub.f32 %v642_v13, %v1026_v14  ;;  %v1411_v32 = vsub.f32 %v643_v19, %v1027_v20  ;;  %v652_v19 = vld [vmem:[%s5170_s22 + $0xbe0] sm:$0xff] }
 0x35c   : > { %v4000_v33 = vpop.permute.xlu1 %3999  ;;  %v3995_v34 = vpop.permute.xlu0 %3994  ;;  %v1036_v20 = vld [vmem:[%s5176_s25 + $0xbe0] sm:$0xff] }
 0x35d   : > { %v4853_v38 = vadd.f32 %v4852_v30, %v4470_v29  ;;  %v4472_v43 = vmul.f32 %v3995_v34, %v2168_v31  ;;  %v4473_v51 = vmul.f32 %v4000_v33, %v2169_v39  ;;  %v2177_v31 = vmul.f32 %v1409_v18, %v1409_v18  ;;  %v645_v33 = vld [vmem:[%s5170_s22 + $0xba8] sm:$0xff] }
 0x35e   : > { %v1029_v34 = vld [vmem:[%s5176_s25 + $0xba8] sm:$0xff] }
 0x35f   : > { %v4854_v44 = vadd.f32 %v4853_v38, %v4471_v37  ;;  %v2178_v37 = vmul.f32 %v1410_v24, %v1410_v24  ;;  %v1412_v38 = vsub.f32 %v644_v27, %v1028_v28  ;;  %v1413_v46 = vsub.f32 %v645_v33, %v1029_v34  ;;  %v654_v33 = vld [vmem:[%s5170_s22 + $0xbf0] sm:$0xff] }
 0x360   : > { %v4010_v47 = vpop.permute.xlu1 %4009  ;;  %v4005_v48 = vpop.permute.xlu0 %4004  ;;  %v1038_v34 = vld [vmem:[%s5176_s25 + $0xbf0] sm:$0xff] }
 0x361   : > { %v4855_v52 = vadd.f32 %v4854_v44, %v4472_v43  ;;  %v4474_v57 = vmul.f32 %v4005_v48, %v2170_v45  ;;  %v4475_v1 = vmul.f32 %v4010_v47, %v2171_v53  ;;  %v2179_v45 = vmul.f32 %v1411_v32, %v1411_v32  ;;  %v647_v47 = vld [vmem:[%s5170_s22 + $0xbb8] sm:$0xff] }
 0x362   : > { %v1031_v48 = vld [vmem:[%s5176_s25 + $0xbb8] sm:$0xff] }
 0x363   : > { %v4856_v58 = vadd.f32 %v4855_v52, %v4473_v51  ;;  %v2180_v51 = vmul.f32 %v1412_v38, %v1412_v38  ;;  %v1414_v52 = vsub.f32 %v646_v41, %v1030_v42  ;;  %v1415_v60 = vsub.f32 %v647_v47, %v1031_v48 }
 0x364   : > { %v4020_v61 = vpop.permute.xlu1 %4019  ;;  %v4015_v62 = vpop.permute.xlu0 %4014 }
 0x365   : > { %v4857_v2 = vadd.f32 %v4856_v58, %v4474_v57  ;;  %v4476_v7 = vmul.f32 %v4015_v62, %v2172_v59  ;;  %v4477_v15 = vmul.f32 %v4020_v61, %v2173_v3  ;;  %v2181_v59 = vmul.f32 %v1413_v46, %v1413_v46  ;;  %v649_v61 = vld [vmem:[%s5170_s22 + $0xbc8] sm:$0xff] }
 0x366   : > { %v1033_v62 = vld [vmem:[%s5176_s25 + $0xbc8] sm:$0xff] }
 0x367   : > { %v4858_v8 = vadd.f32 %v4857_v2, %v4475_v1  ;;  %v2182_v1 = vmul.f32 %v1414_v52, %v1414_v52  ;;  %v1416_v2 = vsub.f32 %v648_v55, %v1032_v56  ;;  %v1417_v10 = vsub.f32 %v649_v61, %v1033_v62 }
 0x368   : > { %v4030_v11 = vpop.permute.xlu1 %4029  ;;  %v4025_v12 = vpop.permute.xlu0 %4024 }
 0x369   : > { %v4859_v16 = vadd.f32 %v4858_v8, %v4476_v7  ;;  %v4478_v21 = vmul.f32 %v4025_v12, %v2174_v9  ;;  %v4479_v29 = vmul.f32 %v4030_v11, %v2175_v17  ;;  %v2183_v9 = vmul.f32 %v1415_v60, %v1415_v60  ;;  %v651_v11 = vld [vmem:[%s5170_s22 + $0xbd8] sm:$0xff] }
 0x36a   : > { %v1035_v12 = vld [vmem:[%s5176_s25 + $0xbd8] sm:$0xff] }
 0x36b   : > { %v4860_v22 = vadd.f32 %v4859_v16, %v4477_v15  ;;  %v2184_v15 = vmul.f32 %v1416_v2, %v1416_v2  ;;  %v1418_v16 = vsub.f32 %v650_v5, %v1034_v6  ;;  %v1419_v24 = vsub.f32 %v651_v11, %v1035_v12 }
 0x36c   : > { %v4040_v25 = vpop.permute.xlu1 %4039  ;;  %v4035_v26 = vpop.permute.xlu0 %4034 }
 0x36d   : > { %v4861_v30 = vadd.f32 %v4860_v22, %v4478_v21  ;;  %v4480_v35 = vmul.f32 %v4035_v26, %v2176_v23  ;;  %v4481_v43 = vmul.f32 %v4040_v25, %v2177_v31  ;;  %v2185_v23 = vmul.f32 %v1417_v10, %v1417_v10  ;;  %v653_v25 = vld [vmem:[%s5170_s22 + $0xbe8] sm:$0xff] }
 0x36e   : > { %v1037_v26 = vld [vmem:[%s5176_s25 + $0xbe8] sm:$0xff] }
 0x36f   : > { %v4862_v36 = vadd.f32 %v4861_v30, %v4479_v29  ;;  %v2186_v29 = vmul.f32 %v1418_v16, %v1418_v16  ;;  %v1420_v30 = vsub.f32 %v652_v19, %v1036_v20  ;;  %v1421_v38 = vsub.f32 %v653_v25, %v1037_v26 }
 0x370   : > { %v4050_v39 = vpop.permute.xlu1 %4049  ;;  %v4045_v40 = vpop.permute.xlu0 %4044 }
 0x371   : > { %v4863_v44 = vadd.f32 %v4862_v36, %v4480_v35  ;;  %v4482_v49 = vmul.f32 %v4045_v40, %v2178_v37  ;;  %v4483_v57 = vmul.f32 %v4050_v39, %v2179_v45  ;;  %v2187_v37 = vmul.f32 %v1419_v24, %v1419_v24  ;;  %v655_v39 = vld [vmem:[%s5170_s22 + $0xbf8] sm:$0xff] }
 0x372   : > { %v1039_v40 = vld [vmem:[%s5176_s25 + $0xbf8] sm:$0xff] }
 0x373   : > { %v4864_v50 = vadd.f32 %v4863_v44, %v4481_v43  ;;  %v2188_v43 = vmul.f32 %v1420_v30, %v1420_v30  ;;  %v1422_v44 = vsub.f32 %v654_v33, %v1038_v34 }
 0x374   : > { %v4060_v53 = vpop.permute.xlu1 %4059  ;;  %v4055_v54 = vpop.permute.xlu0 %4054 }
 0x375   : > { %v4865_v58 = vadd.f32 %v4864_v50, %v4482_v49  ;;  %v4484_v63 = vmul.f32 %v4055_v54, %v2180_v51  ;;  %v4485_v7 = vmul.f32 %v4060_v53, %v2181_v59  ;;  %v2189_v49 = vmul.f32 %v1421_v38, %v1421_v38 }
 0x376   : > { %v1423_v50 = vsub.f32 %v655_v39, %v1039_v40  ;;  %v2190_v53 = vmul.f32 %v1422_v44, %v1422_v44 }
 0x377   : > { %v4866_v0 = vadd.f32 %v4865_v58, %v4483_v57 }
 0x378   : > { %v4070_v3 = vpop.permute.xlu1 %4069  ;;  %v4065_v4 = vpop.permute.xlu0 %4064  ;;  %v2191_v57 = vmul.f32 %v1423_v50, %v1423_v50 }
 0x379   : > { %v4867_v8 = vadd.f32 %v4866_v0, %v4484_v63  ;;  %v4486_v13 = vmul.f32 %v4065_v4, %v2182_v1  ;;  %v4487_v21 = vmul.f32 %v4070_v3, %v2183_v9 }
 0x37b   : > { %v4868_v14 = vadd.f32 %v4867_v8, %v4485_v7 }
 0x37c   : > { %v4080_v17 = vpop.permute.xlu1 %4079  ;;  %v4075_v18 = vpop.permute.xlu0 %4074 }
 0x37d   : > { %v4869_v22 = vadd.f32 %v4868_v14, %v4486_v13  ;;  %v4488_v27 = vmul.f32 %v4075_v18, %v2184_v15  ;;  %v4489_v35 = vmul.f32 %v4080_v17, %v2185_v23 }
 0x37f   : > { %v4870_v28 = vadd.f32 %v4869_v22, %v4487_v21 }
 0x380   : > { %v4090_v31 = vpop.permute.xlu1 %4089  ;;  %v4085_v32 = vpop.permute.xlu0 %4084 }
 0x381   : > { %v4871_v36 = vadd.f32 %v4870_v28, %v4488_v27  ;;  %v4490_v41 = vmul.f32 %v4085_v32, %v2186_v29  ;;  %v4491_v47 = vmul.f32 %v4090_v31, %v2187_v37 }
 0x383   : > { %v4872_v42 = vadd.f32 %v4871_v36, %v4489_v35 }
 0x384   : > { %v4100_v45 = vpop.permute.xlu1 %4099  ;;  %v4095_v46 = vpop.permute.xlu0 %4094 }
 0x385   : > { %v4873_v48 = vadd.f32 %v4872_v42, %v4490_v41  ;;  %v4492_v51 = vmul.f32 %v4095_v46, %v2188_v43  ;;  %v4493_v55 = vmul.f32 %v4100_v45, %v2189_v49 }
 0x387   : > { %v4874_v52 = vadd.f32 %v4873_v48, %v4491_v47 }
 0x388   : > { %v4105_v54 = vpop.permute.xlu0 %4104  ;;  %v4110_v58 = vpop.permute.xlu1 %4109 }
 0x389   : > { %v4875_v56 = vadd.f32 %v4874_v52, %v4492_v51  ;;  %v4494_v59 = vmul.f32 %v4105_v54, %v2190_v53  ;;  %v4495_v61 = vmul.f32 %v4110_v58, %v2191_v57 }
 0x38b   : > { %v4876_v60 = vadd.f32 %v4875_v56, %v4493_v55 }
 0x38d   : > { %v4877_v62 = vadd.f32 %v4876_v60, %v4494_v59 }
 0x38f   : > { %v4878_v63 = vadd.f32 %v4877_v62, %v4495_v61 }
 0x391   : > { %4879 = vadd.xlane.f32.xlu0 %v4878_v63 }
 0x41a   : > { %v4880_v0 = vpop.xlane.xlu0 %4879 }
 0x41b   : > { %v4881_v1 = vrot.slane %v4880_v0, 4 }
 0x41d   : > { %v4882_v2 = vadd.f32 %v4881_v1, %v4880_v0 }
 0x41f   : > { %v4883_v3 = vrot.slane %v4882_v2, 2 }
 0x421   : > { %v4884_v4 = vadd.f32 %v4883_v3, %v4882_v2 }
 0x423   : > { %v4885_v5 = vrot.slane %v4884_v4, 1 }
 0x425   : > { %v4886_v6 = vadd.f32 %v4885_v5, %v4884_v4 }
 0x427   : > { %5003 = vpush %v4886_v6 }
 0x458   : > { %s5004_s29 = spop %5003 }
 0x459   : > { %v4888_v7 = vstv %s5004_s29 }
 0x45a   : > { %4890 = vst.msk [vmem:[%s270_s28] sm:$0x1] %vm4889_vm0, %v4888_v7 }
 0x45b PF: > { %s13_s14 = sadd.s32 1, %s5054_s14   ;;  %s6287_s12 = smov %s5050_s13 }
 0x45c   : > { %p10_p5 = scmp.ge.s32.totalorder %s13_s14, 4   ;;  %s6288_s13 = smov %s6290_s15 }
 0x45e   :  { %12 = sbr.rel (!%p10_p5) target bundleno = 2 (0x2), region = 68 }

</bundles_post_ra>
